<compile_context>
chip_gen: v5e
topology: v5e:2x2
jax: 0.10.0
libtpu: 0.0.40
codegen_flags: <defaults>
</compile_context>

<pallas_src>
import jax
import jax.numpy as jnp
from jax.experimental import pallas as pl
from jax.experimental.pallas import tpu as pltpu


# ---------------------------------------------------------------------------
# Pallas kernel: folded conv_block + fc, whole batch in one grid step.
# ---------------------------------------------------------------------------
def first_stage_kernel(lat_ref, fcw_ref, w12_ref, b12_ref, colsum_ref, fcb_ref,
                       out_ref):
    # lat_ref    : (B*S, 1024) f32  -- encoder latent, batch flattened into M
    # fcw_ref    : (1024, 768) bf16 -- fc weight, transposed (pre-cast offline)
    # w12_ref    : (77, S)     f32  -- folded conv_block channel mix (w2 @ w1)
    # b12_ref    : (77, 1)     f32  -- folded conv_block bias (w2 @ b1 + b2)
    # colsum_ref : (1, 768)    f32  -- exact f32 column-sum of fc_w^T
    # fcb_ref    : (1, 768)    f32  -- fc bias
    # out_ref    : (B, 77, 768) f32
    B = out_ref.shape[0]
    S = w12_ref.shape[1]

    # bf16 cast happens in VMEM (no separate HBM astype pass in the wrapper).
    lat_bf = lat_ref[...].astype(jnp.bfloat16)

    # Heavy matmul once for all batch rows: (B*S,1024)@(1024,768), f32 acc.
    z = jnp.dot(lat_bf, fcw_ref[...], preferred_element_type=jnp.float32)

    # Rebuild the folded (77,768) bias constant from ~6 KiB of inputs:
    #   c = b12 @ colsum(fc_W^T) + fc_b   (outer product via broadcast mul-add)
    c = b12_ref[...] * colsum_ref[...] + fcb_ref[...]

    w12 = w12_ref[...]
    # Tiny per-batch channel mix (K = S), statically unrolled (B is small).
    for b in range(B):
        zb = z[b * S:(b + 1) * S, :]                         # (S, 768) static slice
        y = jnp.dot(w12, zb, preferred_element_type=jnp.float32) + c
        out_ref[b] = y.astype(out_ref.dtype)                 # lane-dense (77, 768) store


# ---------------------------------------------------------------------------
# One-time weight preprocessing (exact f32 algebra). Call ONCE, cache result.
# ---------------------------------------------------------------------------
def prepare_first_stage_params(w1, b1, w2, b2, fc_w_t, fc_b):
    w12 = w2 @ w1                                        # (77, S)
    b12 = w2 @ b1 + b2                                   # (77, 1)
    colsum = jnp.sum(fc_w_t, axis=0, keepdims=True)      # (1, 768), exact f32
    fcw_bf = fc_w_t.astype(jnp.bfloat16)                 # (1024, 768) bf16 once
    return {
        "w12": w12,
        "b12": b12,
        "colsum": colsum,
        "fcw_bf": fcw_bf,
        "fc_b": fc_b.reshape(1, -1),
    }


# ---------------------------------------------------------------------------
# Per-call wrapper: free reshape + single pallas_call. No per-call weight work.
# ---------------------------------------------------------------------------
def first_stage_pallas(latent, params):
    """latent: (B, S, 1024) float32. Returns (B, 77, 768) float32."""
    B, S, D = latent.shape
    w12, b12 = params["w12"], params["b12"]
    colsum, fcw_bf, fc_b = params["colsum"], params["fcw_bf"], params["fc_b"]
    N77 = w12.shape[0]
    OUT = fcw_bf.shape[1]
    assert w12.shape == (N77, S) and b12.shape == (N77, 1)
    assert fcw_bf.shape == (D, OUT)
    assert colsum.shape == (1, OUT) and fc_b.shape == (1, OUT)

    lat2d = latent.reshape(B * S, D)      # free reshape; dtype stays f32

    buf1 = pl.Buffered(1)                 # grid=(1,): double-buffering buys nothing
    out = pl.pallas_call(
        first_stage_kernel,
        out_shape=jax.ShapeDtypeStruct((B, N77, OUT), jnp.float32),
        grid_spec=pl.GridSpec(
            grid=(1,),
            in_specs=[
                pl.BlockSpec((B * S, D), lambda i: (0, 0), pipeline_mode=buf1),
                pl.BlockSpec((D, OUT), lambda i: (0, 0), pipeline_mode=buf1),
                pl.BlockSpec((N77, S), lambda i: (0, 0), pipeline_mode=buf1),
                pl.BlockSpec((N77, 1), lambda i: (0, 0), pipeline_mode=buf1),
                pl.BlockSpec((1, OUT), lambda i: (0, 0), pipeline_mode=buf1),
                pl.BlockSpec((1, OUT), lambda i: (0, 0), pipeline_mode=buf1),
            ],
            out_specs=pl.BlockSpec((B, N77, OUT), lambda i: (0, 0, 0),
                                   pipeline_mode=buf1),
        ),
        compiler_params=pltpu.CompilerParams(
            dimension_semantics=("arbitrary",)),
    )(lat2d, fcw_bf, w12, b12, colsum, fc_b)
    return out


# ---------------------------------------------------------------------------
# Deterministic stand-in encoder (plain JAX glue): patchify + linear embed.
# Produces (B, num_patches, 1024), matching what First_Stage.forward expects.
# ---------------------------------------------------------------------------
def encoder_stand_in(x, embed_w, embed_b, patch_size):
    B, C, H, W = x.shape
    ps = patch_size
    nh, nw = H // ps, W // ps
    p = x.reshape(B, C, nh, ps, nw, ps)
    p = p.transpose(0, 2, 4, 1, 3, 5).reshape(B, nh * nw, C * ps * ps)
    return p @ embed_w + embed_b  # (B, num_patches, 1024)


# ---------------------------------------------------------------------------
# Pure-JAX f32 reference of the kernel-covered portion (unfused, for checking).
# ---------------------------------------------------------------------------
def first_stage_ref(latent, w1, b1, w2, b2, fc_w_t, fc_b):
    h1 = jnp.einsum('os,bsd->bod', w1, latent) + b1[None, :, :]
    h2 = jnp.einsum('os,bsd->bod', w2, h1) + b2[None, :, :]
    return h2 @ fc_w_t + fc_b[None, :, :]


if __name__ == "__main__":
    key = jax.random.PRNGKey(0)
    keys = jax.random.split(key, 8)

    # Small, consistent shapes.
    B = 2
    C, H, W = 3, 32, 16
    patch_size = 8
    num_patches = (H // patch_size) * (W // patch_size)   # = 8 (== seq_len)
    S, S2 = num_patches, num_patches // 2
    IN_DIM, OUT_DIM = 1024, 768
    patch_dim = C * patch_size * patch_size

    # Deterministic parameters.
    embed_w = 0.02 * jax.random.normal(keys[0], (patch_dim, IN_DIM), jnp.float32)
    embed_b = 0.01 * jax.random.normal(keys[1], (IN_DIM,), jnp.float32)

    w1 = 0.1 * jax.random.normal(keys[2], (S2, S), jnp.float32)        # Conv1d(S, S//2, 1)
    b1 = 0.1 * jax.random.normal(keys[3], (S2, 1), jnp.float32)
    w2 = 0.1 * jax.random.normal(keys[4], (77, S2), jnp.float32)       # Conv1d(S//2, 77, 1)
    b2 = 0.1 * jax.random.normal(keys[5], (77, 1), jnp.float32)
    fc_w_t = 0.02 * jax.random.normal(keys[6], (IN_DIM, OUT_DIM), jnp.float32)  # Linear(1024,768)^T
    fc_b = 0.01 * jax.random.normal(keys[7], (1, OUT_DIM), jnp.float32)

    # One-time weight folding / casting (outside the per-call path).
    params = prepare_first_stage_params(w1, b1, w2, b2, fc_w_t, fc_b)
    params = jax.block_until_ready(params)

    # Input image (NCHW, as PyTorch would feed the encoder).
    x = jax.random.normal(jax.random.PRNGKey(42), (B, C, H, W), jnp.float32)

    # First_Stage.forward: encoder -> latent; conv_block + fc -> out.
    latent = encoder_stand_in(x, embed_w, embed_b, patch_size)         # (B, S, 1024)
    out = first_stage_pallas(latent, params)                           # (B, 77, 768)

    out, latent = jax.block_until_ready((out, latent))

    # Sanity check against the pure-f32 unfused reference (bf16 fc-weight /
    # latent inside the kernel, f32 accumulation -> relaxed tolerance).
    ref = first_stage_ref(latent, w1, b1, w2, b2, fc_w_t, fc_b)
    assert out.shape == (B, 77, OUT_DIM)
    assert latent.shape == (B, S, IN_DIM)
    assert jnp.allclose(out, ref, atol=1e-2, rtol=1e-2), float(jnp.max(jnp.abs(out - ref)))

    print("KERNEL_OK")
</pallas_src>

<mosaic_0001>
module attributes {stable_mosaic.version = 11 : i64} {
  func.func @first_stage_kernel(%arg0: i32, %arg1: memref<16x1024xf32, #tpu.memory_space<vmem>>, %arg2: memref<1024x768xbf16, #tpu.memory_space<vmem>>, %arg3: memref<77x8xf32, #tpu.memory_space<vmem>>, %arg4: memref<77x1xf32, #tpu.memory_space<vmem>>, %arg5: memref<1x768xf32, #tpu.memory_space<vmem>>, %arg6: memref<1x768xf32, #tpu.memory_space<vmem>>, %arg7: memref<2x77x768xf32, #tpu.memory_space<vmem>>) attributes {dimension_semantics = [#tpu.dimension_semantics<arbitrary>], iteration_bounds = array<i64: 1>, scalar_prefetch = 0 : i64, scratch_operands = 0 : i64, tpu.core_type = #tpu.core_type<tc>, window_params = [{pipeline_mode = #tpu.pipeline_mode<synchronous>, transform_indices = @transform_0, window_bounds = array<i64: 16, 1024>}, {pipeline_mode = #tpu.pipeline_mode<synchronous>, transform_indices = @transform_1, window_bounds = array<i64: 1024, 768>}, {pipeline_mode = #tpu.pipeline_mode<synchronous>, transform_indices = @transform_2, window_bounds = array<i64: 77, 8>}, {pipeline_mode = #tpu.pipeline_mode<synchronous>, transform_indices = @transform_3, window_bounds = array<i64: 77, 1>}, {pipeline_mode = #tpu.pipeline_mode<synchronous>, transform_indices = @transform_4, window_bounds = array<i64: 1, 768>}, {pipeline_mode = #tpu.pipeline_mode<synchronous>, transform_indices = @transform_5, window_bounds = array<i64: 1, 768>}, {pipeline_mode = #tpu.pipeline_mode<synchronous>, transform_indices = @transform_6, window_bounds = array<i64: 2, 77, 768>}]} {
    %c0 = arith.constant 0 : index
    %c0_0 = arith.constant 0 : index
    %0 = vector.load %arg1[%c0, %c0_0] : memref<16x1024xf32, #tpu.memory_space<vmem>>, vector<16x1024xf32>
    %1 = arith.truncf %0 : vector<16x1024xf32> to vector<16x1024xbf16>
    %c0_1 = arith.constant 0 : index
    %c0_2 = arith.constant 0 : index
    %2 = vector.load %arg2[%c0_1, %c0_2] : memref<1024x768xbf16, #tpu.memory_space<vmem>>, vector<1024x768xbf16>
    %cst = arith.constant dense<0.000000e+00> : vector<16x768xf32>
    %3 = tpu.matmul %1, %2, %cst {dimension_numbers = #tpu.dot_dimension_numbers<[1], [0], [0], [1], [0, 0, 1, 1], [], []>} : vector<16x1024xbf16>, vector<1024x768xbf16>, vector<16x768xf32> -> vector<16x768xf32>
    %c0_3 = arith.constant 0 : index
    %c0_4 = arith.constant 0 : index
    %4 = vector.load %arg4[%c0_3, %c0_4] : memref<77x1xf32, #tpu.memory_space<vmem>>, vector<77x1xf32>
    %c0_5 = arith.constant 0 : index
    %c0_6 = arith.constant 0 : index
    %5 = vector.load %arg5[%c0_5, %c0_6] : memref<1x768xf32, #tpu.memory_space<vmem>>, vector<1x768xf32>
    %6 = vector.broadcast %4 : vector<77x1xf32> to vector<77x768xf32>
    %7 = vector.broadcast %5 : vector<1x768xf32> to vector<77x768xf32>
    %8 = arith.mulf %6, %7 : vector<77x768xf32>
    %c0_7 = arith.constant 0 : index
    %c0_8 = arith.constant 0 : index
    %9 = vector.load %arg6[%c0_7, %c0_8] : memref<1x768xf32, #tpu.memory_space<vmem>>, vector<1x768xf32>
    %10 = vector.broadcast %9 : vector<1x768xf32> to vector<77x768xf32>
    %11 = arith.addf %8, %10 : vector<77x768xf32>
    %c0_9 = arith.constant 0 : index
    %c0_10 = arith.constant 0 : index
    %12 = vector.load %arg3[%c0_9, %c0_10] : memref<77x8xf32, #tpu.memory_space<vmem>>, vector<77x8xf32>
    %13 = vector.extract_strided_slice %3 {offsets = [0, 0], sizes = [8, 768], strides = [1, 1]} : vector<16x768xf32> to vector<8x768xf32>
    %cst_11 = arith.constant dense<0.000000e+00> : vector<77x768xf32>
    %14 = tpu.matmul %12, %13, %cst_11 {dimension_numbers = #tpu.dot_dimension_numbers<[1], [0], [0], [1], [0, 0, 1, 1], [], []>} : vector<77x8xf32>, vector<8x768xf32>, vector<77x768xf32> -> vector<77x768xf32>
    %15 = arith.addf %14, %11 : vector<77x768xf32>
    %c0_12 = arith.constant 0 : index
    %c0_13 = arith.constant 0 : index
    %c0_14 = arith.constant 0 : index
    %16 = vector.load %arg7[%c0_12, %c0_13, %c0_14] : memref<2x77x768xf32, #tpu.memory_space<vmem>>, vector<1x77x768xf32>
    %17 = vector.shape_cast %16 : vector<1x77x768xf32> to vector<77x768xf32>
    %18 = vector.shape_cast %15 : vector<77x768xf32> to vector<1x77x768xf32>
    tpu.vector_store %arg7[%c0_12, %c0_13, %c0_14], %18 {strides = array<i32>} : memref<2x77x768xf32, #tpu.memory_space<vmem>>, vector<1x77x768xf32>,
    %19 = vector.extract_strided_slice %3 {offsets = [8, 0], sizes = [8, 768], strides = [1, 1]} : vector<16x768xf32> to vector<8x768xf32>
    %cst_15 = arith.constant dense<0.000000e+00> : vector<77x768xf32>
    %20 = tpu.matmul %12, %19, %cst_15 {dimension_numbers = #tpu.dot_dimension_numbers<[1], [0], [0], [1], [0, 0, 1, 1], [], []>} : vector<77x8xf32>, vector<8x768xf32>, vector<77x768xf32> -> vector<77x768xf32>
    %21 = arith.addf %20, %11 : vector<77x768xf32>
    %c1 = arith.constant 1 : index
    %c0_16 = arith.constant 0 : index
    %c0_17 = arith.constant 0 : index
    %22 = vector.load %arg7[%c1, %c0_16, %c0_17] : memref<2x77x768xf32, #tpu.memory_space<vmem>>, vector<1x77x768xf32>
    %23 = vector.shape_cast %22 : vector<1x77x768xf32> to vector<77x768xf32>
    %24 = vector.shape_cast %21 : vector<77x768xf32> to vector<1x77x768xf32>
    tpu.vector_store %arg7[%c1, %c0_16, %c0_17], %24 {strides = array<i32>} : memref<2x77x768xf32, #tpu.memory_space<vmem>>, vector<1x77x768xf32>,
    return
  }
  func.func @transform_0(%arg0: i32) -> (i32, i32) {
    %c0_i32 = arith.constant 0 : i32
    %c0_i32_0 = arith.constant 0 : i32
    %c0_i32_1 = arith.constant 0 : i32
    return %c0_i32, %c0_i32_0 : i32, i32
  }
  func.func @transform_1(%arg0: i32) -> (i32, i32) {
    %c0_i32 = arith.constant 0 : i32
    %c0_i32_0 = arith.constant 0 : i32
    %c0_i32_1 = arith.constant 0 : i32
    return %c0_i32, %c0_i32_0 : i32, i32
  }
  func.func @transform_2(%arg0: i32) -> (i32, i32) {
    %c0_i32 = arith.constant 0 : i32
    %c0_i32_0 = arith.constant 0 : i32
    %c0_i32_1 = arith.constant 0 : i32
    return %c0_i32, %c0_i32_0 : i32, i32
  }
  func.func @transform_3(%arg0: i32) -> (i32, i32) {
    %c0_i32 = arith.constant 0 : i32
    %c0_i32_0 = arith.constant 0 : i32
    %c0_i32_1 = arith.constant 0 : i32
    return %c0_i32, %c0_i32_0 : i32, i32
  }
  func.func @transform_4(%arg0: i32) -> (i32, i32) {
    %c0_i32 = arith.constant 0 : i32
    %c0_i32_0 = arith.constant 0 : i32
    %c0_i32_1 = arith.constant 0 : i32
    return %c0_i32, %c0_i32_0 : i32, i32
  }
  func.func @transform_5(%arg0: i32) -> (i32, i32) {
    %c0_i32 = arith.constant 0 : i32
    %c0_i32_0 = arith.constant 0 : i32
    %c0_i32_1 = arith.constant 0 : i32
    return %c0_i32, %c0_i32_0 : i32, i32
  }
  func.func @transform_6(%arg0: i32) -> (i32, i32, i32) {
    %c0_i32 = arith.constant 0 : i32
    %c0_i32_0 = arith.constant 0 : i32
    %c0_i32_1 = arith.constant 0 : i32
    %c0_i32_2 = arith.constant 0 : i32
    return %c0_i32, %c0_i32_0, %c0_i32_1 : i32, i32, i32
  }
}

</mosaic_0001>

<bundles_post_ra>
// kernel: tpu_custom_call.1
= control target key start
LH: loop header
LB: loop body
LE: loop exit
PB: predicated region body
PF: predicated region fallthrough
CT: control target
= control target key end

     0   :  { %11 = vsyncpa [#allocation3], 0  ;;  %s7685_s0 = inlined_call_operand.hbm [shape: f32[16,1024], index: 0, kind: input, shape index: {}]   ;;  %s7686_s1 = inlined_call_operand.hbm [shape: bf16[1024,768], index: 1, kind: input, shape index: {}]   ;;  %s7687_s2 = inlined_call_operand.vmem [shape: f32[77,8], index: 2, kind: input, shape index: {}]   ;;  %s7688_s3 = inlined_call_operand.vmem [shape: f32[77,1], index: 3, kind: input, shape index: {}]   ;;  %s7689_s4 = inlined_call_operand.hbm [shape: f32[1,768], index: 4, kind: input, shape index: {}]   ;;  %s7690_s5 = inlined_call_operand.hbm [shape: f32[1,768], index: 5, kind: input, shape index: {}]   ;;  %s7691_s6 = inlined_call_operand.vmem [shape: f32[2,77,768], index: 6, kind: output, shape index: {}]  }
   0x1   :  { %12 = vsyncpa [#allocation5], 0  ;;  %s31_s23 = sshll.u32 %s7686_s1, 4  ;;  %s32_s23 = int_to_ptr.hbm [resolvable:$true] %s31_s23 }
   0x2   :  { %13 = vsyncpa [#allocation8], 0  ;;  %s6237_s24 = smov [#allocation4]   ;;  %s18_s28 = sshll.u32 %s7685_s0, 4  ;;  %s19_s28 = int_to_ptr.hbm [resolvable:$true] %s18_s28 }
   0x3   :  { %s33_s25 = sshll.u32 %s6237_s24, 4  ;;  %s6238_s29 = smov 384   ;;  %s34_s25 = int_to_ptr.vmem [resolvable:$true] %s33_s25 }
   0x4   :  { %s6239_s30 = smov 24   ;;  %s6240_s7 = smov [#allocation2]  }
   0x5   :  { %39 = dma.hbm_to_vmem [thread:$0]  %s32_s23, 49152, %s34_s25, [#allocation5], %s6238_s29, %s6238_s29, %s6239_s30  }
   0x6   :  { %s20_s8 = sshll.u32 %s6240_s7, 4  ;;  %s6241_s9 = smov 1024   ;;  %s21_s8 = int_to_ptr.vmem [resolvable:$true] %s20_s8 }
   0x7   :  { %s6242_s10 = smov 64   ;;  %s49_s12 = sshll.u32 %s7689_s4, 4  ;;  %s50_s12 = int_to_ptr.hbm [resolvable:$true] %s49_s12 }
   0x8   :  { %26 = dma.hbm_to_vmem [thread:$0]  %s19_s28, 2048, %s21_s8, [#allocation3], %s6241_s9, %s6241_s9, %s6242_s10  }
   0x9   :  { %s6243_s13 = smov [#allocation6]   ;;  %s60_s16 = sshll.u32 %s7690_s5, 4  ;;  %s61_s16 = int_to_ptr.hbm [resolvable:$true] %s60_s16 }
   0xa   :  { %s51_s14 = sshll.u32 %s6243_s13, 4  ;;  %s6244_s17 = smov [#allocation7]   ;;  %s52_s14 = int_to_ptr.vmem [resolvable:$true] %s51_s14 }
   0xb   :  { %54 = dma.hbm_to_vmem [thread:$0]  %s50_s12, 96, %s52_s14, [#allocation5]  }
   0xc   :  { %s62_s18 = sshll.u32 %s6244_s17, 4  ;;  %s63_s18 = int_to_ptr.vmem [resolvable:$true] %s62_s18 }
   0xd   :  { %65 = dma.hbm_to_vmem [thread:$0]  %s61_s16, 96, %s63_s18, [#allocation8]  }
   0xe   :  { %6231 = dma.done.wait [#allocation3], 2048  }
   0xf   :  { %6232 = vsyncadd [#allocation3], 4294965248 }
  0x10   :  { %6233 = dma.done.wait [#allocation5], 49248  }
  0x11   :  { %6234 = vsyncadd [#allocation5], 4294918048 }
  0x12   :  { %6235 = dma.done.wait [#allocation8], 96  }
  0x13   :  { %6236 = vsyncadd [#allocation8], 4294967200  ;;  %v4193_v0 = vld [vmem:[#allocation4 + $0x150] sm:$0xf]  ;;  %v5784_v1 = vld [vmem:[#allocation4 + $0x164] sm:$0xf0] }
  0x14   :  { %v4385_v2 = vld [vmem:[#allocation4 + $0x2d0] sm:$0xf]  ;;  %v4194_v3 = vor.u32 %v5784_v1, %v4193_v0  ;;  %v5832_v4 = vld [vmem:[#allocation4 + $0x2e4] sm:$0xf0]  ;;  %v4169_v11 = vld [vmem:[#allocation4 + $0x120] sm:$0xf] }
  0x15   :  { %v4577_v5 = vld [vmem:[#allocation4 + $0x450] sm:$0xf]  ;;  %v5880_v6 = vld [vmem:[#allocation4 + $0x464] sm:$0xf0]  ;;  %v4386_v7 = vor.u32 %v5832_v4, %v4385_v2  ;;  %v5778_v13 = vld [vmem:[#allocation4 + $0x134] sm:$0xf0] }
  0x16   :  { %v4578_v8 = vor.u32 %v5880_v6, %v4577_v5  ;;  %v4769_v9 = vld [vmem:[#allocation4 + $0x5d0] sm:$0xf]  ;;  %v5928_v10 = vld [vmem:[#allocation4 + $0x5e4] sm:$0xf0]  ;;  %2410 = vmatpush.bf16.msra.mxu0 %v4194_v3  ;;  %v4361_v14 = vld [vmem:[#allocation4 + $0x2a0] sm:$0xf]  ;;  %v4170_v16 = vor.u32 %v5778_v13, %v4169_v11 }
  0x17   :  { %v4770_v12 = vor.u32 %v5928_v10, %v4769_v9  ;;  %v5826_v15 = vld [vmem:[#allocation4 + $0x2b4] sm:$0xf0]  ;;  %2424 = vmatpush.bf16.msra.mxu1 %v4386_v7  ;;  %v4553_v18 = vld [vmem:[#allocation4 + $0x420] sm:$0xf]  ;;  %v4145_v23 = vld [vmem:[#allocation4 + $0xf0] sm:$0xf] }
  0x18   :  { %2438 = vmatpush.bf16.msra.mxu2 %v4578_v8  ;;  %v4362_v17 = vor.u32 %v5826_v15, %v4361_v14  ;;  %v5874_v19 = vld [vmem:[#allocation4 + $0x434] sm:$0xf0]  ;;  %v4745_v20 = vld [vmem:[#allocation4 + $0x5a0] sm:$0xf]  ;;  %v5772_v24 = vld [vmem:[#allocation4 + $0x104] sm:$0xf0] }
  0x19   :  { %2452 = vmatpush.bf16.msra.mxu3 %v4770_v12  ;;  %v4554_v21 = vor.u32 %v5874_v19, %v4553_v18  ;;  %v5922_v22 = vld [vmem:[#allocation4 + $0x5b4] sm:$0xf0]  ;;  %v4337_v26 = vld [vmem:[#allocation4 + $0x270] sm:$0xf]  ;;  %v5820_v27 = vld [vmem:[#allocation4 + $0x284] sm:$0xf0]  ;;  %v4146_v29 = vor.u32 %v5772_v24, %v4145_v23 }
  0x1a   :  { %v4746_v25 = vor.u32 %v5922_v22, %v4745_v20  ;;  %v4529_v28 = vld [vmem:[#allocation4 + $0x3f0] sm:$0xf]  ;;  %2411 = vmatpush.bf16.msra.mxu0 %v4170_v16  ;;  %v5868_v30 = vld [vmem:[#allocation4 + $0x404] sm:$0xf0]  ;;  %v4338_v33 = vor.u32 %v5820_v27, %v4337_v26  ;;  %v4121_v35 = vld [vmem:[#allocation4 + $0xc0] sm:$0xf] }
  0x1b   :  { %v4721_v31 = vld [vmem:[#allocation4 + $0x570] sm:$0xf]  ;;  %v5916_v32 = vld [vmem:[#allocation4 + $0x584] sm:$0xf0]  ;;  %2425 = vmatpush.bf16.msra.mxu1 %v4362_v17  ;;  %v4530_v34 = vor.u32 %v5868_v30, %v4529_v28  ;;  %v5766_v36 = vld [vmem:[#allocation4 + $0xd4] sm:$0xf0] }
  0x1c   :  { %2439 = vmatpush.bf16.msra.mxu2 %v4554_v21  ;;  %v4313_v37 = vld [vmem:[#allocation4 + $0x240] sm:$0xf]  ;;  %v4722_v38 = vor.u32 %v5916_v32, %v4721_v31  ;;  %v5814_v39 = vld [vmem:[#allocation4 + $0x254] sm:$0xf0]  ;;  %v4122_v44 = vor.u32 %v5766_v36, %v4121_v35  ;;  %v4097_v47 = vld [vmem:[#allocation4 + $0x90] sm:$0xf] }
  0x1d   :  { %2453 = vmatpush.bf16.msra.mxu3 %v4746_v25  ;;  %v4505_v40 = vld [vmem:[#allocation4 + $0x3c0] sm:$0xf]  ;;  %v5862_v41 = vld [vmem:[#allocation4 + $0x3d4] sm:$0xf0]  ;;  %v4314_v45 = vor.u32 %v5814_v39, %v4313_v37  ;;  %v5760_v48 = vld [vmem:[#allocation4 + $0xa4] sm:$0xf0] }
  0x1e   :  { %v4697_v42 = vld [vmem:[#allocation4 + $0x540] sm:$0xf]  ;;  %v5910_v43 = vld [vmem:[#allocation4 + $0x554] sm:$0xf0]  ;;  %2412 = vmatpush.bf16.msra.mxu0 %v4146_v29  ;;  %v4506_v46 = vor.u32 %v5862_v41, %v4505_v40  ;;  %v4289_v49 = vld [vmem:[#allocation4 + $0x210] sm:$0xf]  ;;  %v4098_v56 = vor.u32 %v5760_v48, %v4097_v47 }
  0x1f   :  { %2426 = vmatpush.bf16.msra.mxu1 %v4338_v33  ;;  %v4698_v50 = vor.u32 %v5910_v43, %v4697_v42  ;;  %v5808_v51 = vld [vmem:[#allocation4 + $0x224] sm:$0xf0]  ;;  %v4481_v52 = vld [vmem:[#allocation4 + $0x390] sm:$0xf]  ;;  %v4073_v59 = vld [vmem:[#allocation4 + $0x60] sm:$0xf] }
  0x20   :  { %2440 = vmatpush.bf16.msra.mxu2 %v4530_v34  ;;  %v5856_v53 = vld [vmem:[#allocation4 + $0x3a4] sm:$0xf0]  ;;  %v4673_v54 = vld [vmem:[#allocation4 + $0x510] sm:$0xf]  ;;  %v4290_v57 = vor.u32 %v5808_v51, %v4289_v49  ;;  %v5754_v60 = vld [vmem:[#allocation4 + $0x74] sm:$0xf0] }
  0x21   :  { %2454 = vmatpush.bf16.msra.mxu3 %v4722_v38  ;;  %v5904_v55 = vld [vmem:[#allocation4 + $0x524] sm:$0xf0]  ;;  %v4482_v58 = vor.u32 %v5856_v53, %v4481_v52  ;;  %v4265_v61 = vld [vmem:[#allocation4 + $0x1e0] sm:$0xf]  ;;  %v5802_v63 = vld [vmem:[#allocation4 + $0x1f4] sm:$0xf0]  ;;  %v4074_v4 = vor.u32 %v5754_v60, %v4073_v59 }
  0x22   :  { %2413 = vmatpush.bf16.msra.mxu0 %v4122_v44  ;;  %v4674_v62 = vor.u32 %v5904_v55, %v4673_v54  ;;  %v4457_v0 = vld [vmem:[#allocation4 + $0x360] sm:$0xf]  ;;  %v5850_v1 = vld [vmem:[#allocation4 + $0x374] sm:$0xf0]  ;;  %v4266_v5 = vor.u32 %v5802_v63, %v4265_v61  ;;  %v4049_v7 = vld [vmem:[#allocation4 + $0x30] sm:$0xf] }
  0x23   :  { %2427 = vmatpush.bf16.msra.mxu1 %v4314_v45  ;;  %v4649_v2 = vld [vmem:[#allocation4 + $0x4e0] sm:$0xf]  ;;  %v5898_v3 = vld [vmem:[#allocation4 + $0x4f4] sm:$0xf0]  ;;  %v4458_v6 = vor.u32 %v5850_v1, %v4457_v0  ;;  %v5748_v8 = vld [vmem:[#allocation4 + $0x44] sm:$0xf0] }
  0x24   :  { %2441 = vmatpush.bf16.msra.mxu2 %v4506_v46  ;;  %v4241_v9 = vld [vmem:[#allocation4 + $0x1b0] sm:$0xf]  ;;  %v4650_v10 = vor.u32 %v5898_v3, %v4649_v2  ;;  %v5796_v11 = vld [vmem:[#allocation4 + $0x1c4] sm:$0xf0]  ;;  %v4050_v16 = vor.u32 %v5748_v8, %v4049_v7  ;;  %v4025_v17 = vld [vmem:[#allocation4] sm:$0xf] }
  0x25   :  { %2455 = vmatpush.bf16.msra.mxu3 %v4698_v50  ;;  %v4433_v12 = vld [vmem:[#allocation4 + $0x330] sm:$0xf]  ;;  %v5844_v13 = vld [vmem:[#allocation4 + $0x344] sm:$0xf0]  ;;  %v5742_v18 = vld [vmem:[#allocation4 + $0x14] sm:$0xf0]  ;;  %v4242_v19 = vor.u32 %v5796_v11, %v4241_v9 }
  0x26   :  { %2414 = vmatpush.bf16.msra.mxu0 %v4098_v56  ;;  %v4625_v14 = vld [vmem:[#allocation4 + $0x4b0] sm:$0xf]  ;;  %v5892_v15 = vld [vmem:[#allocation4 + $0x4c4] sm:$0xf0]  ;;  %v4434_v20 = vor.u32 %v5844_v13, %v4433_v12  ;;  %v4217_v21 = vld [vmem:[#allocation4 + $0x180] sm:$0xf]  ;;  %v4026_v31 = vor.u32 %v5742_v18, %v4025_v17 }
  0x27   :  { %2428 = vmatpush.bf16.msra.mxu1 %v4290_v57  ;;  %v5790_v22 = vld [vmem:[#allocation4 + $0x194] sm:$0xf0]  ;;  %v4409_v23 = vld [vmem:[#allocation4 + $0x300] sm:$0xf]  ;;  %v4626_v24 = vor.u32 %v5892_v15, %v4625_v14  ;;  %v4961_v28 = vld [vmem:[#allocation4 + $0x750] sm:$0xf] }
  0x28   :  { %2442 = vmatpush.bf16.msra.mxu2 %v4482_v58  ;;  %v5838_v25 = vld [vmem:[#allocation4 + $0x314] sm:$0xf0]  ;;  %v4601_v26 = vld [vmem:[#allocation4 + $0x480] sm:$0xf]  ;;  %v5976_v29 = vld [vmem:[#allocation4 + $0x764] sm:$0xf0]  ;;  %v4218_v35 = vor.u32 %v5790_v22, %v4217_v21 }
  0x29   :  { %2456 = vmatpush.bf16.msra.mxu3 %v4674_v62  ;;  %v5886_v27 = vld [vmem:[#allocation4 + $0x494] sm:$0xf0]  ;;  %v5153_v30 = vld [vmem:[#allocation4 + $0x8d0] sm:$0xf]  ;;  %v6024_v32 = vld [vmem:[#allocation4 + $0x8e4] sm:$0xf0]  ;;  %v4410_v36 = vor.u32 %v5838_v25, %v4409_v23  ;;  %v4962_v40 = vor.u32 %v5976_v29, %v4961_v28 }
  0x2a   :  { %2415 = vmatpush.bf16.msra.mxu0 %v4074_v4  ;;  %v5345_v33 = vld [vmem:[#allocation4 + $0xa50] sm:$0xf]  ;;  %v6072_v34 = vld [vmem:[#allocation4 + $0xa64] sm:$0xf0]  ;;  %v4602_v39 = vor.u32 %v5886_v27, %v4601_v26  ;;  %v4937_v41 = vld [vmem:[#allocation4 + $0x720] sm:$0xf]  ;;  %v5154_v43 = vor.u32 %v6024_v32, %v5153_v30 }
  0x2b   :  { %2429 = vmatpush.bf16.msra.mxu1 %v4266_v5  ;;  %v5537_v37 = vld [vmem:[#allocation4 + $0xbd0] sm:$0xf]  ;;  %v6120_v38 = vld [vmem:[#allocation4 + $0xbe4] sm:$0xf0]  ;;  %v5970_v42 = vld [vmem:[#allocation4 + $0x734] sm:$0xf0]  ;;  %v5346_v44 = vor.u32 %v6072_v34, %v5345_v33 }
  0x2c   :  { %2443 = vmatpush.bf16.msra.mxu2 %v4458_v6  ;;  %v5129_v45 = vld [vmem:[#allocation4 + $0x8a0] sm:$0xf]  ;;  %v6018_v46 = vld [vmem:[#allocation4 + $0x8b4] sm:$0xf0]  ;;  %v5538_v48 = vor.u32 %v6120_v38, %v5537_v37  ;;  %v84_v54 = vld [vmem:[#allocation2 + $0x10] sm:$0xff]  ;;  %v4938_v55 = vor.u32 %v5970_v42, %v4937_v41  ;;  %vm3300_vm0 = vcmask 64512  }
  0x2d   :  { %2457 = vmatpush.bf16.msra.mxu3 %v4650_v10  ;;  %v5321_v47 = vld [vmem:[#allocation4 + $0xa20] sm:$0xf]  ;;  %v6066_v49 = vld [vmem:[#allocation4 + $0xa34] sm:$0xf0]  ;;  %v4913_v56 = vld [vmem:[#allocation4 + $0x6f0] sm:$0xf]  ;;  %v5130_v60 = vor.u32 %v6018_v46, %v5129_v45 }
  0x2e   :  { %2416 = vmatpush.bf16.msra.mxu0 %v4050_v16  ;;  %v5513_v50 = vld [vmem:[#allocation4 + $0xba0] sm:$0xf]  ;;  %v6114_v51 = vld [vmem:[#allocation4 + $0xbb4] sm:$0xf0]  ;;  %v5964_v57 = vld [vmem:[#allocation4 + $0x704] sm:$0xf0]  ;;  %v5322_v61 = vor.u32 %v6066_v49, %v5321_v47 }
  0x2f   :  { %2430 = vmatpush.bf16.msra.mxu1 %v4242_v19  ;;  %v82_v52 = vld [vmem:[#allocation2] sm:$0xff]  ;;  %v92_v59 = vld [vmem:[#allocation2 + $0x50] sm:$0xff]  ;;  %v6012_v63 = vld [vmem:[#allocation4 + $0x884] sm:$0xf0]  ;;  %v5514_v2 = vor.u32 %v6114_v51, %v5513_v50  ;;  %v4914_v9 = vor.u32 %v5964_v57, %v4913_v56 }
  0x30   :  { %2444 = vmatpush.bf16.msra.mxu2 %v4434_v20  ;;  %v90_v53 = vld [vmem:[#allocation2 + $0x40] sm:$0xff]  ;;  %v5105_v62 = vld [vmem:[#allocation4 + $0x870] sm:$0xf]  ;;  %v6295_v1 = vpack.c.bf16 %v92_v59, %v84_v54  ;;  %v6060_v3 = vld [vmem:[#allocation4 + $0xa04] sm:$0xf0] }
  0x31   :  { %2458 = vmatpush.bf16.msra.mxu3 %v4626_v24  ;;  %v6293_v58 = vpack.c.bf16 %v90_v53, %v82_v52  ;;  %v5297_v0 = vld [vmem:[#allocation4 + $0x9f0] sm:$0xf]  ;;  %v6108_v5 = vld [vmem:[#allocation4 + $0xb84] sm:$0xf0]  ;;  %v85_v8 = vld [vmem:[#allocation2 + $0x18] sm:$0xff]  ;;  %v5106_v12 = vor.u32 %v6012_v63, %v5105_v62 }
  0x32   :  { %2417 = vmatpush.bf16.msra.mxu0 %v4026_v31  ;;  %v5489_v4 = vld [vmem:[#allocation4 + $0xb70] sm:$0xf]  ;;  %v83_v6 = vld [vmem:[#allocation2 + $0x8] sm:$0xff]  ;;  %v93_v11 = vld [vmem:[#allocation2 + $0x58] sm:$0xff]  ;;  %v5298_v13 = vor.u32 %v6060_v3, %v5297_v0 }
  0x33   :  { %2431 = vmatpush.bf16.msra.mxu1 %v4218_v35  ;;  %v91_v7 = vld [vmem:[#allocation2 + $0x48] sm:$0xff]  ;;  %v4889_v14 = vld [vmem:[#allocation4 + $0x6c0] sm:$0xf]  ;;  %v5958_v15 = vld [vmem:[#allocation4 + $0x6d4] sm:$0xf0]  ;;  %v6301_v17 = vpack.c.bf16 %v93_v11, %v85_v8  ;;  %v5490_v18 = vor.u32 %v6108_v5, %v5489_v4 }
  0x34   :  { %2445 = vmatpush.bf16.msra.mxu2 %v4410_v36  ;;  %v6299_v10 = vpack.c.bf16 %v91_v7, %v83_v6  ;;  %v5081_v16 = vld [vmem:[#allocation4 + $0x840] sm:$0xf]  ;;  %v6006_v19 = vld [vmem:[#allocation4 + $0x854] sm:$0xf0]  ;;  %v4890_v24 = vor.u32 %v5958_v15, %v4889_v14  ;;  %v4865_v27 = vld [vmem:[#allocation4 + $0x690] sm:$0xf] }
  0x35   :  { %2459 = vmatpush.bf16.msra.mxu3 %v4602_v39  ;;  %2418 = vmatmul.bf16.vlgmr.msra.gmra.mxu0 %v6293_v58  ;;  %v5273_v20 = vld [vmem:[#allocation4 + $0x9c0] sm:$0xf]  ;;  %v6054_v21 = vld [vmem:[#allocation4 + $0x9d4] sm:$0xf0]  ;;  %v5082_v25 = vor.u32 %v6006_v19, %v5081_v16  ;;  %v5952_v28 = vld [vmem:[#allocation4 + $0x6a4] sm:$0xf0] }
  0x36   :  { %2466 = vmatpush.bf16.msrb.mxu0 %v4962_v40  ;;  %2432 = vmatmul.bf16.vlgmr.msra.gmra.mxu1 %v6299_v10  ;;  %v5465_v22 = vld [vmem:[#allocation4 + $0xb40] sm:$0xf]  ;;  %v6102_v23 = vld [vmem:[#allocation4 + $0xb54] sm:$0xf0]  ;;  %v5274_v26 = vor.u32 %v6054_v21, %v5273_v20  ;;  %v5057_v29 = vld [vmem:[#allocation4 + $0x810] sm:$0xf]  ;;  %v4866_v36 = vor.u32 %v5952_v28, %v4865_v27 }
  0x37   :  { %2480 = vmatpush.bf16.msrb.mxu1 %v5154_v43  ;;  %2446 = vmatmul.bf16.vlgmr.msra.gmra.mxu2 %v6295_v1  ;;  %v5466_v30 = vor.u32 %v6102_v23, %v5465_v22  ;;  %v6000_v31 = vld [vmem:[#allocation4 + $0x824] sm:$0xf0]  ;;  %v5249_v32 = vld [vmem:[#allocation4 + $0x990] sm:$0xf]  ;;  %v4841_v39 = vld [vmem:[#allocation4 + $0x660] sm:$0xf] }
  0x38   :  { %2494 = vmatpush.bf16.msrb.mxu2 %v5346_v44  ;;  %2460 = vmatmul.bf16.vlgmr.msra.gmra.mxu3 %v6301_v17  ;;  %v6048_v33 = vld [vmem:[#allocation4 + $0x9a4] sm:$0xf0]  ;;  %v5441_v34 = vld [vmem:[#allocation4 + $0xb10] sm:$0xf]  ;;  %v5058_v37 = vor.u32 %v6000_v31, %v5057_v29  ;;  %v5946_v40 = vld [vmem:[#allocation4 + $0x674] sm:$0xf0] }
  0x39   :  { %2508 = vmatpush.bf16.msrb.mxu3 %v5538_v48  ;;  %v6096_v35 = vld [vmem:[#allocation4 + $0xb24] sm:$0xf0]  ;;  %v5250_v38 = vor.u32 %v6048_v33, %v5249_v32  ;;  %v5033_v41 = vld [vmem:[#allocation4 + $0x7e0] sm:$0xf]  ;;  %v5994_v43 = vld [vmem:[#allocation4 + $0x7f4] sm:$0xf0]  ;;  %v4842_v48 = vor.u32 %v5946_v40, %v4841_v39 }
  0x3a   :  { %2467 = vmatpush.bf16.msrb.mxu0 %v4938_v55  ;;  %v5442_v42 = vor.u32 %v6096_v35, %v5441_v34  ;;  %v5225_v44 = vld [vmem:[#allocation4 + $0x960] sm:$0xf]  ;;  %v6042_v45 = vld [vmem:[#allocation4 + $0x974] sm:$0xf0]  ;;  %v4817_v49 = vld [vmem:[#allocation4 + $0x630] sm:$0xf]  ;;  %v5034_v50 = vor.u32 %v5994_v43, %v5033_v41 }
  0x3b   :  { %2481 = vmatpush.bf16.msrb.mxu1 %v5130_v60  ;;  %v5417_v46 = vld [vmem:[#allocation4 + $0xae0] sm:$0xf]  ;;  %v6090_v47 = vld [vmem:[#allocation4 + $0xaf4] sm:$0xf0]  ;;  %v5226_v51 = vor.u32 %v6042_v45, %v5225_v44  ;;  %v5940_v52 = vld [vmem:[#allocation4 + $0x644] sm:$0xf0] }
  0x3c   :  { %2495 = vmatpush.bf16.msrb.mxu2 %v5322_v61  ;;  %v5009_v53 = vld [vmem:[#allocation4 + $0x7b0] sm:$0xf]  ;;  %v5988_v54 = vld [vmem:[#allocation4 + $0x7c4] sm:$0xf0]  ;;  %v5418_v55 = vor.u32 %v6090_v47, %v5417_v46  ;;  %v4793_v61 = vld [vmem:[#allocation4 + $0x600] sm:$0xf]  ;;  %v4818_v63 = vor.u32 %v5940_v52, %v4817_v49 }
  0x3d   :  { %2509 = vmatpush.bf16.msrb.mxu3 %v5514_v2  ;;  %v5201_v56 = vld [vmem:[#allocation4 + $0x930] sm:$0xf]  ;;  %v6036_v57 = vld [vmem:[#allocation4 + $0x944] sm:$0xf0]  ;;  %v5934_v62 = vld [vmem:[#allocation4 + $0x614] sm:$0xf0]  ;;  %v5010_v5 = vor.u32 %v5988_v54, %v5009_v53 }
  0x3e   :  { %2468 = vmatpush.bf16.msrb.mxu0 %v4914_v9  ;;  %v5393_v59 = vld [vmem:[#allocation4 + $0xab0] sm:$0xf]  ;;  %v6084_v60 = vld [vmem:[#allocation4 + $0xac4] sm:$0xf0]  ;;  %v4985_v0 = vld [vmem:[#allocation4 + $0x780] sm:$0xf]  ;;  %v5202_v6 = vor.u32 %v6036_v57, %v5201_v56  ;;  %v4794_v19 = vor.u32 %v5934_v62, %v4793_v61 }
  0x3f   :  { %2482 = vmatpush.bf16.msrb.mxu1 %v5106_v12  ;;  %v5982_v2 = vld [vmem:[#allocation4 + $0x794] sm:$0xf0]  ;;  %v5177_v3 = vld [vmem:[#allocation4 + $0x900] sm:$0xf]  ;;  %v5781_v9 = vld [vmem:[#allocation4 + $0x154] sm:$0xf]  ;;  %v5394_v11 = vor.u32 %v6084_v60, %v5393_v59 }
  0x40   :  { %2496 = vmatpush.bf16.msrb.mxu2 %v5298_v13  ;;  %v6030_v4 = vld [vmem:[#allocation4 + $0x914] sm:$0xf0]  ;;  %v5369_v7 = vld [vmem:[#allocation4 + $0xa80] sm:$0xf]  ;;  %v4195_v12 = vld [vmem:[#allocation4 + $0x168] sm:$0xf0]  ;;  %v4986_v23 = vor.u32 %v5982_v2, %v4985_v0 }
  0x41   :  { %2510 = vmatpush.bf16.msrb.mxu3 %v5490_v18  ;;  %v6078_v8 = vld [vmem:[#allocation4 + $0xa94] sm:$0xf0]  ;;  %v5829_v13 = vld [vmem:[#allocation4 + $0x2d4] sm:$0xf]  ;;  %v4387_v14 = vld [vmem:[#allocation4 + $0x2e8] sm:$0xf0]  ;;  %v4198_v29 = vor.u32 %v5781_v9, %v4195_v12 }
  0x42   :  { %2469 = vmatpush.bf16.msrb.mxu0 %v4890_v24  ;;  %v5877_v15 = vld [vmem:[#allocation4 + $0x454] sm:$0xf]  ;;  %v4579_v16 = vld [vmem:[#allocation4 + $0x468] sm:$0xf0]  ;;  %v86_v21 = vld [vmem:[#allocation2 + $0x20] sm:$0xff]  ;;  %v5178_v24 = vor.u32 %v6030_v4, %v5177_v3  ;;  %v5370_v28 = vor.u32 %v6078_v8, %v5369_v7  ;;  %v4390_v33 = vor.u32 %v5829_v13, %v4387_v14 }
  0x43   :  { %2483 = vmatpush.bf16.msrb.mxu1 %v5082_v25  ;;  %v5925_v18 = vld [vmem:[#allocation4 + $0x5d4] sm:$0xf]  ;;  %v4771_v20 = vld [vmem:[#allocation4 + $0x5e8] sm:$0xf0]  ;;  %v94_v22 = vld [vmem:[#allocation2 + $0x60] sm:$0xff]  ;;  %v4582_v34 = vor.u32 %v5877_v15, %v4579_v16 }
  0x44   :  { %2497 = vmatpush.bf16.msrb.mxu2 %v5274_v26  ;;  %v88_v25 = vld [vmem:[#allocation2 + $0x30] sm:$0xff]  ;;  %v87_v27 = vld [vmem:[#allocation2 + $0x28] sm:$0xff]  ;;  %v89_v31 = vld [vmem:[#allocation2 + $0x38] sm:$0xff]  ;;  %v6305_v39 = vpack.c.bf16 %v94_v22, %v86_v21 }
  0x45   :  { %2511 = vmatpush.bf16.msrb.mxu3 %v5466_v30  ;;  %v96_v26 = vld [vmem:[#allocation2 + $0x70] sm:$0xff]  ;;  %v95_v30 = vld [vmem:[#allocation2 + $0x68] sm:$0xff]  ;;  %v97_v32 = vld [vmem:[#allocation2 + $0x78] sm:$0xff] }
  0x46   :  { %2470 = vmatpush.bf16.msrb.mxu0 %v4866_v36  ;;  %v5775_v35 = vld [vmem:[#allocation4 + $0x124] sm:$0xf]  ;;  %v4171_v36 = vld [vmem:[#allocation4 + $0x138] sm:$0xf0]  ;;  %7709 = vst [vmem:[#allocation12_spill] sm:$0xff] %v6305_v39  ;;  %v6307_v43 = vpack.c.bf16 %v96_v26, %v88_v25  ;;  %v6309_v44 = vpack.c.bf16 %v95_v30, %v87_v27  ;;  %v6311_v47 = vpack.c.bf16 %v97_v32, %v89_v31 }
  0x47   :  { %2484 = vmatpush.bf16.msrb.mxu1 %v5058_v37  ;;  %v5823_v37 = vld [vmem:[#allocation4 + $0x2a4] sm:$0xf]  ;;  %v4363_v40 = vld [vmem:[#allocation4 + $0x2b8] sm:$0xf0]  ;;  %v4147_v52 = vld [vmem:[#allocation4 + $0x108] sm:$0xf0] }
  0x48   :  { %2498 = vmatpush.bf16.msrb.mxu2 %v5250_v38  ;;  %v4774_v38 = vor.u32 %v5925_v18, %v4771_v20  ;;  %v5871_v41 = vld [vmem:[#allocation4 + $0x424] sm:$0xf]  ;;  %7710 = vst [vmem:[#allocation13_spill] sm:$0xff] %v6307_v43  ;;  %v4747_v46 = vld [vmem:[#allocation4 + $0x5b8] sm:$0xf0]  ;;  %v4366_v49 = vor.u32 %v5823_v37, %v4363_v40 }
  0x49   :  { %2512 = vmatpush.bf16.msrb.mxu3 %v5442_v42  ;;  %v4555_v42 = vld [vmem:[#allocation4 + $0x438] sm:$0xf0]  ;;  %7711 = vst [vmem:[#allocation14_spill] sm:$0xff] %v6309_v44  ;;  %v5919_v45 = vld [vmem:[#allocation4 + $0x5a4] sm:$0xf] }
  0x4a   :  { %2471 = vmatpush.bf16.msrb.mxu0 %v4842_v48  ;;  %7712 = vst [vmem:[#allocation15_spill] sm:$0xff] %v6311_v47  ;;  %v4174_v48 = vor.u32 %v5775_v35, %v4171_v36  ;;  %v5817_v53 = vld [vmem:[#allocation4 + $0x274] sm:$0xf]  ;;  %v4750_v54 = vor.u32 %v5919_v45, %v4747_v46  ;;  %v4531_v57 = vld [vmem:[#allocation4 + $0x408] sm:$0xf0] }
  0x4b   :  { %2485 = vmatpush.bf16.msrb.mxu1 %v5034_v50  ;;  %v4558_v50 = vor.u32 %v5871_v41, %v4555_v42  ;;  %v5865_v56 = vld [vmem:[#allocation4 + $0x3f4] sm:$0xf]  ;;  %v4723_v60 = vld [vmem:[#allocation4 + $0x588] sm:$0xf0]  ;;  %v5763_v0 = vld [vmem:[#allocation4 + $0xc4] sm:$0xf] }
  0x4c   :  { %2499 = vmatpush.bf16.msrb.mxu2 %v5226_v51  ;;  %v5769_v51 = vld [vmem:[#allocation4 + $0xf4] sm:$0xf]  ;;  %v4123_v2 = vld [vmem:[#allocation4 + $0xd8] sm:$0xf0]  ;;  %v5811_v3 = vld [vmem:[#allocation4 + $0x244] sm:$0xf] }
  0x4d   :  { %2513 = vmatpush.bf16.msrb.mxu3 %v5418_v55  ;;  %v4339_v55 = vld [vmem:[#allocation4 + $0x288] sm:$0xf0]  ;;  %v5913_v59 = vld [vmem:[#allocation4 + $0x574] sm:$0xf]  ;;  %v4150_v61 = vor.u32 %v5769_v51, %v4147_v52  ;;  %v4507_v7 = vld [vmem:[#allocation4 + $0x3d8] sm:$0xf0] }
  0x4e   :  { %2472 = vmatpush.bf16.msrb.mxu0 %v4818_v63  ;;  %v4342_v62 = vor.u32 %v5817_v53, %v4339_v55  ;;  %v4534_v63 = vor.u32 %v5865_v56, %v4531_v57  ;;  %v4726_v4 = vor.u32 %v5913_v59, %v4723_v60  ;;  %v5907_v8 = vld [vmem:[#allocation4 + $0x544] sm:$0xf]  ;;  %v4699_v9 = vld [vmem:[#allocation4 + $0x558] sm:$0xf0]  ;;  %v5757_v14 = vld [vmem:[#allocation4 + $0x94] sm:$0xf] }
  0x4f   :  { %2486 = vmatpush.bf16.msrb.mxu1 %v5010_v5  ;;  %v4315_v5 = vld [vmem:[#allocation4 + $0x258] sm:$0xf0]  ;;  %v4099_v15 = vld [vmem:[#allocation4 + $0xa8] sm:$0xf0]  ;;  %v5805_v16 = vld [vmem:[#allocation4 + $0x214] sm:$0xf]  ;;  %v4702_v18 = vor.u32 %v5907_v8, %v4699_v9 }
  0x50   :  { %2500 = vmatpush.bf16.msrb.mxu2 %v5202_v6  ;;  %v5859_v6 = vld [vmem:[#allocation4 + $0x3c4] sm:$0xf]  ;;  %v4318_v12 = vor.u32 %v5811_v3, %v4315_v5  ;;  %v5853_v20 = vld [vmem:[#allocation4 + $0x394] sm:$0xf]  ;;  %v4483_v21 = vld [vmem:[#allocation4 + $0x3a8] sm:$0xf0] }
  0x51   :  { %2514 = vmatpush.bf16.msrb.mxu3 %v5394_v11  ;;  %v4126_v11 = vor.u32 %v5763_v0, %v4123_v2  ;;  %v4510_v13 = vor.u32 %v5859_v6, %v4507_v7  ;;  %v5901_v22 = vld [vmem:[#allocation4 + $0x514] sm:$0xf]  ;;  %v4486_v26 = vor.u32 %v5853_v20, %v4483_v21  ;;  %v5751_v27 = vld [vmem:[#allocation4 + $0x64] sm:$0xf]  ;;  %v4267_v31 = vld [vmem:[#allocation4 + $0x1f8] sm:$0xf0] }
  0x52   :  { %2473 = vmatpush.bf16.msrb.mxu0 %v4794_v19  ;;  %v4291_v19 = vld [vmem:[#allocation4 + $0x228] sm:$0xf0]  ;;  %v5847_v32 = vld [vmem:[#allocation4 + $0x364] sm:$0xf]  ;;  %v4651_v35 = vld [vmem:[#allocation4 + $0x4f8] sm:$0xf0] }
  0x53   :  { %2487 = vmatpush.bf16.msrb.mxu1 %v4986_v23  ;;  %v4675_v23 = vld [vmem:[#allocation4 + $0x528] sm:$0xf0]  ;;  %v4294_v25 = vor.u32 %v5805_v16, %v4291_v19  ;;  %v5745_v40 = vld [vmem:[#allocation4 + $0x34] sm:$0xf]  ;;  %v5739_v53 = vld [vmem:[#allocation4 + $0x4] sm:$0xf] }
  0x54   :  { %2501 = vmatpush.bf16.msrb.mxu2 %v5178_v24  ;;  %v4102_v24 = vor.u32 %v5757_v14, %v4099_v15  ;;  %v4678_v30 = vor.u32 %v5901_v22, %v4675_v23  ;;  %v4051_v41 = vld [vmem:[#allocation4 + $0x48] sm:$0xf0]  ;;  %v5793_v42 = vld [vmem:[#allocation4 + $0x1b4] sm:$0xf]  ;;  %v5787_v57 = vld [vmem:[#allocation4 + $0x184] sm:$0xf] }
  0x55   :  { %2515 = vmatpush.bf16.msrb.mxu3 %v5370_v28  ;;  %2474 = vmatmul.bf16.vlgmr.msrb.gmra.mxu0 %v6305_v39  ;;  %v4075_v28 = vld [vmem:[#allocation4 + $0x78] sm:$0xf0]  ;;  %v4243_v46 = vld [vmem:[#allocation4 + $0x1c8] sm:$0xf0]  ;;  %v4054_v52 = vor.u32 %v5745_v40, %v4051_v41  ;;  %v5835_v60 = vld [vmem:[#allocation4 + $0x304] sm:$0xf] }
  0x56   :  { %2522 = vmatpush.bf16.msra.mxu0 %v4198_v29  ;;  %2488 = vmatmul.bf16.vlgmr.msrb.gmra.mxu1 %v6309_v44  ;;  %v5799_v29 = vld [vmem:[#allocation4 + $0x1e4] sm:$0xf]  ;;  %v4078_v36 = vor.u32 %v5751_v27, %v4075_v28  ;;  %v4627_v51 = vld [vmem:[#allocation4 + $0x4c8] sm:$0xf0]  ;;  %v4246_v55 = vor.u32 %v5793_v42, %v4243_v46  ;;  %v4219_v59 = vld [vmem:[#allocation4 + $0x198] sm:$0xf0] }
  0x57   :  { %2536 = vmatpush.bf16.msra.mxu1 %v4390_v33  ;;  %2502 = vmatmul.bf16.vlgmr.msrb.gmra.mxu2 %v6307_v43  ;;  %v4459_v33 = vld [vmem:[#allocation4 + $0x378] sm:$0xf0]  ;;  %v4270_v37 = vor.u32 %v5799_v29, %v4267_v31  ;;  %v5973_v2 = vld [vmem:[#allocation4 + $0x754] sm:$0xf]  ;;  %v4963_v3 = vld [vmem:[#allocation4 + $0x768] sm:$0xf0]  ;;  %v4222_v9 = vor.u32 %v5787_v57, %v4219_v59 }
  0x58   :  { %2550 = vmatpush.bf16.msra.mxu2 %v4582_v34  ;;  %2516 = vmatmul.bf16.vlgmr.msrb.gmra.mxu3 %v6311_v47  ;;  %v5895_v34 = vld [vmem:[#allocation4 + $0x4e4] sm:$0xf]  ;;  %v4603_v0 = vld [vmem:[#allocation4 + $0x498] sm:$0xf0]  ;;  %v5155_v6 = vld [vmem:[#allocation4 + $0x8e8] sm:$0xf0]  ;;  %v4966_v15 = vor.u32 %v5973_v2, %v4963_v3 }
  0x59   :  { %2564 = vmatpush.bf16.msra.mxu3 %v4774_v38  ;;  %v4462_v38 = vor.u32 %v5847_v32, %v4459_v33  ;;  %v4654_v45 = vor.u32 %v5895_v34, %v4651_v35  ;;  %v6069_v7 = vld [vmem:[#allocation4 + $0xa54] sm:$0xf]  ;;  %v5347_v8 = vld [vmem:[#allocation4 + $0xa68] sm:$0xf0]  ;;  %v5967_v19 = vld [vmem:[#allocation4 + $0x724] sm:$0xf] }
  0x5a   :  { %2523 = vmatpush.bf16.msra.mxu0 %v4174_v48  ;;  %v5841_v48 = vld [vmem:[#allocation4 + $0x334] sm:$0xf]  ;;  %v4939_v20 = vld [vmem:[#allocation4 + $0x738] sm:$0xf0]  ;;  %v6015_v21 = vld [vmem:[#allocation4 + $0x8a4] sm:$0xf] }
  0x5b   :  { %2537 = vmatpush.bf16.msra.mxu1 %v4366_v49  ;;  %v4435_v49 = vld [vmem:[#allocation4 + $0x348] sm:$0xf0]  ;;  %v5131_v23 = vld [vmem:[#allocation4 + $0x8b8] sm:$0xf0]  ;;  %v4942_v28 = vor.u32 %v5967_v19, %v4939_v20  ;;  %v5961_v31 = vld [vmem:[#allocation4 + $0x6f4] sm:$0xf] }
  0x5c   :  { %2551 = vmatpush.bf16.msra.mxu2 %v4558_v50  ;;  %v5889_v50 = vld [vmem:[#allocation4 + $0x4b4] sm:$0xf]  ;;  %v4438_v56 = vor.u32 %v5841_v48, %v4435_v49  ;;  %v5515_v27 = vld [vmem:[#allocation4 + $0xbb8] sm:$0xf0]  ;;  %v5134_v29 = vor.u32 %v6015_v21, %v5131_v23  ;;  %v4915_v32 = vld [vmem:[#allocation4 + $0x708] sm:$0xf0] }
  0x5d   :  { %2565 = vmatpush.bf16.msra.mxu3 %v4750_v54  ;;  %v4027_v54 = vld [vmem:[#allocation4 + $0x18] sm:$0xf0]  ;;  %v6009_v33 = vld [vmem:[#allocation4 + $0x874] sm:$0xf]  ;;  %v5107_v35 = vld [vmem:[#allocation4 + $0x888] sm:$0xf0]  ;;  %v4918_v41 = vor.u32 %v5961_v31, %v4915_v32 }
  0x5e   :  { %2524 = vmatpush.bf16.msra.mxu0 %v4150_v61  ;;  %v4630_v61 = vor.u32 %v5889_v50, %v4627_v51  ;;  %v4030_v5 = vor.u32 %v5739_v53, %v4027_v54  ;;  %v5491_v40 = vld [vmem:[#allocation4 + $0xb88] sm:$0xf0]  ;;  %v5110_v42 = vor.u32 %v6009_v33, %v5107_v35  ;;  %v5955_v46 = vld [vmem:[#allocation4 + $0x6c4] sm:$0xf]  ;;  %v4891_v48 = vld [vmem:[#allocation4 + $0x6d8] sm:$0xf0] }
  0x5f   :  { %2538 = vmatpush.bf16.msra.mxu1 %v4342_v62  ;;  %v4411_v62 = vld [vmem:[#allocation4 + $0x318] sm:$0xf0]  ;;  %v6003_v49 = vld [vmem:[#allocation4 + $0x844] sm:$0xf]  ;;  %v6045_v2 = vld [vmem:[#allocation4 + $0x994] sm:$0xf] }
  0x60   :  { %2552 = vmatpush.bf16.msra.mxu2 %v4534_v63  ;;  %v5883_v63 = vld [vmem:[#allocation4 + $0x484] sm:$0xf]  ;;  %v5083_v51 = vld [vmem:[#allocation4 + $0x858] sm:$0xf0]  ;;  %v5251_v3 = vld [vmem:[#allocation4 + $0x9a8] sm:$0xf0] }
  0x61   :  { %2566 = vmatpush.bf16.msra.mxu3 %v4726_v4  ;;  %v6021_v4 = vld [vmem:[#allocation4 + $0x8d4] sm:$0xf]  ;;  %v4606_v14 = vor.u32 %v5883_v63, %v4603_v0  ;;  %v5275_v53 = vld [vmem:[#allocation4 + $0x9d8] sm:$0xf0]  ;;  %v6099_v54 = vld [vmem:[#allocation4 + $0xb44] sm:$0xf]  ;;  %v5086_v57 = vor.u32 %v6003_v49, %v5083_v51 }
  0x62   :  { %2525 = vmatpush.bf16.msra.mxu0 %v4126_v11  ;;  %v4414_v11 = vor.u32 %v5835_v60, %v4411_v62  ;;  %v5158_v16 = vor.u32 %v6021_v4, %v5155_v6  ;;  %v5949_v60 = vld [vmem:[#allocation4 + $0x694] sm:$0xf]  ;;  %v5059_v0 = vld [vmem:[#allocation4 + $0x828] sm:$0xf0]  ;;  %v5419_v19 = vld [vmem:[#allocation4 + $0xaf8] sm:$0xf0] }
  0x63   :  { %2539 = vmatpush.bf16.msra.mxu1 %v4318_v12  ;;  %v6117_v12 = vld [vmem:[#allocation4 + $0xbd4] sm:$0xf]  ;;  %v5395_v31 = vld [vmem:[#allocation4 + $0xac8] sm:$0xf0]  ;;  %v5931_v33 = vld [vmem:[#allocation4 + $0x604] sm:$0xf] }
  0x64   :  { %2553 = vmatpush.bf16.msra.mxu2 %v4510_v13  ;;  %v5539_v13 = vld [vmem:[#allocation4 + $0xbe8] sm:$0xf0]  ;;  %v5997_v62 = vld [vmem:[#allocation4 + $0x814] sm:$0xf]  ;;  %v5785_v49 = vld [vmem:[#allocation4 + $0x16c] sm:$0xf0] }
  0x65   :  { %2567 = vmatpush.bf16.msra.mxu3 %v4702_v18  ;;  %v5350_v18 = vor.u32 %v6069_v7, %v5347_v8  ;;  %v5542_v22 = vor.u32 %v6117_v12, %v5539_v13  ;;  %v6093_v4 = vld [vmem:[#allocation4 + $0xb14] sm:$0xf]  ;;  %v5062_v7 = vor.u32 %v5997_v62, %v5059_v0  ;;  %v5254_v8 = vor.u32 %v6045_v2, %v5251_v3  ;;  %v5991_v12 = vld [vmem:[#allocation4 + $0x7e4] sm:$0xf]  ;;  %v4177_v0 = vld [vmem:[#allocation4 + $0x128] sm:$0xf] }
  0x66   :  { %2526 = vmatpush.bf16.msra.mxu0 %v4102_v24  ;;  %v6063_v24 = vld [vmem:[#allocation4 + $0xa24] sm:$0xf]  ;;  %v5937_v23 = vld [vmem:[#allocation4 + $0x634] sm:$0xf]  ;;  %v5779_v2 = vld [vmem:[#allocation4 + $0x13c] sm:$0xf0] }
  0x67   :  { %2540 = vmatpush.bf16.msra.mxu1 %v4294_v25  ;;  %v5323_v25 = vld [vmem:[#allocation4 + $0xa38] sm:$0xf0]  ;;  %v4369_v3 = vld [vmem:[#allocation4 + $0x2a8] sm:$0xf] }
  0x68   :  { %2554 = vmatpush.bf16.msra.mxu2 %v4486_v26  ;;  %v6111_v26 = vld [vmem:[#allocation4 + $0xba4] sm:$0xf] }
  0x69   :  { %2568 = vmatpush.bf16.msra.mxu3 %v4678_v30  ;;  %v5326_v30 = vor.u32 %v6063_v24, %v5323_v25  ;;  %v5518_v34 = vor.u32 %v6111_v26, %v5515_v27  ;;  %v4819_v24 = vld [vmem:[#allocation4 + $0x648] sm:$0xf0]  ;;  %v5985_v25 = vld [vmem:[#allocation4 + $0x7b4] sm:$0xf] }
  0x6a   :  { %2527 = vmatpush.bf16.msra.mxu0 %v4078_v36  ;;  %v6057_v36 = vld [vmem:[#allocation4 + $0x9f4] sm:$0xf]  ;;  %v5011_v27 = vld [vmem:[#allocation4 + $0x7c8] sm:$0xf0]  ;;  %v4822_v32 = vor.u32 %v5937_v23, %v4819_v24  ;;  %v5917_v23 = vld [vmem:[#allocation4 + $0x58c] sm:$0xf0] }
  0x6b   :  { %2541 = vmatpush.bf16.msra.mxu1 %v4270_v37  ;;  %v5299_v37 = vld [vmem:[#allocation4 + $0xa08] sm:$0xf0]  ;;  %v5014_v35 = vor.u32 %v5985_v25, %v5011_v27  ;;  %v4129_v27 = vld [vmem:[#allocation4 + $0xc8] sm:$0xf] }
  0x6c   :  { %2555 = vmatpush.bf16.msra.mxu2 %v4462_v38  ;;  %v6105_v38 = vld [vmem:[#allocation4 + $0xb74] sm:$0xf] }
  0x6d   :  { %2569 = vmatpush.bf16.msra.mxu3 %v4654_v45  ;;  %v5302_v45 = vor.u32 %v6057_v36, %v5299_v37  ;;  %v5494_v50 = vor.u32 %v6105_v38, %v5491_v40  ;;  %v5979_v37 = vld [vmem:[#allocation4 + $0x784] sm:$0xf]  ;;  %v4987_v38 = vld [vmem:[#allocation4 + $0x798] sm:$0xf0] }
  0x6e   :  { %2528 = vmatpush.bf16.msra.mxu0 %v4054_v52  ;;  %v6051_v52 = vld [vmem:[#allocation4 + $0x9c4] sm:$0xf] }
  0x6f   :  { %2542 = vmatpush.bf16.msra.mxu1 %v4246_v55  ;;  %v5467_v55 = vld [vmem:[#allocation4 + $0xb58] sm:$0xf0]  ;;  %v5278_v59 = vor.u32 %v6051_v52, %v5275_v53  ;;  %v6027_v40 = vld [vmem:[#allocation4 + $0x904] sm:$0xf]  ;;  %v5833_v52 = vld [vmem:[#allocation4 + $0x2ec] sm:$0xf0] }
  0x70   :  { %2556 = vmatpush.bf16.msra.mxu2 %v4438_v56  ;;  %v4894_v56 = vor.u32 %v5955_v46, %v4891_v48  ;;  %v5470_v63 = vor.u32 %v6099_v54, %v5467_v55  ;;  %v5371_v46 = vld [vmem:[#allocation4 + $0xa98] sm:$0xf0]  ;;  %v4201_v48 = vld [vmem:[#allocation4 + $0x158] sm:$0xf]  ;;  %v5881_v54 = vld [vmem:[#allocation4 + $0x46c] sm:$0xf0]  ;;  %v4990_v55 = vor.u32 %v5979_v37, %v4987_v38 }
  0x71   :  { %2570 = vmatpush.bf16.msra.mxu3 %v4630_v61  ;;  %v4867_v61 = vld [vmem:[#allocation4 + $0x6a8] sm:$0xf0]  ;;  %v4585_v53 = vld [vmem:[#allocation4 + $0x458] sm:$0xf] }
  0x72   :  { %2529 = vmatpush.bf16.msra.mxu0 %v4030_v5  ;;  %v5443_v5 = vld [vmem:[#allocation4 + $0xb28] sm:$0xf0]  ;;  %v4870_v6 = vor.u32 %v5949_v60, %v4867_v61  ;;  %v4202_v61 = vor.u32 %v5785_v49, %v4201_v48  ;;  %v4489_v48 = vld [vmem:[#allocation4 + $0x398] sm:$0xf]  ;;  %v5857_v49 = vld [vmem:[#allocation4 + $0x3ac] sm:$0xf0] }
  0x73   :  { %2543 = vmatpush.bf16.msra.mxu1 %v4222_v9  ;;  %v5943_v9 = vld [vmem:[#allocation4 + $0x664] sm:$0xf]  ;;  %v5446_v13 = vor.u32 %v6093_v4, %v5443_v5  ;;  %v5827_v5 = vld [vmem:[#allocation4 + $0x2bc] sm:$0xf0] }
  0x74   :  { %2557 = vmatpush.bf16.msra.mxu2 %v4414_v11  ;;  %v4843_v11 = vld [vmem:[#allocation4 + $0x678] sm:$0xf0] }
  0x75   :  { %2571 = vmatpush.bf16.msra.mxu3 %v4606_v14  ;;  %2530 = vmatmul.bf16.vlgmr.msra.gmra.mxu0 %v6293_v58  ;;  %v5035_v14 = vld [vmem:[#allocation4 + $0x7f8] sm:$0xf0]  ;;  %v4846_v20 = vor.u32 %v5943_v9, %v4843_v11  ;;  %v5923_v9 = vld [vmem:[#allocation4 + $0x5bc] sm:$0xf0]  ;;  %v4178_v11 = vor.u32 %v5779_v2, %v4177_v0 }
  0x76   :  { %2578 = vmatpush.bf16.msrb.mxu0 %v4966_v15  ;;  %2544 = vmatmul.bf16.vlgmr.msra.gmra.mxu1 %v6299_v10  ;;  %v6039_v15 = vld [vmem:[#allocation4 + $0x964] sm:$0xf]  ;;  %v5038_v21 = vor.u32 %v5991_v12, %v5035_v14  ;;  %v4370_v12 = vor.u32 %v5827_v5, %v4369_v3  ;;  %v4153_v14 = vld [vmem:[#allocation4 + $0xf8] sm:$0xf]  ;;  %v5899_v0 = vld [vmem:[#allocation4 + $0x4fc] sm:$0xf0] }
  0x77   :  { %2592 = vmatpush.bf16.msrb.mxu1 %v5158_v16  ;;  %2558 = vmatmul.bf16.vlgmr.msra.gmra.mxu2 %v6295_v1  ;;  %v5227_v16 = vld [vmem:[#allocation4 + $0x978] sm:$0xf0]  ;;  %v4057_v5 = vld [vmem:[#allocation4 + $0x38] sm:$0xf] }
  0x78   :  { %2606 = vmatpush.bf16.msrb.mxu2 %v5350_v18  ;;  %2572 = vmatmul.bf16.vlgmr.msra.gmra.mxu3 %v6301_v17  ;;  %v6087_v18 = vld [vmem:[#allocation4 + $0xae4] sm:$0xf] }
  0x79   :  { %2620 = vmatpush.bf16.msrb.mxu3 %v5542_v22  ;;  %v5230_v22 = vor.u32 %v6039_v15, %v5227_v16  ;;  %v5422_v26 = vor.u32 %v6087_v18, %v5419_v19  ;;  %v5773_v15 = vld [vmem:[#allocation4 + $0x10c] sm:$0xf0]  ;;  %v4345_v16 = vld [vmem:[#allocation4 + $0x278] sm:$0xf] }
  0x7a   :  { %2579 = vmatpush.bf16.msrb.mxu0 %v4942_v28  ;;  %v6033_v28 = vld [vmem:[#allocation4 + $0x934] sm:$0xf]  ;;  %v5821_v19 = vld [vmem:[#allocation4 + $0x28c] sm:$0xf0]  ;;  %v4154_v24 = vor.u32 %v5773_v15, %v4153_v14 }
  0x7b   :  { %2593 = vmatpush.bf16.msrb.mxu1 %v5134_v29  ;;  %v5203_v29 = vld [vmem:[#allocation4 + $0x948] sm:$0xf0]  ;;  %v4346_v25 = vor.u32 %v5821_v19, %v4345_v16  ;;  %v5893_v14 = vld [vmem:[#allocation4 + $0x4cc] sm:$0xf0]  ;;  %v4033_v16 = vld [vmem:[#allocation4 + $0x8] sm:$0xf] }
  0x7c   :  { %2607 = vmatpush.bf16.msrb.mxu2 %v5326_v30  ;;  %v6081_v30 = vld [vmem:[#allocation4 + $0xab4] sm:$0xf]  ;;  %v5206_v36 = vor.u32 %v6033_v28, %v5203_v29  ;;  %v5767_v28 = vld [vmem:[#allocation4 + $0xdc] sm:$0xf0]  ;;  %v4321_v29 = vld [vmem:[#allocation4 + $0x248] sm:$0xf] }
  0x7d   :  { %2621 = vmatpush.bf16.msrb.mxu3 %v5518_v34  ;;  %v4795_v34 = vld [vmem:[#allocation4 + $0x618] sm:$0xf0] }
  0x7e   :  { %2580 = vmatpush.bf16.msrb.mxu0 %v4918_v41  ;;  %v5398_v41 = vor.u32 %v6081_v30, %v5395_v31  ;;  %v4798_v51 = vor.u32 %v5931_v33, %v4795_v34  ;;  %v5815_v31 = vld [vmem:[#allocation4 + $0x25c] sm:$0xf0]  ;;  %v4705_v34 = vld [vmem:[#allocation4 + $0x548] sm:$0xf] }
  0x7f   :  { %2594 = vmatpush.bf16.msrb.mxu1 %v5110_v42  ;;  %v5179_v42 = vld [vmem:[#allocation4 + $0x918] sm:$0xf0]  ;;  %v5863_v33 = vld [vmem:[#allocation4 + $0x3dc] sm:$0xf0]  ;;  %v4322_v37 = vor.u32 %v5815_v31, %v4321_v29  ;;  %v5977_v29 = vld [vmem:[#allocation4 + $0x76c] sm:$0xf0] }
  0x80   :  { %2608 = vmatpush.bf16.msrb.mxu2 %v5302_v45  ;;  %v6075_v45 = vld [vmem:[#allocation4 + $0xa84] sm:$0xf] }
  0x81   :  { %2622 = vmatpush.bf16.msrb.mxu3 %v5494_v50  ;;  %v4393_v50 = vld [vmem:[#allocation4 + $0x2d8] sm:$0xf]  ;;  %v5374_v60 = vor.u32 %v6075_v45, %v5371_v46  ;;  %v5809_v46 = vld [vmem:[#allocation4 + $0x22c] sm:$0xf0] }
  0x82   :  { %2581 = vmatpush.bf16.msrb.mxu0 %v4894_v56  ;;  %v5182_v56 = vor.u32 %v6027_v40, %v5179_v42  ;;  %v4394_v62 = vor.u32 %v5833_v52, %v4393_v50  ;;  %v4105_v40 = vld [vmem:[#allocation4 + $0x98] sm:$0xf] }
  0x83   :  { %2595 = vmatpush.bf16.msrb.mxu1 %v5086_v57  ;;  %v4777_v57 = vld [vmem:[#allocation4 + $0x5d8] sm:$0xf] }
  0x84   :  { %2609 = vmatpush.bf16.msrb.mxu2 %v5278_v59  ;;  %v5929_v59 = vld [vmem:[#allocation4 + $0x5ec] sm:$0xf0]  ;;  %v4297_v42 = vld [vmem:[#allocation4 + $0x218] sm:$0xf] }
  0x85   :  { %2623 = vmatpush.bf16.msrb.mxu3 %v5470_v63  ;;  %v4586_v63 = vor.u32 %v5881_v54, %v4585_v53  ;;  %v4778_v4 = vor.u32 %v5929_v59, %v4777_v57  ;;  %v4681_v50 = vld [vmem:[#allocation4 + $0x518] sm:$0xf]  ;;  %v4298_v53 = vor.u32 %v5809_v46, %v4297_v42  ;;  %v4490_v54 = vor.u32 %v5857_v49, %v4489_v48  ;;  %v4273_v57 = vld [vmem:[#allocation4 + $0x1e8] sm:$0xf]  ;;  %v5971_v48 = vld [vmem:[#allocation4 + $0x73c] sm:$0xf0] }
  0x86   :  { %2582 = vmatpush.bf16.msrb.mxu0 %v4870_v6  ;;  %v4561_v6 = vld [vmem:[#allocation4 + $0x428] sm:$0xf] }
  0x87   :  { %2596 = vmatpush.bf16.msrb.mxu1 %v5062_v7  ;;  %v5875_v7 = vld [vmem:[#allocation4 + $0x43c] sm:$0xf0]  ;;  %v4945_v46 = vld [vmem:[#allocation4 + $0x728] sm:$0xf] }
  0x88   :  { %2610 = vmatpush.bf16.msrb.mxu2 %v5254_v8  ;;  %v4753_v8 = vld [vmem:[#allocation4 + $0x5a8] sm:$0xf] }
  0x89   :  { %2624 = vmatpush.bf16.msrb.mxu3 %v5446_v13  ;;  %v4562_v13 = vor.u32 %v5875_v7, %v4561_v6  ;;  %v4754_v18 = vor.u32 %v5923_v9, %v4753_v8  ;;  %v5749_v6 = vld [vmem:[#allocation4 + $0x4c] sm:$0xf0]  ;;  %v4249_v7 = vld [vmem:[#allocation4 + $0x1b8] sm:$0xf]  ;;  %v5137_v49 = vld [vmem:[#allocation4 + $0x8a8] sm:$0xf] }
  0x8a   :  { %2583 = vmatpush.bf16.msrb.mxu0 %v4846_v20  ;;  %v4537_v20 = vld [vmem:[#allocation4 + $0x3f8] sm:$0xf]  ;;  %v5797_v9 = vld [vmem:[#allocation4 + $0x1cc] sm:$0xf0]  ;;  %v4058_v15 = vor.u32 %v5749_v6, %v4057_v5 }
  0x8b   :  { %2597 = vmatpush.bf16.msrb.mxu1 %v5038_v21  ;;  %v5869_v21 = vld [vmem:[#allocation4 + $0x40c] sm:$0xf0]  ;;  %v4250_v19 = vor.u32 %v5797_v9, %v4249_v7  ;;  %v4897_v9 = vld [vmem:[#allocation4 + $0x6c8] sm:$0xf] }
  0x8c   :  { %2611 = vmatpush.bf16.msrb.mxu2 %v5230_v22  ;;  %v4729_v22 = vld [vmem:[#allocation4 + $0x578] sm:$0xf]  ;;  %v6109_v5 = vld [vmem:[#allocation4 + $0xb8c] sm:$0xf0] }
  0x8d   :  { %2625 = vmatpush.bf16.msrb.mxu3 %v5422_v26  ;;  %v4538_v26 = vor.u32 %v5869_v21, %v4537_v20  ;;  %v4730_v30 = vor.u32 %v5917_v23, %v4729_v22  ;;  %v4225_v21 = vld [vmem:[#allocation4 + $0x188] sm:$0xf]  ;;  %v5791_v22 = vld [vmem:[#allocation4 + $0x19c] sm:$0xf0] }
  0x8e   :  { %2584 = vmatpush.bf16.msrb.mxu0 %v4822_v32  ;;  %v4513_v32 = vld [vmem:[#allocation4 + $0x3c8] sm:$0xf] }
  0x8f   :  { %2598 = vmatpush.bf16.msrb.mxu1 %v5014_v35  ;;  %v5911_v35 = vld [vmem:[#allocation4 + $0x55c] sm:$0xf0]  ;;  %v4514_v38 = vor.u32 %v5863_v33, %v4513_v32  ;;  %v4417_v23 = vld [vmem:[#allocation4 + $0x308] sm:$0xf]  ;;  %v6025_v32 = vld [vmem:[#allocation4 + $0x8ec] sm:$0xf0] }
  0x90   :  { %2612 = vmatpush.bf16.msrb.mxu2 %v5206_v36  ;;  %v4130_v36 = vor.u32 %v5767_v28, %v4129_v27  ;;  %v4706_v45 = vor.u32 %v5911_v35, %v4705_v34  ;;  %v5887_v27 = vld [vmem:[#allocation4 + $0x49c] sm:$0xf0]  ;;  %v4969_v28 = vld [vmem:[#allocation4 + $0x758] sm:$0xf]  ;;  %v6073_v34 = vld [vmem:[#allocation4 + $0xa6c] sm:$0xf0]  ;;  %v4226_v35 = vor.u32 %v5791_v22, %v4225_v21 }
  0x91   :  { %2626 = vmatpush.bf16.msrb.mxu3 %v5398_v41  ;;  %v5761_v41 = vld [vmem:[#allocation4 + $0xac] sm:$0xf0]  ;;  %v5353_v33 = vld [vmem:[#allocation4 + $0xa58] sm:$0xf] }
  0x92   :  { %2585 = vmatpush.bf16.msrb.mxu0 %v4798_v51  ;;  %v5905_v51 = vld [vmem:[#allocation4 + $0x52c] sm:$0xf0]  ;;  %v4106_v52 = vor.u32 %v5761_v41, %v4105_v40  ;;  %v4970_v41 = vor.u32 %v5977_v29, %v4969_v28  ;;  %v5257_v28 = vld [vmem:[#allocation4 + $0x998] sm:$0xf] }
  0x93   :  { %2599 = vmatpush.bf16.msrb.mxu1 %v4990_v55  ;;  %v4081_v55 = vld [vmem:[#allocation4 + $0x68] sm:$0xf]  ;;  %v4682_v59 = vor.u32 %v5905_v51, %v4681_v50  ;;  %v6019_v51 = vld [vmem:[#allocation4 + $0x8bc] sm:$0xf0]  ;;  %v6049_v29 = vld [vmem:[#allocation4 + $0x9ac] sm:$0xf0] }
  0x94   :  { %2613 = vmatpush.bf16.msrb.mxu2 %v5182_v56  ;;  %v5755_v56 = vld [vmem:[#allocation4 + $0x7c] sm:$0xf0] }
  0x95   :  { %2627 = vmatpush.bf16.msrb.mxu3 %v5374_v60  ;;  %2586 = vmatmul.bf16.vlgmr.msrb.gmra.mxu0 %v6305_v39  ;;  %v5803_v60 = vld [vmem:[#allocation4 + $0x1fc] sm:$0xf0]  ;;  %v4082_v2 = vor.u32 %v5755_v56, %v4081_v55  ;;  %v4946_v56 = vor.u32 %v5971_v48, %v4945_v46 }
  0x96   :  { %2634 = vmatpush.bf16.msra.mxu0 %v4202_v61  ;;  %2600 = vmatmul.bf16.vlgmr.msrb.gmra.mxu1 %v6309_v44  ;;  %v4465_v61 = vld [vmem:[#allocation4 + $0x368] sm:$0xf]  ;;  %v4274_v3 = vor.u32 %v5803_v60, %v4273_v57  ;;  %v6115_v55 = vld [vmem:[#allocation4 + $0xbbc] sm:$0xf0]  ;;  %v5138_v57 = vor.u32 %v6019_v51, %v5137_v49  ;;  %v4921_v60 = vld [vmem:[#allocation4 + $0x6f8] sm:$0xf] }
  0x97   :  { %2648 = vmatpush.bf16.msra.mxu1 %v4394_v62  ;;  %2614 = vmatmul.bf16.vlgmr.msrb.gmra.mxu2 %v6307_v43  ;;  %v5851_v62 = vld [vmem:[#allocation4 + $0x37c] sm:$0xf0]  ;;  %v4825_v51 = vld [vmem:[#allocation4 + $0x638] sm:$0xf] }
  0x98   :  { %2662 = vmatpush.bf16.msra.mxu2 %v4586_v63  ;;  %2628 = vmatmul.bf16.vlgmr.msrb.gmra.mxu3 %v6311_v47  ;;  %v4657_v63 = vld [vmem:[#allocation4 + $0x4e8] sm:$0xf]  ;;  %v6091_v46 = vld [vmem:[#allocation4 + $0xafc] sm:$0xf0] }
  0x99   :  { %2676 = vmatpush.bf16.msra.mxu3 %v4778_v4  ;;  %v4466_v4 = vor.u32 %v5851_v62, %v4465_v61  ;;  %v4658_v8 = vor.u32 %v5899_v0, %v4657_v63  ;;  %v5965_v61 = vld [vmem:[#allocation4 + $0x70c] sm:$0xf0]  ;;  %v5113_v62 = vld [vmem:[#allocation4 + $0x878] sm:$0xf] }
  0x9a   :  { %2635 = vmatpush.bf16.msra.mxu0 %v4178_v11  ;;  %v4441_v11 = vld [vmem:[#allocation4 + $0x338] sm:$0xf]  ;;  %v6013_v0 = vld [vmem:[#allocation4 + $0x88c] sm:$0xf0]  ;;  %v4922_v6 = vor.u32 %v5965_v61, %v4921_v60 }
  0x9b   :  { %2649 = vmatpush.bf16.msra.mxu1 %v4370_v12  ;;  %v5845_v12 = vld [vmem:[#allocation4 + $0x34c] sm:$0xf0]  ;;  %v5114_v7 = vor.u32 %v6013_v0, %v5113_v62  ;;  %v4801_v62 = vld [vmem:[#allocation4 + $0x608] sm:$0xf] }
  0x9c   :  { %2663 = vmatpush.bf16.msra.mxu2 %v4562_v13  ;;  %v4633_v13 = vld [vmem:[#allocation4 + $0x4b8] sm:$0xf]  ;;  %v4442_v20 = vor.u32 %v5845_v12, %v4441_v11  ;;  %v5959_v11 = vld [vmem:[#allocation4 + $0x6dc] sm:$0xf0]  ;;  %v5089_v12 = vld [vmem:[#allocation4 + $0x848] sm:$0xf] }
  0x9d   :  { %2677 = vmatpush.bf16.msra.mxu3 %v4754_v18  ;;  %v5743_v18 = vld [vmem:[#allocation4 + $0x1c] sm:$0xf0]  ;;  %v6085_v60 = vld [vmem:[#allocation4 + $0xacc] sm:$0xf0] }
  0x9e   :  { %2636 = vmatpush.bf16.msra.mxu0 %v4154_v24  ;;  %v4634_v24 = vor.u32 %v5893_v14, %v4633_v13  ;;  %v4034_v31 = vor.u32 %v5743_v18, %v4033_v16  ;;  %v6007_v14 = vld [vmem:[#allocation4 + $0x85c] sm:$0xf0]  ;;  %v5473_v18 = vld [vmem:[#allocation4 + $0xb48] sm:$0xf] }
  0x9f   :  { %2650 = vmatpush.bf16.msra.mxu1 %v4346_v25  ;;  %v5839_v25 = vld [vmem:[#allocation4 + $0x31c] sm:$0xf0]  ;;  %v5090_v21 = vor.u32 %v6007_v14, %v5089_v12  ;;  %v4203_v12 = vld [vmem:[#allocation4 + $0x170] sm:$0xf0] }
  0xa0   :  { %2664 = vmatpush.bf16.msra.mxu2 %v4538_v26  ;;  %v4609_v26 = vld [vmem:[#allocation4 + $0x488] sm:$0xf]  ;;  %v6055_v16 = vld [vmem:[#allocation4 + $0x9dc] sm:$0xf0] }
  0xa1   :  { %2678 = vmatpush.bf16.msra.mxu3 %v4730_v30  ;;  %v5161_v30 = vld [vmem:[#allocation4 + $0x8d8] sm:$0xf]  ;;  %v4610_v40 = vor.u32 %v5887_v27, %v4609_v26  ;;  %v6001_v27 = vld [vmem:[#allocation4 + $0x82c] sm:$0xf0] }
  0xa2   :  { %2637 = vmatpush.bf16.msra.mxu0 %v4130_v36  ;;  %v4418_v36 = vor.u32 %v5839_v25, %v4417_v23  ;;  %v5162_v42 = vor.u32 %v6025_v32, %v5161_v30  ;;  %v4873_v23 = vld [vmem:[#allocation4 + $0x698] sm:$0xf] }
  0xa3   :  { %2651 = vmatpush.bf16.msra.mxu1 %v4322_v37  ;;  %v5545_v37 = vld [vmem:[#allocation4 + $0xbd8] sm:$0xf] }
  0xa4   :  { %2665 = vmatpush.bf16.msra.mxu2 %v4514_v38  ;;  %v6121_v38 = vld [vmem:[#allocation4 + $0xbec] sm:$0xf0]  ;;  %v5065_v25 = vld [vmem:[#allocation4 + $0x818] sm:$0xf] }
  0xa5   :  { %2679 = vmatpush.bf16.msra.mxu3 %v4706_v45  ;;  %v5354_v45 = vor.u32 %v6073_v34, %v5353_v33  ;;  %v5546_v50 = vor.u32 %v6121_v38, %v5545_v37  ;;  %v5449_v30 = vld [vmem:[#allocation4 + $0xb18] sm:$0xf]  ;;  %v5066_v33 = vor.u32 %v6001_v27, %v5065_v25  ;;  %v5258_v34 = vor.u32 %v6049_v29, %v5257_v28  ;;  %v5041_v37 = vld [vmem:[#allocation4 + $0x7e8] sm:$0xf]  ;;  %v5776_v27 = vld [vmem:[#allocation4 + $0x12c] sm:$0xf] }
  0xa6   :  { %2638 = vmatpush.bf16.msra.mxu0 %v4106_v52  ;;  %v5329_v52 = vld [vmem:[#allocation4 + $0xa28] sm:$0xf]  ;;  %v4179_v28 = vld [vmem:[#allocation4 + $0x140] sm:$0xf0]  ;;  %v5824_v29 = vld [vmem:[#allocation4 + $0x2ac] sm:$0xf] }
  0xa7   :  { %2652 = vmatpush.bf16.msra.mxu1 %v4298_v53  ;;  %v6067_v53 = vld [vmem:[#allocation4 + $0xa3c] sm:$0xf0] }
  0xa8   :  { %2666 = vmatpush.bf16.msra.mxu2 %v4490_v54  ;;  %v5521_v54 = vld [vmem:[#allocation4 + $0xba8] sm:$0xf] }
  0xa9   :  { %2680 = vmatpush.bf16.msra.mxu3 %v4682_v59  ;;  %v5330_v59 = vor.u32 %v6067_v53, %v5329_v52  ;;  %v5522_v63 = vor.u32 %v6115_v55, %v5521_v54  ;;  %v5941_v52 = vld [vmem:[#allocation4 + $0x64c] sm:$0xf0]  ;;  %v5017_v53 = vld [vmem:[#allocation4 + $0x7b8] sm:$0xf] }
  0xaa   :  { %2639 = vmatpush.bf16.msra.mxu0 %v4082_v2  ;;  %v5305_v2 = vld [vmem:[#allocation4 + $0x9f8] sm:$0xf]  ;;  %v5989_v55 = vld [vmem:[#allocation4 + $0x7cc] sm:$0xf0]  ;;  %v4826_v61 = vor.u32 %v5941_v52, %v4825_v51  ;;  %v4731_v51 = vld [vmem:[#allocation4 + $0x590] sm:$0xf0] }
  0xab   :  { %2653 = vmatpush.bf16.msra.mxu1 %v4274_v3  ;;  %v6061_v3 = vld [vmem:[#allocation4 + $0xa0c] sm:$0xf0]  ;;  %v5018_v0 = vor.u32 %v5989_v55, %v5017_v53  ;;  %v5764_v55 = vld [vmem:[#allocation4 + $0xcc] sm:$0xf] }
  0xac   :  { %2667 = vmatpush.bf16.msra.mxu2 %v4466_v4  ;;  %v5497_v4 = vld [vmem:[#allocation4 + $0xb78] sm:$0xf] }
  0xad   :  { %2681 = vmatpush.bf16.msra.mxu3 %v4658_v8  ;;  %v5306_v8 = vor.u32 %v6061_v3, %v5305_v2  ;;  %v5498_v13 = vor.u32 %v6109_v5, %v5497_v4  ;;  %v4993_v3 = vld [vmem:[#allocation4 + $0x788] sm:$0xf]  ;;  %v5983_v4 = vld [vmem:[#allocation4 + $0x79c] sm:$0xf0] }
  0xae   :  { %2640 = vmatpush.bf16.msra.mxu0 %v4058_v15  ;;  %v5281_v15 = vld [vmem:[#allocation4 + $0x9c8] sm:$0xf] }
  0xaf   :  { %2654 = vmatpush.bf16.msra.mxu1 %v4250_v19  ;;  %v6103_v19 = vld [vmem:[#allocation4 + $0xb5c] sm:$0xf0]  ;;  %v5282_v22 = vor.u32 %v6055_v16, %v5281_v15  ;;  %v5185_v5 = vld [vmem:[#allocation4 + $0x908] sm:$0xf]  ;;  %v4395_v15 = vld [vmem:[#allocation4 + $0x2f0] sm:$0xf0] }
  0xb0   :  { %2668 = vmatpush.bf16.msra.mxu2 %v4442_v20  ;;  %v4898_v20 = vor.u32 %v5959_v11, %v4897_v9  ;;  %v5474_v26 = vor.u32 %v6103_v19, %v5473_v18  ;;  %v6079_v9 = vld [vmem:[#allocation4 + $0xa9c] sm:$0xf0]  ;;  %v5782_v11 = vld [vmem:[#allocation4 + $0x15c] sm:$0xf]  ;;  %v4587_v18 = vld [vmem:[#allocation4 + $0x470] sm:$0xf0]  ;;  %v4994_v19 = vor.u32 %v5983_v4, %v4993_v3 }
  0xb1   :  { %2682 = vmatpush.bf16.msra.mxu3 %v4634_v24  ;;  %v5953_v24 = vld [vmem:[#allocation4 + $0x6ac] sm:$0xf0]  ;;  %v5878_v16 = vld [vmem:[#allocation4 + $0x45c] sm:$0xf] }
  0xb2   :  { %2641 = vmatpush.bf16.msra.mxu0 %v4034_v31  ;;  %v6097_v31 = vld [vmem:[#allocation4 + $0xb2c] sm:$0xf0]  ;;  %v4874_v32 = vor.u32 %v5953_v24, %v4873_v23  ;;  %v4206_v24 = vor.u32 %v5782_v11, %v4203_v12  ;;  %v5854_v11 = vld [vmem:[#allocation4 + $0x39c] sm:$0xf]  ;;  %v4491_v12 = vld [vmem:[#allocation4 + $0x3b0] sm:$0xf0] }
  0xb3   :  { %2655 = vmatpush.bf16.msra.mxu1 %v4226_v35  ;;  %v4849_v35 = vld [vmem:[#allocation4 + $0x668] sm:$0xf]  ;;  %v5450_v38 = vor.u32 %v6097_v31, %v5449_v30  ;;  %v4371_v31 = vld [vmem:[#allocation4 + $0x2c0] sm:$0xf0] }
  0xb4   :  { %2669 = vmatpush.bf16.msra.mxu2 %v4418_v36  ;;  %v5947_v36 = vld [vmem:[#allocation4 + $0x67c] sm:$0xf0] }
  0xb5   :  { %2683 = vmatpush.bf16.msra.mxu3 %v4610_v40  ;;  %2642 = vmatmul.bf16.vlgmr.msra.gmra.mxu0 %v6293_v58  ;;  %v5995_v40 = vld [vmem:[#allocation4 + $0x7fc] sm:$0xf0]  ;;  %v4850_v48 = vor.u32 %v5947_v36, %v4849_v35  ;;  %v4755_v35 = vld [vmem:[#allocation4 + $0x5c0] sm:$0xf0]  ;;  %v4182_v36 = vor.u32 %v5776_v27, %v4179_v28 }
  0xb6   :  { %2690 = vmatpush.bf16.msrb.mxu0 %v4970_v41  ;;  %2656 = vmatmul.bf16.vlgmr.msra.gmra.mxu1 %v6299_v10  ;;  %v5233_v41 = vld [vmem:[#allocation4 + $0x968] sm:$0xf]  ;;  %v5042_v49 = vor.u32 %v5995_v40, %v5041_v37  ;;  %v4374_v37 = vor.u32 %v5824_v29, %v4371_v31  ;;  %v5770_v40 = vld [vmem:[#allocation4 + $0xfc] sm:$0xf]  ;;  %v4659_v27 = vld [vmem:[#allocation4 + $0x500] sm:$0xf0] }
  0xb7   :  { %2704 = vmatpush.bf16.msrb.mxu1 %v5162_v42  ;;  %2670 = vmatmul.bf16.vlgmr.msra.gmra.mxu2 %v6295_v1  ;;  %v6043_v42 = vld [vmem:[#allocation4 + $0x97c] sm:$0xf0]  ;;  %v5746_v31 = vld [vmem:[#allocation4 + $0x3c] sm:$0xf] }
  0xb8   :  { %2718 = vmatpush.bf16.msrb.mxu2 %v5354_v45  ;;  %2684 = vmatmul.bf16.vlgmr.msra.gmra.mxu3 %v6301_v17  ;;  %v5425_v45 = vld [vmem:[#allocation4 + $0xae8] sm:$0xf] }
  0xb9   :  { %2732 = vmatpush.bf16.msrb.mxu3 %v5546_v50  ;;  %v5234_v50 = vor.u32 %v6043_v42, %v5233_v41  ;;  %v5426_v54 = vor.u32 %v6091_v46, %v5425_v45  ;;  %v4155_v41 = vld [vmem:[#allocation4 + $0x110] sm:$0xf0]  ;;  %v5818_v42 = vld [vmem:[#allocation4 + $0x27c] sm:$0xf] }
  0xba   :  { %2691 = vmatpush.bf16.msrb.mxu0 %v4946_v56  ;;  %v5209_v56 = vld [vmem:[#allocation4 + $0x938] sm:$0xf]  ;;  %v4347_v46 = vld [vmem:[#allocation4 + $0x290] sm:$0xf0]  ;;  %v4158_v52 = vor.u32 %v5770_v40, %v4155_v41 }
  0xbb   :  { %2705 = vmatpush.bf16.msrb.mxu1 %v5138_v57  ;;  %v6037_v57 = vld [vmem:[#allocation4 + $0x94c] sm:$0xf0]  ;;  %v4350_v53 = vor.u32 %v5818_v42, %v4347_v46  ;;  %v4635_v40 = vld [vmem:[#allocation4 + $0x4d0] sm:$0xf0]  ;;  %v5740_v42 = vld [vmem:[#allocation4 + $0xc] sm:$0xf] }
  0xbc   :  { %2719 = vmatpush.bf16.msrb.mxu2 %v5330_v59  ;;  %v5401_v59 = vld [vmem:[#allocation4 + $0xab8] sm:$0xf]  ;;  %v5210_v2 = vor.u32 %v6037_v57, %v5209_v56  ;;  %v4131_v56 = vld [vmem:[#allocation4 + $0xe0] sm:$0xf0]  ;;  %v5812_v57 = vld [vmem:[#allocation4 + $0x24c] sm:$0xf] }
  0xbd   :  { %2733 = vmatpush.bf16.msrb.mxu3 %v5522_v63  ;;  %v5935_v63 = vld [vmem:[#allocation4 + $0x61c] sm:$0xf0] }
  0xbe   :  { %2692 = vmatpush.bf16.msrb.mxu0 %v4922_v6  ;;  %v5402_v6 = vor.u32 %v6085_v60, %v5401_v59  ;;  %v4802_v14 = vor.u32 %v5935_v63, %v4801_v62  ;;  %v4323_v60 = vld [vmem:[#allocation4 + $0x260] sm:$0xf0]  ;;  %v5908_v63 = vld [vmem:[#allocation4 + $0x54c] sm:$0xf] }
  0xbf   :  { %2706 = vmatpush.bf16.msrb.mxu1 %v5114_v7  ;;  %v6031_v7 = vld [vmem:[#allocation4 + $0x91c] sm:$0xf0]  ;;  %v4515_v62 = vld [vmem:[#allocation4 + $0x3e0] sm:$0xf0]  ;;  %v4326_v3 = vor.u32 %v5812_v57, %v4323_v60  ;;  %v4971_v57 = vld [vmem:[#allocation4 + $0x770] sm:$0xf0] }
  0xc0   :  { %2720 = vmatpush.bf16.msrb.mxu2 %v5306_v8  ;;  %v5377_v8 = vld [vmem:[#allocation4 + $0xa88] sm:$0xf] }
  0xc1   :  { %2734 = vmatpush.bf16.msrb.mxu3 %v5498_v13  ;;  %v5830_v13 = vld [vmem:[#allocation4 + $0x2dc] sm:$0xf]  ;;  %v5378_v23 = vor.u32 %v6079_v9, %v5377_v8  ;;  %v4299_v9 = vld [vmem:[#allocation4 + $0x230] sm:$0xf0] }
  0xc2   :  { %2693 = vmatpush.bf16.msrb.mxu0 %v4898_v20  ;;  %v5186_v20 = vor.u32 %v6031_v7, %v5185_v5  ;;  %v4398_v25 = vor.u32 %v5830_v13, %v4395_v15  ;;  %v5758_v5 = vld [vmem:[#allocation4 + $0x9c] sm:$0xf] }
  0xc3   :  { %2707 = vmatpush.bf16.msrb.mxu1 %v5090_v21  ;;  %v5926_v21 = vld [vmem:[#allocation4 + $0x5dc] sm:$0xf] }
  0xc4   :  { %2721 = vmatpush.bf16.msrb.mxu2 %v5282_v22  ;;  %v4779_v22 = vld [vmem:[#allocation4 + $0x5f0] sm:$0xf0]  ;;  %v5806_v7 = vld [vmem:[#allocation4 + $0x21c] sm:$0xf] }
  0xc5   :  { %2735 = vmatpush.bf16.msrb.mxu3 %v5474_v26  ;;  %v4590_v26 = vor.u32 %v5878_v16, %v4587_v18  ;;  %v4782_v30 = vor.u32 %v5926_v21, %v4779_v22  ;;  %v5902_v13 = vld [vmem:[#allocation4 + $0x51c] sm:$0xf]  ;;  %v4302_v16 = vor.u32 %v5806_v7, %v4299_v9  ;;  %v4494_v18 = vor.u32 %v5854_v11, %v4491_v12  ;;  %v5800_v21 = vld [vmem:[#allocation4 + $0x1ec] sm:$0xf]  ;;  %v4947_v11 = vld [vmem:[#allocation4 + $0x740] sm:$0xf0] }
  0xc6   :  { %2694 = vmatpush.bf16.msrb.mxu0 %v4874_v32  ;;  %v5872_v32 = vld [vmem:[#allocation4 + $0x42c] sm:$0xf] }
  0xc7   :  { %2708 = vmatpush.bf16.msrb.mxu1 %v5066_v33  ;;  %v4563_v33 = vld [vmem:[#allocation4 + $0x440] sm:$0xf0]  ;;  %v5968_v9 = vld [vmem:[#allocation4 + $0x72c] sm:$0xf] }
  0xc8   :  { %2722 = vmatpush.bf16.msrb.mxu2 %v5258_v34  ;;  %v5920_v34 = vld [vmem:[#allocation4 + $0x5ac] sm:$0xf] }
  0xc9   :  { %2736 = vmatpush.bf16.msrb.mxu3 %v5450_v38  ;;  %v4566_v38 = vor.u32 %v5872_v32, %v4563_v33  ;;  %v4758_v45 = vor.u32 %v5920_v34, %v4755_v35  ;;  %v4059_v32 = vld [vmem:[#allocation4 + $0x50] sm:$0xf0]  ;;  %v5794_v33 = vld [vmem:[#allocation4 + $0x1bc] sm:$0xf]  ;;  %v6016_v12 = vld [vmem:[#allocation4 + $0x8ac] sm:$0xf] }
  0xca   :  { %2695 = vmatpush.bf16.msrb.mxu0 %v4850_v48  ;;  %v5866_v48 = vld [vmem:[#allocation4 + $0x3fc] sm:$0xf]  ;;  %v4251_v35 = vld [vmem:[#allocation4 + $0x1d0] sm:$0xf0]  ;;  %v4062_v41 = vor.u32 %v5746_v31, %v4059_v32 }
  0xcb   :  { %2709 = vmatpush.bf16.msrb.mxu1 %v5042_v49  ;;  %v4539_v49 = vld [vmem:[#allocation4 + $0x410] sm:$0xf0]  ;;  %v4254_v46 = vor.u32 %v5794_v33, %v4251_v35  ;;  %v5956_v35 = vld [vmem:[#allocation4 + $0x6cc] sm:$0xf] }
  0xcc   :  { %2723 = vmatpush.bf16.msrb.mxu2 %v5234_v50  ;;  %v5914_v50 = vld [vmem:[#allocation4 + $0x57c] sm:$0xf]  ;;  %v5499_v31 = vld [vmem:[#allocation4 + $0xb90] sm:$0xf0] }
  0xcd   :  { %2737 = vmatpush.bf16.msrb.mxu3 %v5426_v54  ;;  %v4542_v54 = vor.u32 %v5866_v48, %v4539_v49  ;;  %v4734_v59 = vor.u32 %v5914_v50, %v4731_v51  ;;  %v5788_v49 = vld [vmem:[#allocation4 + $0x18c] sm:$0xf]  ;;  %v4227_v50 = vld [vmem:[#allocation4 + $0x1a0] sm:$0xf0] }
  0xce   :  { %2696 = vmatpush.bf16.msrb.mxu0 %v4826_v61  ;;  %v5860_v61 = vld [vmem:[#allocation4 + $0x3cc] sm:$0xf] }
  0xcf   :  { %2710 = vmatpush.bf16.msrb.mxu1 %v5018_v0  ;;  %v4707_v0 = vld [vmem:[#allocation4 + $0x560] sm:$0xf0]  ;;  %v4518_v4 = vor.u32 %v5860_v61, %v4515_v62  ;;  %v5836_v51 = vld [vmem:[#allocation4 + $0x30c] sm:$0xf]  ;;  %v5163_v61 = vld [vmem:[#allocation4 + $0x8f0] sm:$0xf0] }
  0xd0   :  { %2724 = vmatpush.bf16.msrb.mxu2 %v5210_v2  ;;  %v4134_v2 = vor.u32 %v5764_v55, %v4131_v56  ;;  %v4710_v8 = vor.u32 %v5908_v63, %v4707_v0  ;;  %v4611_v55 = vld [vmem:[#allocation4 + $0x4a0] sm:$0xf0]  ;;  %v5974_v56 = vld [vmem:[#allocation4 + $0x75c] sm:$0xf]  ;;  %v5355_v63 = vld [vmem:[#allocation4 + $0xa70] sm:$0xf0]  ;;  %v4230_v0 = vor.u32 %v5788_v49, %v4227_v50 }
  0xd1   :  { %2738 = vmatpush.bf16.msrb.mxu3 %v5402_v6  ;;  %v4107_v6 = vld [vmem:[#allocation4 + $0xb0] sm:$0xf0]  ;;  %v6070_v62 = vld [vmem:[#allocation4 + $0xa5c] sm:$0xf] }
  0xd2   :  { %2697 = vmatpush.bf16.msrb.mxu0 %v4802_v14  ;;  %v4683_v14 = vld [vmem:[#allocation4 + $0x530] sm:$0xf0]  ;;  %v4110_v15 = vor.u32 %v5758_v5, %v4107_v6  ;;  %v4974_v6 = vor.u32 %v5974_v56, %v4971_v57  ;;  %v6046_v56 = vld [vmem:[#allocation4 + $0x99c] sm:$0xf] }
  0xd3   :  { %2711 = vmatpush.bf16.msrb.mxu1 %v4994_v19  ;;  %v5752_v19 = vld [vmem:[#allocation4 + $0x6c] sm:$0xf]  ;;  %v4686_v22 = vor.u32 %v5902_v13, %v4683_v14  ;;  %v5139_v14 = vld [vmem:[#allocation4 + $0x8c0] sm:$0xf0]  ;;  %v5259_v57 = vld [vmem:[#allocation4 + $0x9b0] sm:$0xf0] }
  0xd4   :  { %2725 = vmatpush.bf16.msrb.mxu2 %v5186_v20  ;;  %v4083_v20 = vld [vmem:[#allocation4 + $0x80] sm:$0xf0] }
  0xd5   :  { %2739 = vmatpush.bf16.msrb.mxu3 %v5378_v23  ;;  %2698 = vmatmul.bf16.vlgmr.msrb.gmra.mxu0 %v6305_v39  ;;  %v4275_v23 = vld [vmem:[#allocation4 + $0x200] sm:$0xf0]  ;;  %v4086_v28 = vor.u32 %v5752_v19, %v4083_v20  ;;  %v4950_v20 = vor.u32 %v5968_v9, %v4947_v11 }
  0xd6   :  { %2746 = vmatpush.bf16.msra.mxu0 %v4206_v24  ;;  %2712 = vmatmul.bf16.vlgmr.msrb.gmra.mxu1 %v6309_v44  ;;  %v5848_v24 = vld [vmem:[#allocation4 + $0x36c] sm:$0xf]  ;;  %v4278_v29 = vor.u32 %v5800_v21, %v4275_v23  ;;  %v5523_v19 = vld [vmem:[#allocation4 + $0xbc0] sm:$0xf0]  ;;  %v5142_v21 = vor.u32 %v6016_v12, %v5139_v14  ;;  %v5962_v23 = vld [vmem:[#allocation4 + $0x6fc] sm:$0xf] }
  0xd7   :  { %2760 = vmatpush.bf16.msra.mxu1 %v4398_v25  ;;  %2726 = vmatmul.bf16.vlgmr.msrb.gmra.mxu2 %v6307_v43  ;;  %v4467_v25 = vld [vmem:[#allocation4 + $0x380] sm:$0xf0]  ;;  %v5938_v14 = vld [vmem:[#allocation4 + $0x63c] sm:$0xf] }
  0xd8   :  { %2774 = vmatpush.bf16.msra.mxu2 %v4590_v26  ;;  %2740 = vmatmul.bf16.vlgmr.msrb.gmra.mxu3 %v6311_v47  ;;  %v5896_v26 = vld [vmem:[#allocation4 + $0x4ec] sm:$0xf]  ;;  %v5427_v9 = vld [vmem:[#allocation4 + $0xb00] sm:$0xf0] }
  0xd9   :  { %2788 = vmatpush.bf16.msra.mxu3 %v4782_v30  ;;  %v4470_v30 = vor.u32 %v5848_v24, %v4467_v25  ;;  %v4662_v34 = vor.u32 %v5896_v26, %v4659_v27  ;;  %v4923_v24 = vld [vmem:[#allocation4 + $0x710] sm:$0xf0]  ;;  %v6010_v25 = vld [vmem:[#allocation4 + $0x87c] sm:$0xf] }
  0xda   :  { %2747 = vmatpush.bf16.msra.mxu0 %v4182_v36  ;;  %v5842_v36 = vld [vmem:[#allocation4 + $0x33c] sm:$0xf]  ;;  %v5115_v27 = vld [vmem:[#allocation4 + $0x890] sm:$0xf0]  ;;  %v4926_v32 = vor.u32 %v5962_v23, %v4923_v24 }
  0xdb   :  { %2761 = vmatpush.bf16.msra.mxu1 %v4374_v37  ;;  %v4443_v37 = vld [vmem:[#allocation4 + $0x350] sm:$0xf0]  ;;  %v5118_v33 = vor.u32 %v6010_v25, %v5115_v27  ;;  %v5932_v25 = vld [vmem:[#allocation4 + $0x60c] sm:$0xf] }
  0xdc   :  { %2775 = vmatpush.bf16.msra.mxu2 %v4566_v38  ;;  %v5890_v38 = vld [vmem:[#allocation4 + $0x4bc] sm:$0xf]  ;;  %v4446_v48 = vor.u32 %v5842_v36, %v4443_v37  ;;  %v4899_v36 = vld [vmem:[#allocation4 + $0x6e0] sm:$0xf0]  ;;  %v6004_v37 = vld [vmem:[#allocation4 + $0x84c] sm:$0xf] }
  0xdd   :  { %2789 = vmatpush.bf16.msra.mxu3 %v4758_v45  ;;  %v4035_v45 = vld [vmem:[#allocation4 + $0x20] sm:$0xf0]  ;;  %v5403_v23 = vld [vmem:[#allocation4 + $0xad0] sm:$0xf0] }
  0xde   :  { %2748 = vmatpush.bf16.msra.mxu0 %v4158_v52  ;;  %v4638_v52 = vor.u32 %v5890_v38, %v4635_v40  ;;  %v4038_v60 = vor.u32 %v5740_v42, %v4035_v45  ;;  %v5091_v40 = vld [vmem:[#allocation4 + $0x860] sm:$0xf0]  ;;  %v6100_v45 = vld [vmem:[#allocation4 + $0xb4c] sm:$0xf] }
  0xdf   :  { %2762 = vmatpush.bf16.msra.mxu1 %v4350_v53  ;;  %v4419_v53 = vld [vmem:[#allocation4 + $0x320] sm:$0xf0]  ;;  %v5094_v49 = vor.u32 %v6004_v37, %v5091_v40  ;;  %v4209_v37 = vld [vmem:[#allocation4 + $0x160] sm:$0xf] }
  0xe0   :  { %2776 = vmatpush.bf16.msra.mxu2 %v4542_v54  ;;  %v5884_v54 = vld [vmem:[#allocation4 + $0x48c] sm:$0xf]  ;;  %v5283_v42 = vld [vmem:[#allocation4 + $0x9e0] sm:$0xf0]  ;;  %v4401_v40 = vld [vmem:[#allocation4 + $0x2e0] sm:$0xf] }
  0xe1   :  { %2790 = vmatpush.bf16.msra.mxu3 %v4734_v59  ;;  %v6022_v59 = vld [vmem:[#allocation4 + $0x8dc] sm:$0xf]  ;;  %v4614_v5 = vor.u32 %v5884_v54, %v4611_v55  ;;  %v5067_v55 = vld [vmem:[#allocation4 + $0x830] sm:$0xf0] }
  0xe2   :  { %2749 = vmatpush.bf16.msra.mxu0 %v4134_v2  ;;  %v4422_v2 = vor.u32 %v5836_v51, %v4419_v53  ;;  %v5166_v7 = vor.u32 %v6022_v59, %v5163_v61  ;;  %v5950_v51 = vld [vmem:[#allocation4 + $0x69c] sm:$0xf] }
  0xe3   :  { %2763 = vmatpush.bf16.msra.mxu1 %v4326_v3  ;;  %v6118_v3 = vld [vmem:[#allocation4 + $0xbdc] sm:$0xf] }
  0xe4   :  { %2777 = vmatpush.bf16.msra.mxu2 %v4518_v4  ;;  %v5547_v4 = vld [vmem:[#allocation4 + $0xbf0] sm:$0xf0]  ;;  %v5998_v53 = vld [vmem:[#allocation4 + $0x81c] sm:$0xf] }
  0xe5   :  { %2791 = vmatpush.bf16.msra.mxu3 %v4710_v8  ;;  %v5358_v8 = vor.u32 %v6070_v62, %v5355_v63  ;;  %v5550_v13 = vor.u32 %v6118_v3, %v5547_v4  ;;  %v6094_v59 = vld [vmem:[#allocation4 + $0xb1c] sm:$0xf]  ;;  %v5070_v62 = vor.u32 %v5998_v53, %v5067_v55  ;;  %v5262_v63 = vor.u32 %v6046_v56, %v5259_v57  ;;  %v5992_v3 = vld [vmem:[#allocation4 + $0x7ec] sm:$0xf]  ;;  %v4185_v57 = vld [vmem:[#allocation4 + $0x130] sm:$0xf] }
  0xe6   :  { %2750 = vmatpush.bf16.msra.mxu0 %v4110_v15  ;;  %v6064_v15 = vld [vmem:[#allocation4 + $0xa2c] sm:$0xf] }
  0xe7   :  { %2764 = vmatpush.bf16.msra.mxu1 %v4302_v16  ;;  %v5331_v16 = vld [vmem:[#allocation4 + $0xa40] sm:$0xf0] }
  0xe8   :  { %2778 = vmatpush.bf16.msra.mxu2 %v4494_v18  ;;  %v6112_v18 = vld [vmem:[#allocation4 + $0xbac] sm:$0xf] }
  0xe9   :  { %2792 = vmatpush.bf16.msra.mxu3 %v4686_v22  ;;  %v5334_v22 = vor.u32 %v6064_v15, %v5331_v16  ;;  %v5526_v26 = vor.u32 %v6112_v18, %v5523_v19  ;;  %v4827_v15 = vld [vmem:[#allocation4 + $0x650] sm:$0xf0]  ;;  %v5986_v16 = vld [vmem:[#allocation4 + $0x7bc] sm:$0xf] }
  0xea   :  { %2751 = vmatpush.bf16.msra.mxu0 %v4086_v28  ;;  %v6058_v28 = vld [vmem:[#allocation4 + $0x9fc] sm:$0xf]  ;;  %v5019_v19 = vld [vmem:[#allocation4 + $0x7d0] sm:$0xf0]  ;;  %v4830_v24 = vor.u32 %v5938_v14, %v4827_v15  ;;  %v5822_v14 = vld [vmem:[#allocation4 + $0x294] sm:$0xf0] }
  0xeb   :  { %2765 = vmatpush.bf16.msra.mxu1 %v4278_v29  ;;  %v5307_v29 = vld [vmem:[#allocation4 + $0xa10] sm:$0xf0]  ;;  %v5022_v27 = vor.u32 %v5986_v16, %v5019_v19  ;;  %v4545_v15 = vld [vmem:[#allocation4 + $0x400] sm:$0xf]  ;;  %v5870_v16 = vld [vmem:[#allocation4 + $0x414] sm:$0xf0] }
  0xec   :  { %2779 = vmatpush.bf16.msra.mxu2 %v4470_v30  ;;  %v6106_v30 = vld [vmem:[#allocation4 + $0xb7c] sm:$0xf]  ;;  %v4737_v19 = vld [vmem:[#allocation4 + $0x580] sm:$0xf] }
  0xed   :  { %2793 = vmatpush.bf16.msra.mxu3 %v4662_v34  ;;  %v5310_v34 = vor.u32 %v6058_v28, %v5307_v29  ;;  %v5502_v38 = vor.u32 %v6106_v30, %v5499_v31  ;;  %v5980_v29 = vld [vmem:[#allocation4 + $0x78c] sm:$0xf]  ;;  %v4995_v30 = vld [vmem:[#allocation4 + $0x7a0] sm:$0xf0] }
  0xee   :  { %2752 = vmatpush.bf16.msra.mxu0 %v4062_v41  ;;  %v6052_v41 = vld [vmem:[#allocation4 + $0x9cc] sm:$0xf] }
  0xef   :  { %2766 = vmatpush.bf16.msra.mxu1 %v4254_v46  ;;  %v5475_v46 = vld [vmem:[#allocation4 + $0xb60] sm:$0xf0]  ;;  %v5286_v50 = vor.u32 %v6052_v41, %v5283_v42  ;;  %v6028_v31 = vld [vmem:[#allocation4 + $0x90c] sm:$0xf]  ;;  %v5834_v42 = vld [vmem:[#allocation4 + $0x2f4] sm:$0xf0] }
  0xf0   :  { %2780 = vmatpush.bf16.msra.mxu2 %v4446_v48  ;;  %v4902_v48 = vor.u32 %v5956_v35, %v4899_v36  ;;  %v5478_v54 = vor.u32 %v6100_v45, %v5475_v46  ;;  %v5379_v35 = vld [vmem:[#allocation4 + $0xaa0] sm:$0xf0]  ;;  %v6337_v36 = vpop.f32.mrf.mxu0  ;;  %v4593_v45 = vld [vmem:[#allocation4 + $0x460] sm:$0xf]  ;;  %v5882_v46 = vld [vmem:[#allocation4 + $0x474] sm:$0xf0]  ;;  %v4402_v55 = vor.u32 %v5834_v42, %v4401_v40 }
  0xf1   :  { %2794 = vmatpush.bf16.msra.mxu3 %v4638_v52  ;;  %v4875_v52 = vld [vmem:[#allocation4 + $0x6b0] sm:$0xf0]  ;;  %v4594_v56 = vor.u32 %v5882_v46, %v4593_v45  ;;  %v5762_v40 = vld [vmem:[#allocation4 + $0xb4] sm:$0xf0] }
  0xf2   :  { %2753 = vmatpush.bf16.msra.mxu0 %v4038_v60  ;;  %v5451_v60 = vld [vmem:[#allocation4 + $0xb30] sm:$0xf0]  ;;  %v4878_v61 = vor.u32 %v5950_v51, %v4875_v52  ;;  %v5930_v51 = vld [vmem:[#allocation4 + $0x5f4] sm:$0xf0]  ;;  %v6339_v52 = vpop.f32.mrf.mxu1 }
  0xf3   :  { %2767 = vmatpush.bf16.msra.mxu1 %v4230_v0  ;;  %v5944_v0 = vld [vmem:[#allocation4 + $0x66c] sm:$0xf]  ;;  %v5454_v4 = vor.u32 %v6094_v59, %v5451_v60  ;;  %v5780_v59 = vld [vmem:[#allocation4 + $0x144] sm:$0xf0]  ;;  %v4377_v60 = vld [vmem:[#allocation4 + $0x2b0] sm:$0xf] }
  0xf4   :  { %2781 = vmatpush.bf16.msra.mxu2 %v4422_v2  ;;  %v4851_v2 = vld [vmem:[#allocation4 + $0x680] sm:$0xf0]  ;;  %v5810_v46 = vld [vmem:[#allocation4 + $0x234] sm:$0xf0] }
  0xf5   :  { %2795 = vmatpush.bf16.msra.mxu3 %v4614_v5  ;;  %2754 = vmatmul.bf16.vlgmr.msra.gmra.mxu0 %v6293_v58  ;;  %v5043_v5 = vld [vmem:[#allocation4 + $0x800] sm:$0xf0]  ;;  %v4854_v11 = vor.u32 %v5944_v0, %v4851_v2  ;;  %v5876_v0 = vld [vmem:[#allocation4 + $0x444] sm:$0xf0]  ;;  %v4761_v2 = vld [vmem:[#allocation4 + $0x5b0] sm:$0xf] }
  0xf6   :  { %2802 = vmatpush.bf16.msrb.mxu0 %v4974_v6  ;;  %2768 = vmatmul.bf16.vlgmr.msra.gmra.mxu1 %v6299_v10  ;;  %v6040_v6 = vld [vmem:[#allocation4 + $0x96c] sm:$0xf]  ;;  %v5046_v12 = vor.u32 %v5992_v3, %v5043_v5  ;;  %v5924_v3 = vld [vmem:[#allocation4 + $0x5c4] sm:$0xf0]  ;;  %v4186_v5 = vor.u32 %v5780_v59, %v4185_v57  ;;  %v4089_v59 = vld [vmem:[#allocation4 + $0x70] sm:$0xf] }
  0xf7   :  { %2816 = vmatpush.bf16.msrb.mxu1 %v5166_v7  ;;  %2782 = vmatmul.bf16.vlgmr.msra.gmra.mxu2 %v6295_v1  ;;  %v5235_v7 = vld [vmem:[#allocation4 + $0x980] sm:$0xf0] }
  0xf8   :  { %2830 = vmatpush.bf16.msrb.mxu2 %v5358_v8  ;;  %2796 = vmatmul.bf16.vlgmr.msra.gmra.mxu3 %v6301_v17  ;;  %v6088_v8 = vld [vmem:[#allocation4 + $0xaec] sm:$0xf] }
  0xf9   :  { %2844 = vmatpush.bf16.msrb.mxu3 %v5550_v13  ;;  %v5238_v13 = vor.u32 %v6040_v6, %v5235_v7  ;;  %v5430_v18 = vor.u32 %v6088_v8, %v5427_v9  ;;  %v6343_v6 = vpop.f32.mrf.mxu3  ;;  %v4161_v9 = vld [vmem:[#allocation4 + $0x100] sm:$0xf] }
  0xfa   :  { %2803 = vmatpush.bf16.msrb.mxu0 %v4950_v20  ;;  %v6034_v20 = vld [vmem:[#allocation4 + $0x93c] sm:$0xf] }
  0xfb   :  { %2817 = vmatpush.bf16.msrb.mxu1 %v5142_v21  ;;  %v5211_v21 = vld [vmem:[#allocation4 + $0x950] sm:$0xf0] }
  0xfc   :  { %2831 = vmatpush.bf16.msrb.mxu2 %v5334_v22  ;;  %v6082_v22 = vld [vmem:[#allocation4 + $0xabc] sm:$0xf]  ;;  %v5214_v28 = vor.u32 %v6034_v20, %v5211_v21  ;;  %v5918_v20 = vld [vmem:[#allocation4 + $0x594] sm:$0xf0] }
  0xfd   :  { %2845 = vmatpush.bf16.msrb.mxu3 %v5526_v26  ;;  %v4803_v26 = vld [vmem:[#allocation4 + $0x620] sm:$0xf0] }
  0xfe   :  { %2804 = vmatpush.bf16.msrb.mxu0 %v4926_v32  ;;  %v5406_v32 = vor.u32 %v6082_v22, %v5403_v23  ;;  %v4806_v41 = vor.u32 %v5932_v25, %v4803_v26  ;;  %v4546_v23 = vor.u32 %v5870_v16, %v4545_v15  ;;  %v5768_v25 = vld [vmem:[#allocation4 + $0xe4] sm:$0xf0]  ;;  %v4329_v26 = vld [vmem:[#allocation4 + $0x250] sm:$0xf]  ;;  %v5798_v16 = vld [vmem:[#allocation4 + $0x1d4] sm:$0xf0] }
  0xff   :  { %2818 = vmatpush.bf16.msrb.mxu1 %v5118_v33  ;;  %v5187_v33 = vld [vmem:[#allocation4 + $0x920] sm:$0xf0] }
 0x100   :  { %2832 = vmatpush.bf16.msrb.mxu2 %v5310_v34  ;;  %v6076_v34 = vld [vmem:[#allocation4 + $0xa8c] sm:$0xf] }
 0x101   :  { %2846 = vmatpush.bf16.msrb.mxu3 %v5502_v38  ;;  %v5786_v38 = vld [vmem:[#allocation4 + $0x174] sm:$0xf0]  ;;  %v5382_v53 = vor.u32 %v6076_v34, %v5379_v35 }
 0x102   :  { %2805 = vmatpush.bf16.msrb.mxu0 %v4902_v48  ;;  %v4998_v48 = vor.u32 %v5980_v29, %v4995_v30  ;;  %v5816_v29 = vld [vmem:[#allocation4 + $0x264] sm:$0xf0]  ;;  %v4521_v30 = vld [vmem:[#allocation4 + $0x3d0] sm:$0xf] }
 0x103   :  { %2819 = vmatpush.bf16.msrb.mxu1 %v5094_v49  ;;  %v5190_v49 = vor.u32 %v6028_v31, %v5187_v33  ;;  %v5864_v31 = vld [vmem:[#allocation4 + $0x3e4] sm:$0xf0]  ;;  %v4330_v35 = vor.u32 %v5816_v29, %v4329_v26 }
 0x104   :  { %2833 = vmatpush.bf16.msrb.mxu2 %v5286_v50  ;;  %v4785_v50 = vld [vmem:[#allocation4 + $0x5e0] sm:$0xf]  ;;  %v5912_v33 = vld [vmem:[#allocation4 + $0x564] sm:$0xf0] }
 0x105   :  { %2847 = vmatpush.bf16.msrb.mxu3 %v5478_v54  ;;  %v4210_v54 = vor.u32 %v5786_v38, %v4209_v37  ;;  %v4522_v37 = vor.u32 %v5864_v31, %v4521_v30  ;;  %v4113_v38 = vld [vmem:[#allocation4 + $0xa0] sm:$0xf]  ;;  %v5744_v26 = vld [vmem:[#allocation4 + $0x24] sm:$0xf0]  ;;  %v4233_v31 = vld [vmem:[#allocation4 + $0x190] sm:$0xf] }
 0x106   :  { %2806 = vmatpush.bf16.msrb.mxu0 %v4878_v61  ;;  %v4786_v61 = vor.u32 %v5930_v51, %v4785_v50  ;;  %v6355_v50 = vpop.f32.mrf.mxu3  ;;  %v4689_v51 = vld [vmem:[#allocation4 + $0x520] sm:$0xf] }
 0x107   :  { %2820 = vmatpush.bf16.msrb.mxu1 %v5070_v62  ;;  %v5828_v62 = vld [vmem:[#allocation4 + $0x2c4] sm:$0xf0] }
 0x108   :  { %2834 = vmatpush.bf16.msrb.mxu2 %v5262_v63  ;;  %v4569_v63 = vld [vmem:[#allocation4 + $0x430] sm:$0xf]  ;;  %v4378_v7 = vor.u32 %v5828_v62, %v4377_v60  ;;  %v5756_v60 = vld [vmem:[#allocation4 + $0x84] sm:$0xf0] }
 0x109   :  { %2848 = vmatpush.bf16.msrb.mxu3 %v5454_v4  ;;  %v6341_v4 = vpop.f32.mrf.mxu2  ;;  %v4570_v8 = vor.u32 %v5876_v0, %v4569_v63  ;;  %v5804_v63 = vld [vmem:[#allocation4 + $0x204] sm:$0xf0]  ;;  %v4473_v0 = vld [vmem:[#allocation4 + $0x370] sm:$0xf] }
 0x10a   :  { %2807 = vmatpush.bf16.msrb.mxu0 %v4854_v11  ;;  %v5774_v11 = vld [vmem:[#allocation4 + $0x114] sm:$0xf0] }
 0x10b   :  { %2821 = vmatpush.bf16.msrb.mxu1 %v5046_v12  ;;  %v4353_v12 = vld [vmem:[#allocation4 + $0x280] sm:$0xf]  ;;  %v4162_v21 = vor.u32 %v5774_v11, %v4161_v9 }
 0x10c   :  { %2835 = vmatpush.bf16.msrb.mxu2 %v5238_v13  ;;  %v4762_v13 = vor.u32 %v5924_v3, %v4761_v2  ;;  %v4354_v22 = vor.u32 %v5822_v14, %v4353_v12  ;;  %v5852_v2 = vld [vmem:[#allocation4 + $0x384] sm:$0xf0]  ;;  %v4665_v3 = vld [vmem:[#allocation4 + $0x4f0] sm:$0xf]  ;;  %v4065_v12 = vld [vmem:[#allocation4 + $0x40] sm:$0xf] }
 0x10d   :  { %2849 = vmatpush.bf16.msrb.mxu3 %v5430_v18  ;;  %v6346_v18 = vpop.f32.mrf.mxu0  ;;  %v4474_v11 = vor.u32 %v5852_v2, %v4473_v0  ;;  %v4257_v14 = vld [vmem:[#allocation4 + $0x1c0] sm:$0xf]  ;;  %v4953_v2 = vld [vmem:[#allocation4 + $0x730] sm:$0xf] }
 0x10e   :  { %2808 = vmatpush.bf16.msrb.mxu0 %v4830_v24  ;;  %v4137_v24 = vld [vmem:[#allocation4 + $0xd0] sm:$0xf]  ;;  %v4258_v29 = vor.u32 %v5798_v16, %v4257_v14  ;;  %v6116_v14 = vld [vmem:[#allocation4 + $0xbc4] sm:$0xf0] }
 0x10f   :  { %2822 = vmatpush.bf16.msrb.mxu1 %v5022_v27  ;;  %v6351_v27 = vpop.f32.mrf.mxu1  ;;  %v4138_v34 = vor.u32 %v5768_v25, %v4137_v24  ;;  %v4041_v25 = vld [vmem:[#allocation4 + $0x10] sm:$0xf] }
 0x110   :  { %2836 = vmatpush.bf16.msrb.mxu2 %v5214_v28  ;;  %v4738_v28 = vor.u32 %v5918_v20, %v4737_v19  ;;  %v4449_v19 = vld [vmem:[#allocation4 + $0x340] sm:$0xf]  ;;  %v5846_v20 = vld [vmem:[#allocation4 + $0x354] sm:$0xf0] }
 0x111   :  { %2850 = vmatpush.bf16.msrb.mxu3 %v5406_v32  ;;  %v4713_v32 = vld [vmem:[#allocation4 + $0x550] sm:$0xf]  ;;  %v6353_v42 = vpop.f32.mrf.mxu2  ;;  %v4450_v30 = vor.u32 %v5846_v20, %v4449_v19 }
 0x112   :  { %2809 = vmatpush.bf16.msrb.mxu0 %v4806_v41  ;;  %v4305_v41 = vld [vmem:[#allocation4 + $0x220] sm:$0xf]  ;;  %v4714_v45 = vor.u32 %v5912_v33, %v4713_v32  ;;  %v5792_v32 = vld [vmem:[#allocation4 + $0x1a4] sm:$0xf0]  ;;  %v4425_v33 = vld [vmem:[#allocation4 + $0x310] sm:$0xf] }
 0x113   :  { %2823 = vmatpush.bf16.msrb.mxu1 %v4998_v48  ;;  %v4497_v48 = vld [vmem:[#allocation4 + $0x3a0] sm:$0xf] }
 0x114   :  { %2837 = vmatpush.bf16.msrb.mxu2 %v5190_v49  ;;  %v5858_v49 = vld [vmem:[#allocation4 + $0x3b4] sm:$0xf0] }
 0x115   :  { %2851 = vmatpush.bf16.msrb.mxu3 %v5382_v53  ;;  %2810 = vmatmul.bf16.vlgmr.msrb.gmra.mxu0 %v6305_v39  ;;  %v5906_v53 = vld [vmem:[#allocation4 + $0x534] sm:$0xf0]  ;;  %v4498_v57 = vor.u32 %v5858_v49, %v4497_v48  ;;  %v4042_v48 = vor.u32 %v5744_v26, %v4041_v25  ;;  %v5121_v26 = vld [vmem:[#allocation4 + $0x880] sm:$0xf] }
 0x116   :  { %2858 = vmatpush.bf16.msra.mxu0 %v4210_v54  ;;  %2824 = vmatmul.bf16.vlgmr.msrb.gmra.mxu1 %v6309_v44  ;;  %v4114_v54 = vor.u32 %v5762_v40, %v4113_v38  ;;  %v4690_v62 = vor.u32 %v5906_v53, %v4689_v51  ;;  %v5888_v38 = vld [vmem:[#allocation4 + $0x4a4] sm:$0xf0]  ;;  %v6026_v49 = vld [vmem:[#allocation4 + $0x8f4] sm:$0xf0]  ;;  %v5361_v51 = vld [vmem:[#allocation4 + $0xa60] sm:$0xf] }
 0x117   :  { %2872 = vmatpush.bf16.msra.mxu1 %v4402_v55  ;;  %2838 = vmatmul.bf16.vlgmr.msrb.gmra.mxu2 %v6307_v43  ;;  %v6357_v55 = vpop.f32.mrf.mxu0  ;;  %v6074_v53 = vld [vmem:[#allocation4 + $0xa74] sm:$0xf0] }
 0x118   :  { %2886 = vmatpush.bf16.msra.mxu2 %v4594_v56  ;;  %2852 = vmatmul.bf16.vlgmr.msrb.gmra.mxu3 %v6311_v47  ;;  %v4306_v56 = vor.u32 %v5810_v46, %v4305_v41  ;;  %v4977_v41 = vld [vmem:[#allocation4 + $0x760] sm:$0xf]  ;;  %v5362_v0 = vor.u32 %v6074_v53, %v5361_v51  ;;  %v5966_v25 = vld [vmem:[#allocation4 + $0x714] sm:$0xf0]  ;;  %v6008_v51 = vld [vmem:[#allocation4 + $0x864] sm:$0xf0] }
 0x119   :  { %2900 = vmatpush.bf16.msra.mxu3 %v4786_v61  ;;  %v4281_v61 = vld [vmem:[#allocation4 + $0x1f0] sm:$0xf]  ;;  %v5169_v46 = vld [vmem:[#allocation4 + $0x8e0] sm:$0xf] }
 0x11a   :  { %2859 = vmatpush.bf16.msra.mxu0 %v4186_v5  ;;  %v5900_v5 = vld [vmem:[#allocation4 + $0x504] sm:$0xf0]  ;;  %v4282_v9 = vor.u32 %v5804_v63, %v4281_v61  ;;  %v5170_v63 = vor.u32 %v6026_v49, %v5169_v46  ;;  %v5289_v53 = vld [vmem:[#allocation4 + $0x9d0] sm:$0xf] }
 0x11b   :  { %2873 = vmatpush.bf16.msra.mxu1 %v4378_v7  ;;  %v6359_v7 = vpop.f32.mrf.mxu1  ;;  %v4666_v15 = vor.u32 %v5900_v5, %v4665_v3  ;;  %v5972_v3 = vld [vmem:[#allocation4 + $0x744] sm:$0xf0]  ;;  %v5145_v5 = vld [vmem:[#allocation4 + $0x8b0] sm:$0xf] }
 0x11c   :  { %2887 = vmatpush.bf16.msra.mxu2 %v4570_v8  ;;  %v4090_v8 = vor.u32 %v5756_v60, %v4089_v59  ;;  %v6122_v59 = vld [vmem:[#allocation4 + $0xbf4] sm:$0xf0]  ;;  %v4954_v16 = vor.u32 %v5972_v3, %v4953_v2  ;;  %v5960_v46 = vld [vmem:[#allocation4 + $0x6e4] sm:$0xf0]  ;;  %v4881_v2 = vld [vmem:[#allocation4 + $0x6a0] sm:$0xf] }
 0x11d   :  { %2901 = vmatpush.bf16.msra.mxu3 %v4762_v13  ;;  %v5750_v13 = vld [vmem:[#allocation4 + $0x54] sm:$0xf0] }
 0x11e   :  { %2860 = vmatpush.bf16.msra.mxu0 %v4162_v21  ;;  %v4641_v21 = vld [vmem:[#allocation4 + $0x4c0] sm:$0xf]  ;;  %v4066_v24 = vor.u32 %v5750_v13, %v4065_v12  ;;  %v6068_v12 = vld [vmem:[#allocation4 + $0xa44] sm:$0xf0]  ;;  %v5529_v13 = vld [vmem:[#allocation4 + $0xbb0] sm:$0xf] }
 0x11f   :  { %2874 = vmatpush.bf16.msra.mxu1 %v4354_v22  ;;  %v5894_v22 = vld [vmem:[#allocation4 + $0x4d4] sm:$0xf0]  ;;  %v6365_v40 = vpop.f32.mrf.mxu0 }
 0x120   :  { %2888 = vmatpush.bf16.msra.mxu2 %v4546_v23  ;;  %v6361_v23 = vpop.f32.mrf.mxu2  ;;  %v5954_v3 = vld [vmem:[#allocation4 + $0x6b4] sm:$0xf0] }
 0x121   :  { %2902 = vmatpush.bf16.msra.mxu3 %v4738_v28  ;;  %v6363_v28 = vpop.f32.mrf.mxu3 }
 0x122   :  { %2861 = vmatpush.bf16.msra.mxu0 %v4138_v34  ;;  %v4642_v34 = vor.u32 %v5894_v22, %v4641_v21 }
 0x123   :  { %2875 = vmatpush.bf16.msra.mxu1 %v4330_v35  ;;  %v5840_v35 = vld [vmem:[#allocation4 + $0x324] sm:$0xf0]  ;;  %v6367_v60 = vpop.f32.mrf.mxu1 }
 0x124   :  { %2889 = vmatpush.bf16.msra.mxu2 %v4522_v37  ;;  %v4617_v37 = vld [vmem:[#allocation4 + $0x490] sm:$0xf] }
 0x125   :  { %2903 = vmatpush.bf16.msra.mxu3 %v4714_v45  ;;  %v5978_v45 = vld [vmem:[#allocation4 + $0x774] sm:$0xf0]  ;;  %v4618_v61 = vor.u32 %v5888_v38, %v4617_v37 }
 0x126   :  { %2862 = vmatpush.bf16.msra.mxu0 %v4114_v54  ;;  %v4234_v54 = vor.u32 %v5792_v32, %v4233_v31  ;;  %v5313_v31 = vld [vmem:[#allocation4 + $0xa00] sm:$0xf]  ;;  %v6062_v32 = vld [vmem:[#allocation4 + $0xa14] sm:$0xf0] }
 0x127   :  { %2876 = vmatpush.bf16.msra.mxu1 %v4306_v56  ;;  %v4426_v56 = vor.u32 %v5840_v35, %v4425_v33  ;;  %v6373_v20 = vpop.f32.mrf.mxu0  ;;  %v5505_v33 = vld [vmem:[#allocation4 + $0xb80] sm:$0xf] }
 0x128   :  { %2890 = vmatpush.bf16.msra.mxu2 %v4498_v57  ;;  %v5553_v57 = vld [vmem:[#allocation4 + $0xbe0] sm:$0xf] }
 0x129   :  { %2904 = vmatpush.bf16.msra.mxu3 %v4690_v62  ;;  %v4978_v62 = vor.u32 %v5978_v45, %v4977_v41  ;;  %v6371_v19 = vpop.f32.mrf.mxu3  ;;  %v5314_v41 = vor.u32 %v6062_v32, %v5313_v31  ;;  %v4905_v45 = vld [vmem:[#allocation4 + $0x6d0] sm:$0xf]  ;;  %v5996_v32 = vld [vmem:[#allocation4 + $0x804] sm:$0xf0] }
 0x12a   :  { %2863 = vmatpush.bf16.msra.mxu0 %v4090_v8  ;;  %v5554_v8 = vor.u32 %v6122_v59, %v5553_v57  ;;  %v6104_v57 = vld [vmem:[#allocation4 + $0xb64] sm:$0xf0] }
 0x12b   :  { %2877 = vmatpush.bf16.msra.mxu1 %v4282_v9  ;;  %v6020_v9 = vld [vmem:[#allocation4 + $0x8c4] sm:$0xf0]  ;;  %v6378_v35 = vpop.f32.mrf.mxu1 }
 0x12c   :  { %2891 = vmatpush.bf16.msra.mxu2 %v4474_v11  ;;  %v5337_v11 = vld [vmem:[#allocation4 + $0xa30] sm:$0xf]  ;;  %v5146_v21 = vor.u32 %v6020_v9, %v5145_v5  ;;  %v5073_v5 = vld [vmem:[#allocation4 + $0x820] sm:$0xf]  ;;  %v6002_v9 = vld [vmem:[#allocation4 + $0x834] sm:$0xf0] }
 0x12d   :  { %2905 = vmatpush.bf16.msra.mxu3 %v4666_v15  ;;  %v6369_v15 = vpop.f32.mrf.mxu2  ;;  %v5338_v22 = vor.u32 %v6068_v12, %v5337_v11  ;;  %v5265_v11 = vld [vmem:[#allocation4 + $0x9a0] sm:$0xf]  ;;  %v6050_v12 = vld [vmem:[#allocation4 + $0x9b4] sm:$0xf0] }
 0x12e   :  { %2864 = vmatpush.bf16.msra.mxu0 %v4066_v24  ;;  %v4929_v24 = vld [vmem:[#allocation4 + $0x700] sm:$0xf] }
 0x12f   :  { %2878 = vmatpush.bf16.msra.mxu1 %v4258_v29  ;;  %v5530_v29 = vor.u32 %v6116_v14, %v5529_v13  ;;  %v4930_v37 = vor.u32 %v5966_v25, %v4929_v24  ;;  %v6385_v13 = vpop.f32.mrf.mxu0  ;;  %v5457_v14 = vld [vmem:[#allocation4 + $0xb20] sm:$0xf]  ;;  %v5266_v24 = vor.u32 %v6050_v12, %v5265_v11  ;;  %v4857_v25 = vld [vmem:[#allocation4 + $0x670] sm:$0xf] }
 0x130   :  { %2892 = vmatpush.bf16.msra.mxu2 %v4450_v30  ;;  %v6014_v30 = vld [vmem:[#allocation4 + $0x894] sm:$0xf0] }
 0x131   :  { %2906 = vmatpush.bf16.msra.mxu3 %v4642_v34  ;;  %v6110_v34 = vld [vmem:[#allocation4 + $0xb94] sm:$0xf0]  ;;  %v5122_v38 = vor.u32 %v6014_v30, %v5121_v26  ;;  %v5948_v26 = vld [vmem:[#allocation4 + $0x684] sm:$0xf0] }
 0x132   :  { %2865 = vmatpush.bf16.msra.mxu0 %v4042_v48  ;;  %v5097_v48 = vld [vmem:[#allocation4 + $0x850] sm:$0xf]  ;;  %v5506_v49 = vor.u32 %v6110_v34, %v5505_v33  ;;  %v6044_v34 = vld [vmem:[#allocation4 + $0x984] sm:$0xf0] }
 0x133   :  { %2879 = vmatpush.bf16.msra.mxu1 %v4234_v54  ;;  %v6056_v54 = vld [vmem:[#allocation4 + $0x9e4] sm:$0xf0]  ;;  %v6387_v30 = vpop.f32.mrf.mxu1  ;;  %v5241_v33 = vld [vmem:[#allocation4 + $0x970] sm:$0xf] }
 0x134   :  { %2893 = vmatpush.bf16.msra.mxu2 %v4426_v56  ;;  %v5481_v56 = vld [vmem:[#allocation4 + $0xb50] sm:$0xf] }
 0x135   :  { %2907 = vmatpush.bf16.msra.mxu3 %v4618_v61  ;;  %2866 = vmatmul.bf16.vlgmr.msra.gmra.mxu0 %v6293_v58  ;;  %v6381_v59 = vpop.f32.mrf.mxu2  ;;  %v4906_v61 = vor.u32 %v5960_v46, %v4905_v45  ;;  %v5242_v46 = vor.u32 %v6044_v34, %v5241_v33 }
 0x136   :  { %2914 = vmatpush.bf16.msrb.mxu0 %v4978_v62  ;;  %2880 = vmatmul.bf16.vlgmr.msra.gmra.mxu1 %v6299_v10  ;;  %v6383_v62 = vpop.f32.mrf.mxu3 }
 0x137   :  { %2928 = vmatpush.bf16.msrb.mxu1 %v5170_v63  ;;  %2894 = vmatmul.bf16.vlgmr.msra.gmra.mxu2 %v6295_v1  ;;  %v5098_v63 = vor.u32 %v6008_v51, %v5097_v48  ;;  %v4833_v48 = vld [vmem:[#allocation4 + $0x640] sm:$0xf] }
 0x138   :  { %2942 = vmatpush.bf16.msrb.mxu2 %v5362_v0  ;;  %2908 = vmatmul.bf16.vlgmr.msra.gmra.mxu3 %v6301_v17  ;;  %v5290_v0 = vor.u32 %v6056_v54, %v5289_v53  ;;  %v5025_v51 = vld [vmem:[#allocation4 + $0x7c0] sm:$0xf] }
 0x139   :  { %2956 = vmatpush.bf16.msrb.mxu3 %v5554_v8  ;;  %v5482_v8 = vor.u32 %v6104_v57, %v5481_v56  ;;  %v5990_v56 = vld [vmem:[#allocation4 + $0x7d4] sm:$0xf0]  ;;  %v5217_v57 = vld [vmem:[#allocation4 + $0x940] sm:$0xf] }
 0x13a   :  { %2915 = vmatpush.bf16.msrb.mxu0 %v4954_v16  ;;  %v6098_v16 = vld [vmem:[#allocation4 + $0xb34] sm:$0xf0]  ;;  %v5026_v11 = vor.u32 %v5990_v56, %v5025_v51 }
 0x13b   :  { %2929 = vmatpush.bf16.msrb.mxu1 %v5146_v21  ;;  %v4882_v21 = vor.u32 %v5954_v3, %v4881_v2  ;;  %v5458_v31 = vor.u32 %v6098_v16, %v5457_v14  ;;  %v6086_v2 = vld [vmem:[#allocation4 + $0xad4] sm:$0xf0]  ;;  %v5001_v14 = vld [vmem:[#allocation4 + $0x790] sm:$0xf]  ;;  %v5984_v16 = vld [vmem:[#allocation4 + $0x7a4] sm:$0xf0]  ;;  %v6395_v33 = vpop.f32.mrf.mxu1 }
 0x13c   :  { %2943 = vmatpush.bf16.msrb.mxu2 %v5338_v22  ;;  %v5074_v22 = vor.u32 %v6002_v9, %v5073_v5  ;;  %v4809_v5 = vld [vmem:[#allocation4 + $0x610] sm:$0xf]  ;;  %v6393_v9 = vpop.f32.mrf.mxu0 }
 0x13d   :  { %2957 = vmatpush.bf16.msrb.mxu3 %v5530_v29  ;;  %v5049_v29 = vld [vmem:[#allocation4 + $0x7f0] sm:$0xf]  ;;  %v6389_v53 = vpop.f32.mrf.mxu2 }
 0x13e   :  { %2916 = vmatpush.bf16.msrb.mxu0 %v4930_v37  ;;  %v5433_v37 = vld [vmem:[#allocation4 + $0xaf0] sm:$0xf]  ;;  %v5050_v45 = vor.u32 %v5996_v32, %v5049_v29  ;;  %7713 = vst [vmem:[#allocation16_spill] sm:$0xff] %v6389_v53  ;;  %v5783_v29 = vld [vmem:[#allocation4 + $0x164] sm:$0xf] }
 0x13f   :  { %2930 = vmatpush.bf16.msrb.mxu1 %v5122_v38  ;;  %v6092_v38 = vld [vmem:[#allocation4 + $0xb04] sm:$0xf0]  ;;  %v5831_v32 = vld [vmem:[#allocation4 + $0x2e4] sm:$0xf] }
 0x140   :  { %2944 = vmatpush.bf16.msrb.mxu2 %v5314_v41  ;;  %v4858_v41 = vor.u32 %v5948_v26, %v4857_v25  ;;  %v5434_v54 = vor.u32 %v6092_v38, %v5433_v37  ;;  %v5385_v25 = vld [vmem:[#allocation4 + $0xa90] sm:$0xf]  ;;  %v6080_v26 = vld [vmem:[#allocation4 + $0xaa4] sm:$0xf0]  ;;  %v4403_v37 = vld [vmem:[#allocation4 + $0x2f8] sm:$0xf0] }
 0x141   :  { %2958 = vmatpush.bf16.msrb.mxu3 %v5506_v49  ;;  %v5942_v49 = vld [vmem:[#allocation4 + $0x654] sm:$0xf0]  ;;  %v5879_v38 = vld [vmem:[#allocation4 + $0x464] sm:$0xf]  ;;  %v5386_v51 = vor.u32 %v6080_v26, %v5385_v25  ;;  %v4406_v56 = vor.u32 %v5831_v32, %v4403_v37 }
 0x142   :  { %2917 = vmatpush.bf16.msrb.mxu0 %v4906_v61  ;;  %v6038_v61 = vld [vmem:[#allocation4 + $0x954] sm:$0xf0]  ;;  %v4834_v3 = vor.u32 %v5942_v49, %v4833_v48  ;;  %v5927_v48 = vld [vmem:[#allocation4 + $0x5e4] sm:$0xf]  ;;  %v4787_v49 = vld [vmem:[#allocation4 + $0x5f8] sm:$0xf0] }
 0x143   :  { %2931 = vmatpush.bf16.msrb.mxu1 %v5098_v63  ;;  %v6391_v63 = vpop.f32.mrf.mxu3  ;;  %v5218_v12 = vor.u32 %v6038_v61, %v5217_v57  ;;  %v5777_v61 = vld [vmem:[#allocation4 + $0x134] sm:$0xf]  ;;  %v5771_v26 = vld [vmem:[#allocation4 + $0x104] sm:$0xf] }
 0x144   :  { %2945 = vmatpush.bf16.msrb.mxu2 %v5290_v0  ;;  %7714 = vst [vmem:[#allocation17_spill] sm:$0xff] %v6391_v63  ;;  %v5409_v0 = vld [vmem:[#allocation4 + $0xac0] sm:$0xf]  ;;  %v5867_v37 = vld [vmem:[#allocation4 + $0x404] sm:$0xf] }
 0x145   :  { %2959 = vmatpush.bf16.msrb.mxu3 %v5482_v8  ;;  %v5936_v8 = vld [vmem:[#allocation4 + $0x624] sm:$0xf0]  ;;  %v6397_v63 = vpop.f32.mrf.mxu2 }
 0x146   :  { %2918 = vmatpush.bf16.msrb.mxu0 %v4882_v21  ;;  %v5193_v21 = vld [vmem:[#allocation4 + $0x910] sm:$0xf]  ;;  %v4810_v34 = vor.u32 %v5936_v8, %v4809_v5  ;;  %v4379_v5 = vld [vmem:[#allocation4 + $0x2c8] sm:$0xf0]  ;;  %v5873_v8 = vld [vmem:[#allocation4 + $0x434] sm:$0xf] }
 0x147   :  { %2932 = vmatpush.bf16.msrb.mxu1 %v5074_v22  ;;  %v5410_v22 = vor.u32 %v6086_v2, %v5409_v0  ;;  %v4187_v0 = vld [vmem:[#allocation4 + $0x148] sm:$0xf0]  ;;  %v5825_v2 = vld [vmem:[#allocation4 + $0x2b4] sm:$0xf] }
 0x148   :  { %2946 = vmatpush.bf16.msrb.mxu2 %v5266_v24  ;;  %v6032_v24 = vld [vmem:[#allocation4 + $0x924] sm:$0xf0] }
 0x149   :  { %2960 = vmatpush.bf16.msrb.mxu3 %v5458_v31  ;;  %v4211_v31 = vld [vmem:[#allocation4 + $0x178] sm:$0xf0] }
 0x14a   :  { %2919 = vmatpush.bf16.msrb.mxu0 %v4858_v41  ;;  %v4595_v41 = vld [vmem:[#allocation4 + $0x478] sm:$0xf0] }
 0x14b   :  { %2933 = vmatpush.bf16.msrb.mxu1 %v5050_v45  ;;  %v5002_v45 = vor.u32 %v5984_v16, %v5001_v14  ;;  %v4598_v57 = vor.u32 %v5879_v38, %v4595_v41  ;;  %v5921_v14 = vld [vmem:[#allocation4 + $0x5b4] sm:$0xf]  ;;  %v4763_v16 = vld [vmem:[#allocation4 + $0x5c8] sm:$0xf0]  ;;  %v4547_v38 = vld [vmem:[#allocation4 + $0x418] sm:$0xf0] }
 0x14c   :  { %2947 = vmatpush.bf16.msrb.mxu2 %v5242_v46  ;;  %v5194_v46 = vor.u32 %v6032_v24, %v5193_v21  ;;  %v4190_v21 = vor.u32 %v5777_v61, %v4187_v0  ;;  %v4382_v24 = vor.u32 %v5825_v2, %v4379_v5  ;;  %v4766_v32 = vor.u32 %v5921_v14, %v4763_v16  ;;  %v5915_v41 = vld [vmem:[#allocation4 + $0x584] sm:$0xf]  ;;  %v4331_v0 = vld [vmem:[#allocation4 + $0x268] sm:$0xf0]  ;;  %v5861_v2 = vld [vmem:[#allocation4 + $0x3d4] sm:$0xf] }
 0x14d   :  { %2961 = vmatpush.bf16.msrb.mxu3 %v5434_v54  ;;  %v4214_v54 = vor.u32 %v5783_v29, %v4211_v31  ;;  %v4163_v29 = vld [vmem:[#allocation4 + $0x118] sm:$0xf0]  ;;  %v5819_v31 = vld [vmem:[#allocation4 + $0x284] sm:$0xf]  ;;  %v5909_v5 = vld [vmem:[#allocation4 + $0x554] sm:$0xf] }
 0x14e   :  { %2920 = vmatpush.bf16.msrb.mxu0 %v4834_v3  ;;  %v4790_v3 = vor.u32 %v5927_v48, %v4787_v49  ;;  %v4166_v48 = vor.u32 %v5771_v26, %v4163_v29  ;;  %v5759_v26 = vld [vmem:[#allocation4 + $0xa4] sm:$0xf]  ;;  %v4115_v29 = vld [vmem:[#allocation4 + $0xb8] sm:$0xf0] }
 0x14f   :  { %2934 = vmatpush.bf16.msrb.mxu1 %v5026_v11  ;;  %v4571_v11 = vld [vmem:[#allocation4 + $0x448] sm:$0xf0] }
 0x150   :  { %2948 = vmatpush.bf16.msrb.mxu2 %v5218_v12  ;;  %v6399_v12 = vpop.f32.mrf.mxu3  ;;  %v4574_v25 = vor.u32 %v5873_v8, %v4571_v11  ;;  %v4715_v8 = vld [vmem:[#allocation4 + $0x568] sm:$0xf0]  ;;  %v6409_v11 = vpop.f32.mrf.mxu2 }
 0x151   :  { %2962 = vmatpush.bf16.msrb.mxu3 %v5410_v22  ;;  %v6401_v22 = vpop.f32.mrf.mxu0  ;;  %7717 = vst [vmem:[#allocation20_spill] sm:$0xff] %v6409_v11 }
 0x152   :  { %2921 = vmatpush.bf16.msrb.mxu0 %v4810_v34  ;;  %7715 = vst [vmem:[#allocation18_spill] sm:$0xff] %v6401_v22  ;;  %v4355_v34 = vld [vmem:[#allocation4 + $0x298] sm:$0xf0] }
 0x153   :  { %2935 = vmatpush.bf16.msrb.mxu1 %v5002_v45  ;;  %v4739_v45 = vld [vmem:[#allocation4 + $0x598] sm:$0xf0]  ;;  %v4358_v49 = vor.u32 %v5819_v31, %v4355_v34  ;;  %v5807_v31 = vld [vmem:[#allocation4 + $0x224] sm:$0xf] }
 0x154   :  { %2949 = vmatpush.bf16.msrb.mxu2 %v5194_v46  ;;  %v6406_v46 = vpop.f32.mrf.mxu1  ;;  %v4742_v61 = vor.u32 %v5915_v41, %v4739_v45  ;;  %v4307_v34 = vld [vmem:[#allocation4 + $0x238] sm:$0xf0]  ;;  %v5903_v41 = vld [vmem:[#allocation4 + $0x524] sm:$0xf] }
 0x155   :  { %2963 = vmatpush.bf16.msrb.mxu3 %v5386_v51  ;;  %2922 = vmatmul.bf16.vlgmr.msrb.gmra.mxu0 %v6305_v39  ;;  %7716 = vst [vmem:[#allocation19_spill] sm:$0xff] %v6406_v46  ;;  %v4550_v51 = vor.u32 %v5867_v37, %v4547_v38  ;;  %v5855_v37 = vld [vmem:[#allocation4 + $0x3a4] sm:$0xf]  ;;  %v4499_v38 = vld [vmem:[#allocation4 + $0x3b8] sm:$0xf0] }
 0x156   :  { %2970 = vmatpush.bf16.msra.mxu0 %v4214_v54  ;;  %2936 = vmatmul.bf16.vlgmr.msrb.gmra.mxu1 %v6309_v44  ;;  %v5765_v54 = vld [vmem:[#allocation4 + $0xd4] sm:$0xf]  ;;  %v4691_v45 = vld [vmem:[#allocation4 + $0x538] sm:$0xf0] }
 0x157   :  { %2984 = vmatpush.bf16.msra.mxu1 %v4406_v56  ;;  %2950 = vmatmul.bf16.vlgmr.msrb.gmra.mxu2 %v6307_v43  ;;  %v4139_v56 = vld [vmem:[#allocation4 + $0xe8] sm:$0xf0]  ;;  %v4643_v22 = vld [vmem:[#allocation4 + $0x4d8] sm:$0xf0] }
 0x158   :  { %2998 = vmatpush.bf16.msra.mxu2 %v4598_v57  ;;  %2964 = vmatmul.bf16.vlgmr.msrb.gmra.mxu3 %v6311_v47  ;;  %v5813_v57 = vld [vmem:[#allocation4 + $0x254] sm:$0xf]  ;;  %v4142_v14 = vor.u32 %v5765_v54, %v4139_v56  ;;  %v6411_v16 = vpop.f32.mrf.mxu3  ;;  %v4118_v54 = vor.u32 %v5759_v26, %v4115_v29  ;;  %v6417_v11 = vpop.f32.mrf.mxu2  ;;  %v5747_v26 = vld [vmem:[#allocation4 + $0x44] sm:$0xf]  ;;  %v4067_v29 = vld [vmem:[#allocation4 + $0x58] sm:$0xf0] }
 0x159   :  { %3012 = vmatpush.bf16.msra.mxu3 %v4790_v3  ;;  %v4523_v3 = vld [vmem:[#allocation4 + $0x3e8] sm:$0xf0]  ;;  %7718 = vst [vmem:[#allocation21_spill] sm:$0xff] %v6411_v16  ;;  %v5753_v56 = vld [vmem:[#allocation4 + $0x74] sm:$0xf] }
 0x15a   :  { %2971 = vmatpush.bf16.msra.mxu0 %v4190_v21  ;;  %v6413_v21 = vpop.f32.mrf.mxu0  ;;  %v4667_v16 = vld [vmem:[#allocation4 + $0x508] sm:$0xf0]  ;;  %v5975_v47 = vld [vmem:[#allocation4 + $0x764] sm:$0xf]  ;;  %v4979_v43 = vld [vmem:[#allocation4 + $0x778] sm:$0xf0] }
 0x15b   :  { %2985 = vmatpush.bf16.msra.mxu1 %v4382_v24  ;;  %v4334_v24 = vor.u32 %v5813_v57, %v4331_v0  ;;  %v4091_v57 = vld [vmem:[#allocation4 + $0x88] sm:$0xf0]  ;;  %v5801_v0 = vld [vmem:[#allocation4 + $0x1f4] sm:$0xf] }
 0x15c   :  { %2999 = vmatpush.bf16.msra.mxu2 %v4574_v25  ;;  %v4526_v25 = vor.u32 %v5861_v2, %v4523_v3  ;;  %v4694_v2 = vor.u32 %v5903_v41, %v4691_v45  ;;  %v5849_v3 = vld [vmem:[#allocation4 + $0x374] sm:$0xf]  ;;  %v4094_v46 = vor.u32 %v5753_v56, %v4091_v57  ;;  %v5891_v45 = vld [vmem:[#allocation4 + $0x4c4] sm:$0xf]  ;;  %v4043_v57 = vld [vmem:[#allocation4 + $0x28] sm:$0xf0] }
 0x15d   :  { %3013 = vmatpush.bf16.msra.mxu3 %v4766_v32  ;;  %v4718_v32 = vor.u32 %v5909_v5, %v4715_v8  ;;  %v4475_v5 = vld [vmem:[#allocation4 + $0x388] sm:$0xf0]  ;;  %v5897_v8 = vld [vmem:[#allocation4 + $0x4f4] sm:$0xf] }
 0x15e   :  { %2972 = vmatpush.bf16.msra.mxu0 %v4166_v48  ;;  %v6415_v48 = vpop.f32.mrf.mxu1  ;;  %v5741_v56 = vld [vmem:[#allocation4 + $0x14] sm:$0xf] }
 0x15f   :  { %2986 = vmatpush.bf16.msra.mxu1 %v4358_v49  ;;  %v4310_v49 = vor.u32 %v5807_v31, %v4307_v34  ;;  %v5795_v31 = vld [vmem:[#allocation4 + $0x1c4] sm:$0xf]  ;;  %v4259_v34 = vld [vmem:[#allocation4 + $0x1d8] sm:$0xf0] }
 0x160   :  { %3000 = vmatpush.bf16.msra.mxu2 %v4550_v51  ;;  %v4502_v51 = vor.u32 %v5855_v37, %v4499_v38  ;;  %v5843_v37 = vld [vmem:[#allocation4 + $0x344] sm:$0xf]  ;;  %v4451_v38 = vld [vmem:[#allocation4 + $0x358] sm:$0xf0] }
 0x161   :  { %3014 = vmatpush.bf16.msra.mxu3 %v4742_v61  ;;  %v4283_v61 = vld [vmem:[#allocation4 + $0x208] sm:$0xf0] }
 0x162   :  { %2973 = vmatpush.bf16.msra.mxu0 %v4142_v14  ;;  %v6419_v14 = vpop.f32.mrf.mxu3  ;;  %v6421_v41 = vpop.f32.mrf.mxu0 }
 0x163   :  { %2987 = vmatpush.bf16.msra.mxu1 %v4334_v24  ;;  %v4286_v24 = vor.u32 %v5801_v0, %v4283_v61  ;;  %7719 = vst [vmem:[#allocation22_spill] sm:$0xff] %v6421_v41  ;;  %v5789_v0 = vld [vmem:[#allocation4 + $0x194] sm:$0xf]  ;;  %v4235_v61 = vld [vmem:[#allocation4 + $0x1a8] sm:$0xf0] }
 0x164   :  { %3001 = vmatpush.bf16.msra.mxu2 %v4526_v25  ;;  %v4478_v25 = vor.u32 %v5849_v3, %v4475_v5  ;;  %v5837_v3 = vld [vmem:[#allocation4 + $0x314] sm:$0xf]  ;;  %v4427_v5 = vld [vmem:[#allocation4 + $0x328] sm:$0xf0] }
 0x165   :  { %3015 = vmatpush.bf16.msra.mxu3 %v4718_v32  ;;  %v4670_v32 = vor.u32 %v5897_v8, %v4667_v16  ;;  %v4646_v16 = vor.u32 %v5891_v45, %v4643_v22  ;;  %v5885_v8 = vld [vmem:[#allocation4 + $0x494] sm:$0xf]  ;;  %v4619_v41 = vld [vmem:[#allocation4 + $0x4a8] sm:$0xf0] }
 0x166   :  { %2974 = vmatpush.bf16.msra.mxu0 %v4118_v54  ;;  %v4070_v54 = vor.u32 %v5747_v26, %v4067_v29  ;;  %v4046_v26 = vor.u32 %v5741_v56, %v4043_v57  ;;  %v5171_v29 = vld [vmem:[#allocation4 + $0x8f8] sm:$0xf0]  ;;  %v4622_v22 = vor.u32 %v5885_v8, %v4619_v41  ;;  %v4955_v56 = vld [vmem:[#allocation4 + $0x748] sm:$0xf0]  ;;  %v6017_v57 = vld [vmem:[#allocation4 + $0x8b4] sm:$0xf] }
 0x167   :  { %2988 = vmatpush.bf16.msra.mxu1 %v4310_v49  ;;  %v4262_v49 = vor.u32 %v5795_v31, %v4259_v34  ;;  %v4238_v31 = vor.u32 %v5789_v0, %v4235_v61  ;;  %v4430_v34 = vor.u32 %v5837_v3, %v4427_v5  ;;  %v5339_v0 = vld [vmem:[#allocation4 + $0xa48] sm:$0xf0]  ;;  %v6113_v3 = vld [vmem:[#allocation4 + $0xbb4] sm:$0xf]  ;;  %v5963_v5 = vld [vmem:[#allocation4 + $0x704] sm:$0xf] }
 0x168   :  { %3002 = vmatpush.bf16.msra.mxu2 %v4502_v51  ;;  %v4454_v51 = vor.u32 %v5843_v37, %v4451_v38  ;;  %v6119_v37 = vld [vmem:[#allocation4 + $0xbe4] sm:$0xf]  ;;  %v5555_v38 = vld [vmem:[#allocation4 + $0xbf8] sm:$0xf0] }
 0x169   :  { %3016 = vmatpush.bf16.msra.mxu3 %v4694_v2  ;;  %v6423_v2 = vpop.f32.mrf.mxu1  ;;  %v5558_v53 = vor.u32 %v6119_v37, %v5555_v38  ;;  %v4931_v8 = vld [vmem:[#allocation4 + $0x718] sm:$0xf0] }
 0x16a   :  { %2975 = vmatpush.bf16.msra.mxu0 %v4094_v46  ;;  %7720 = vst [vmem:[#allocation23_spill] sm:$0xff] %v6423_v2  ;;  %v6023_v46 = vld [vmem:[#allocation4 + $0x8e4] sm:$0xf]  ;;  %v6425_v2 = vpop.f32.mrf.mxu2  ;;  %v6427_v45 = vpop.f32.mrf.mxu3  ;;  %v5507_v37 = vld [vmem:[#allocation4 + $0xb98] sm:$0xf0] }
 0x16b   :  { %2989 = vmatpush.bf16.msra.mxu1 %v4286_v24  ;;  %v6071_v24 = vld [vmem:[#allocation4 + $0xa64] sm:$0xf]  ;;  %v5174_v44 = vor.u32 %v6023_v46, %v5171_v29  ;;  %v6429_v61 = vpop.f32.mrf.mxu0 }
 0x16c   :  { %3003 = vmatpush.bf16.msra.mxu2 %v4478_v25  ;;  %v5363_v25 = vld [vmem:[#allocation4 + $0xa78] sm:$0xf0]  ;;  %v6011_v46 = vld [vmem:[#allocation4 + $0x884] sm:$0xf] }
 0x16d   :  { %3017 = vmatpush.bf16.msra.mxu3 %v4670_v32  ;;  %v4982_v32 = vor.u32 %v5975_v47, %v4979_v43  ;;  %v5366_v39 = vor.u32 %v6071_v24, %v5363_v25  ;;  %v5123_v24 = vld [vmem:[#allocation4 + $0x898] sm:$0xf0]  ;;  %v6059_v25 = vld [vmem:[#allocation4 + $0xa04] sm:$0xf] }
 0x16e   :  { %2976 = vmatpush.bf16.msra.mxu0 %v4070_v54  ;;  %v5969_v54 = vld [vmem:[#allocation4 + $0x734] sm:$0xf] }
 0x16f   :  { %2990 = vmatpush.bf16.msra.mxu1 %v4262_v49  ;;  %v5147_v49 = vld [vmem:[#allocation4 + $0x8c8] sm:$0xf0]  ;;  %v4958_v43 = vor.u32 %v5969_v54, %v4955_v56 }
 0x170   :  { %3004 = vmatpush.bf16.msra.mxu2 %v4454_v51  ;;  %v6065_v51 = vld [vmem:[#allocation4 + $0xa34] sm:$0xf]  ;;  %v5150_v47 = vor.u32 %v6017_v57, %v5147_v49  ;;  %v5483_v57 = vld [vmem:[#allocation4 + $0xb68] sm:$0xf0] }
 0x171   :  { %3018 = vmatpush.bf16.msra.mxu3 %v4646_v16  ;;  %v5531_v16 = vld [vmem:[#allocation4 + $0xbc8] sm:$0xf0]  ;;  %v5342_v41 = vor.u32 %v6065_v51, %v5339_v0 }
 0x172   :  { %2977 = vmatpush.bf16.msra.mxu0 %v4046_v26  ;;  %v6431_v26 = vpop.f32.mrf.mxu1  ;;  %v5534_v29 = vor.u32 %v6113_v3, %v5531_v16  ;;  %v6443_v54 = vpop.f32.mrf.mxu2 }
 0x173   :  { %2991 = vmatpush.bf16.msra.mxu1 %v4238_v31  ;;  %v5315_v31 = vld [vmem:[#allocation4 + $0xa18] sm:$0xf0]  ;;  %v6445_v56 = vpop.f32.mrf.mxu3  ;;  %v6450_v0 = vpop.f32.mrf.mxu0 }
 0x174   :  { %3005 = vmatpush.bf16.msra.mxu2 %v4430_v34  ;;  %v6107_v34 = vld [vmem:[#allocation4 + $0xb84] sm:$0xf]  ;;  %v5318_v38 = vor.u32 %v6059_v25, %v5315_v31 }
 0x175   :  { %3019 = vmatpush.bf16.msra.mxu3 %v4622_v22  ;;  %2978 = vmatmul.bf16.vlgmr.msra.gmra.mxu0 %v6293_v58  ;;  %v5957_v22 = vld [vmem:[#allocation4 + $0x6d4] sm:$0xf] }
 0x176   :  { %3026 = vmatpush.bf16.msrb.mxu0 %v4982_v32  ;;  %2992 = vmatmul.bf16.vlgmr.msra.gmra.mxu1 %v6299_v10  ;;  %v4907_v32 = vld [vmem:[#allocation4 + $0x6e8] sm:$0xf0]  ;;  %v6005_v58 = vld [vmem:[#allocation4 + $0x854] sm:$0xf] }
 0x177   :  { %3040 = vmatpush.bf16.msrb.mxu1 %v5174_v44  ;;  %3006 = vmatmul.bf16.vlgmr.msra.gmra.mxu2 %v6295_v1  ;;  %v2546_v44 = vadd.f32 %v6378_v35, %v6373_v20  ;;  %v2658_v1 = vadd.f32 %v6415_v48, %v6413_v21  ;;  %v6053_v20 = vld [vmem:[#allocation4 + $0x9d4] sm:$0xf]  ;;  %v5291_v35 = vld [vmem:[#allocation4 + $0x9e8] sm:$0xf0]  ;;  %v4910_v49 = vor.u32 %v5957_v22, %v4907_v32 }
 0x178   :  { %3054 = vmatpush.bf16.msrb.mxu2 %v5366_v39  ;;  %3020 = vmatmul.bf16.vlgmr.msra.gmra.mxu3 %v6301_v17  ;;  %v2434_v39 = vadd.f32 %v6339_v52, %v6337_v36  ;;  %v5126_v17 = vor.u32 %v6011_v46, %v5123_v24  ;;  %v5510_v36 = vor.u32 %v6107_v34, %v5507_v37  ;;  %v5099_v52 = vld [vmem:[#allocation4 + $0x868] sm:$0xf0]  ;;  %v6101_v10 = vld [vmem:[#allocation4 + $0xb54] sm:$0xf]  ;;  %v6047_v46 = vld [vmem:[#allocation4 + $0x9a4] sm:$0xf] }
 0x179   :  { %3068 = vmatpush.bf16.msrb.mxu3 %v5558_v53  ;;  %v4934_v53 = vor.u32 %v5963_v5, %v4931_v8  ;;  %v2560_v48 = vadd.f32 %v6381_v59, %v2546_v44  ;;  %v2672_v51 = vadd.f32 %v6417_v11, %v2658_v1  ;;  %v5102_v3 = vor.u32 %v6005_v58, %v5099_v52  ;;  %v5075_v8 = vld [vmem:[#allocation4 + $0x838] sm:$0xf0]  ;;  %v4859_v1 = vld [vmem:[#allocation4 + $0x688] sm:$0xf0]  ;;  %v6041_v22 = vld [vmem:[#allocation4 + $0x974] sm:$0xf] }
 0x17a   :  { %3027 = vmatpush.bf16.msrb.mxu0 %v4958_v43  ;;  %v2448_v21 = vadd.f32 %v6341_v4, %v2434_v39  ;;  %v5294_v16 = vor.u32 %v6053_v20, %v5291_v35  ;;  %v5951_v43 = vld [vmem:[#allocation4 + $0x6a4] sm:$0xf]  ;;  %v5486_v5 = vor.u32 %v6101_v10, %v5483_v57  ;;  %v5267_v4 = vld [vmem:[#allocation4 + $0x9b8] sm:$0xf0]  ;;  %v2436_v11 = vadd.f32 %v6351_v27, %v6346_v18  ;;  %v6456_v31 = vpop.f32.mrf.mxu1  ;;  %v5243_v18 = vld [vmem:[#allocation4 + $0x988] sm:$0xf0] }
 0x17b   :  { %3041 = vmatpush.bf16.msrb.mxu1 %v5150_v47  ;;  %v4883_v47 = vld [vmem:[#allocation4 + $0x6b8] sm:$0xf0]  ;;  %v2574_v25 = vadd.f32 %v6383_v62, %v2560_v48  ;;  %v2686_v37 = vadd.f32 %v6419_v14, %v2672_v51  ;;  %v5270_v44 = vor.u32 %v6047_v46, %v5267_v4  ;;  %v6089_v27 = vld [vmem:[#allocation4 + $0xaf4] sm:$0xf]  ;;  %v5435_v62 = vld [vmem:[#allocation4 + $0xb08] sm:$0xf0]  ;;  %v6465_v35 = vpop.f32.mrf.mxu3  ;;  %v5246_v57 = vor.u32 %v6041_v22, %v5243_v18 }
 0x17c   :  { %3055 = vmatpush.bf16.msrb.mxu2 %v5342_v41  ;;  %v5999_v41 = vld [vmem:[#allocation4 + $0x824] sm:$0xf]  ;;  %v5459_v59 = vld [vmem:[#allocation4 + $0xb38] sm:$0xf0]  ;;  %v2462_v24 = vadd.f32 %v6343_v6, %v2448_v21  ;;  %v4886_v34 = vor.u32 %v5951_v43, %v4883_v47  ;;  %v2450_v32 = vadd.f32 %v6353_v42, %v2436_v11  ;;  %v2755_v21 = vpop.f32.mrf.mxu0  ;;  %v5981_v11 = vld [vmem:[#allocation4 + $0x794] sm:$0xf] }
 0x17d   :  { %3069 = vmatpush.bf16.msrb.mxu3 %v5534_v29  ;;  %v6095_v29 = vld [vmem:[#allocation4 + $0xb24] sm:$0xf]  ;;  %v5078_v39 = vor.u32 %v5999_v41, %v5075_v8  ;;  %v2588_v14 = vadd.f32 %v6393_v9, %v2574_v25  ;;  %v2700_v20 = vadd.f32 %v6429_v61, %v2686_v37  ;;  %v5027_v51 = vld [vmem:[#allocation4 + $0x7d8] sm:$0xf0]  ;;  %v5195_v37 = vld [vmem:[#allocation4 + $0x928] sm:$0xf0] }
 0x17e   :  { %3028 = vmatpush.bf16.msrb.mxu0 %v4934_v53  ;;  %v5945_v53 = vld [vmem:[#allocation4 + $0x674] sm:$0xf]  ;;  %v5462_v6 = vor.u32 %v6095_v29, %v5459_v59  ;;  %v2476_v58 = vadd.f32 %v6357_v55, %v2462_v24  ;;  %v5939_v48 = vld [vmem:[#allocation4 + $0x644] sm:$0xf]  ;;  %v5438_v55 = vor.u32 %v6089_v27, %v5435_v62  ;;  %v5411_v43 = vld [vmem:[#allocation4 + $0xad8] sm:$0xf0]  ;;  %v2464_v47 = vadd.f32 %v6355_v50, %v2450_v32 }
 0x17f   :  { %3042 = vmatpush.bf16.msrb.mxu1 %v5126_v17  ;;  %v5993_v17 = vld [vmem:[#allocation4 + $0x7f4] sm:$0xf]  ;;  %v4862_v52 = vor.u32 %v5945_v53, %v4859_v1  ;;  %v5987_v42 = vld [vmem:[#allocation4 + $0x7c4] sm:$0xf]  ;;  %v2602_v41 = vadd.f32 %v6395_v33, %v2588_v14  ;;  %v2714_v46 = vadd.f32 %v6431_v26, %v2700_v20  ;;  %v4811_v24 = vld [vmem:[#allocation4 + $0x628] sm:$0xf0]  ;;  %v2548_v32 = vadd.f32 %v6387_v30, %v6385_v13 }
 0x180   :  { %3056 = vmatpush.bf16.msrb.mxu2 %v5318_v38  ;;  %v5051_v38 = vld [vmem:[#allocation4 + $0x808] sm:$0xf0]  ;;  %v6035_v9 = vld [vmem:[#allocation4 + $0x944] sm:$0xf]  ;;  %v2490_v61 = vadd.f32 %v6359_v7, %v2476_v58  ;;  %v5030_v4 = vor.u32 %v5987_v42, %v5027_v51  ;;  %v5933_v59 = vld [vmem:[#allocation4 + $0x614] sm:$0xf]  ;;  %v2478_v25 = vadd.f32 %v6365_v40, %v2464_v47 }
 0x181   :  { %3070 = vmatpush.bf16.msrb.mxu3 %v5510_v36  ;;  %v6462_v36 = vpop.f32.mrf.mxu2  ;;  %v5054_v10 = vor.u32 %v5993_v17, %v5051_v38  ;;  %v6029_v7 = vld [vmem:[#allocation4 + $0x914] sm:$0xf]  ;;  %v2616_v26 = vadd.f32 %v6397_v63, %v2602_v41  ;;  %v4814_v53 = vor.u32 %v5933_v59, %v4811_v24  ;;  %v2728_v17 = vadd.f32 %v6443_v54, %v2714_v46  ;;  %v7722_v20 = vld [vmem:[#allocation12_spill] sm:$0xff]  ;;  %v7723_v13 = vld [vmem:[#allocation14_spill] sm:$0xff] }
 0x182   :  { %3029 = vmatpush.bf16.msrb.mxu0 %v4910_v49  ;;  %v4835_v49 = vld [vmem:[#allocation4 + $0x658] sm:$0xf0]  ;;  %v2769_v8 = vpop.f32.mrf.mxu1  ;;  %v6077_v33 = vld [vmem:[#allocation4 + $0xa94] sm:$0xf]  ;;  %v5198_v40 = vor.u32 %v6029_v7, %v5195_v37  ;;  %v2492_v22 = vadd.f32 %v6367_v60, %v2478_v25  ;;  %v6517_v59 = vld [vmem:[%s7687_s2 + $0x8] sm:$0xff]  ;;  %v6245_v25 = vmov 0  }
 0x183   :  { %3043 = vmatpush.bf16.msrb.mxu1 %v5102_v3  ;;  %v5219_v3 = vld [vmem:[#allocation4 + $0x958] sm:$0xf0]  ;;  %v2797_v38 = vpop.f32.mrf.mxu3  ;;  %v2770_v18 = vadd.f32 %v2769_v8, %v2755_v21  ;;  %v2630_v54 = vadd.f32 %v6399_v12, %v2616_v26  ;;  %v2742_v58 = vadd.f32 %v6445_v56, %v2728_v17  ;;  %v7724_v30 = vld [vmem:[#allocation13_spill] sm:$0xff]  ;;  %v7725_v12 = vld [vmem:[#allocation15_spill] sm:$0xff]  ;;  %6132 = vset.pattern.permute.xlu0 %v6245_v25 }
 0x184   :  { %3057 = vmatpush.bf16.msrb.mxu2 %v5294_v16  ;;  %v6083_v16 = vld [vmem:[#allocation4 + $0xac4] sm:$0xf]  ;;  %v5222_v29 = vor.u32 %v6035_v9, %v5219_v3  ;;  %v6476_v62 = vpop.f32.mrf.mxu0  ;;  %v2506_v63 = vadd.f32 %v6369_v15, %v2492_v22  ;;  %v7721_v15 = vld [vmem:[#allocation16_spill] sm:$0xff]  ;;  %v7726_v21 = vld [vmem:[#allocation17_spill] sm:$0xff]  ;;  %6133 = vset.pattern.permute.xlu1 %v6245_v25 }
 0x185   :  { %3071 = vmatpush.bf16.msrb.mxu3 %v5486_v5  ;;  %v4838_v5 = vor.u32 %v5939_v48, %v4835_v49  ;;  %v5414_v50 = vor.u32 %v6083_v16, %v5411_v43  ;;  %v7728_v3 = vld [vmem:[#allocation19_spill] sm:$0xff]  ;;  %v7729_v43 = vld [vmem:[#allocation20_spill] sm:$0xff]  ;;  %6134 = vset.pattern.permute.xlu2 %v6245_v25  ;;  %v6550_v7 = vld [vmem:[%s7687_s2 + $0x18] sm:$0xff] }
 0x186   :  { %3030 = vmatpush.bf16.msrb.mxu0 %v4886_v34  ;;  %v5003_v34 = vld [vmem:[#allocation4 + $0x7a8] sm:$0xf0]  ;;  %v6503_v8 = vld [vmem:[%s7687_s2] sm:$0xff]  ;;  %v6530_v24 = vld [vmem:[%s7687_s2 + $0x10] sm:$0xff] }
 0x187   :  { %3044 = vmatpush.bf16.msrb.mxu1 %v5078_v39  ;;  %v5387_v39 = vld [vmem:[#allocation4 + $0xaa8] sm:$0xf0] }
 0x188   :  { %3058 = vmatpush.bf16.msrb.mxu2 %v5270_v44  ;;  %v2504_v44 = vadd.f32 %v6361_v23, %v2490_v61  ;;  %v5390_v27 = vor.u32 %v6077_v33, %v5387_v39  ;;  %v3083_v37 = vld [vmem:[%s7688_s3 + $0x8] sm:$0xff] }
 0x189   :  { %3072 = vmatpush.bf16.msrb.mxu3 %v5462_v6  ;;  %v2783_v1 = vpop.f32.mrf.mxu2  ;;  %v5006_v6 = vor.u32 %v5981_v11, %v5003_v34  ;;  %v3082_v11 = vld [vmem:[%s7688_s3] sm:$0xff]  ;;  %v3087_v25 = vld [vmem:[%s7688_s3 + $0x28] sm:$0xff] }
 0x18a   :  { %3031 = vmatpush.bf16.msrb.mxu0 %v4862_v52  ;;  %v2518_v23 = vadd.f32 %v6363_v28, %v2504_v44  ;;  %v2784_v60 = vadd.f32 %v2783_v1, %v2770_v18  ;;  %v6484_v14 = vpop.f32.mrf.mxu1  ;;  %v2520_v28 = vadd.f32 %v6371_v19, %v2506_v63  ;;  %v2562_v52 = vadd.f32 %v7721_v15, %v2548_v32  ;;  %v7727_v19 = vld [vmem:[#allocation18_spill] sm:$0xff]  ;;  %v3084_v1 = vld [vmem:[%s7688_s3 + $0x10] sm:$0xff] }
 0x18b   :  { %3045 = vmatpush.bf16.msrb.mxu1 %v5054_v10  ;;  %3095 = vperm.xlu0 %6132, %v3082_v11   ;;  %v7731_v18 = vld [vmem:[#allocation22_spill] sm:$0xff]  ;;  %v6605_v15 = vld [vmem:[%s7687_s2 + $0x30] sm:$0xff] }
 0x18c   :  { %3059 = vmatpush.bf16.msrb.mxu2 %v5246_v57  ;;  %v2798_v56 = vadd.f32 %v2797_v38, %v2784_v60  ;;  %v6494_v57 = vpop.f32.mrf.mxu3  ;;  %v2576_v48 = vadd.f32 %v7726_v21, %v2562_v52  ;;  %3105 = vperm.xlu1 %6133, %v3084_v1   ;;  %v6586_v38 = vld [vmem:[%s7687_s2 + $0x28] sm:$0xff]  ;;  %v3085_v32 = vld [vmem:[%s7688_s3 + $0x18] sm:$0xff] }
 0x18d   :  { %3073 = vmatpush.bf16.msrb.mxu3 %v5438_v55  ;;  %v3089_v11 = vld [vmem:[%s7688_s3 + $0x38] sm:$0xff] }
 0x18e   :  { %3032 = vmatpush.bf16.msrb.mxu0 %v4838_v5  ;;  %v2590_v42 = vadd.f32 %v7727_v19, %v2576_v48 }
 0x18f   :  { %3046 = vmatpush.bf16.msrb.mxu1 %v5030_v4  ;;  %v7730_v4 = vld [vmem:[#allocation21_spill] sm:$0xff] }
 0x190   :  { %3060 = vmatpush.bf16.msrb.mxu2 %v5222_v29  ;;  %v2604_v16 = vadd.f32 %v7728_v3, %v2590_v42 }
 0x191   :  { %3074 = vmatpush.bf16.msrb.mxu3 %v5414_v50  ;;  %v6492_v10 = vpop.f32.mrf.mxu2 }
 0x192   :  { %3033 = vmatpush.bf16.msrb.mxu0 %v4814_v53  ;;  %v2811_v49 = vpop.f32.mrf.mxu0  ;;  %v2618_v47 = vadd.f32 %v7729_v43, %v2604_v16  ;;  %v6570_v53 = vld [vmem:[%s7687_s2 + $0x20] sm:$0xff] }
 0x193   :  { %3047 = vmatpush.bf16.msrb.mxu1 %v5006_v6  ;;  %v2812_v55 = vadd.f32 %v2811_v49, %v2798_v56  ;;  %v2825_v51 = vpop.f32.mrf.mxu1  ;;  %3100 = vperm.xlu0 %6132, %v3083_v37   ;;  %v6621_v49 = vld [vmem:[%s7687_s2 + $0x38] sm:$0xff]  ;;  %v6636_v43 = vld [vmem:[%s7687_s2 + $0x40] sm:$0xff]  ;;  %v3091_v37 = vld [vmem:[%s7688_s3 + $0x48] sm:$0x1f] }
 0x194   :  { %3061 = vmatpush.bf16.msrb.mxu2 %v5198_v40  ;;  %v2632_v29 = vadd.f32 %v7730_v4, %v2618_v47  ;;  %3110 = vperm.xlu1 %6133, %v3085_v32   ;;  %v6652_v4 = vld [vmem:[%s7687_s2 + $0x48] sm:$0x1f] }
 0x195   :  { %3075 = vmatpush.bf16.msrb.mxu3 %v5390_v27  ;;  %3034 = vmatmul.bf16.vlgmr.msrb.gmra.mxu0 %v7722_v20  ;;  %v2826_v9 = vadd.f32 %v2825_v51, %v2812_v55  ;;  %v7732_v27 = vld [vmem:[#allocation23_spill] sm:$0xff] }
 0x196   :  { %3346 = vmatpush.msra.mxu0 %v2518_v23  ;;  %3048 = vmatmul.bf16.vlgmr.msrb.gmra.mxu1 %v7723_v13  ;;  %v2660_v23 = vadd.f32 %v7732_v27, %v7731_v18 }
 0x197   :  { %3393 = vmatpush.msra.mxu1 %v2630_v54  ;;  %3062 = vmatmul.bf16.vlgmr.msrb.gmra.mxu2 %v7724_v30 }
 0x198   :  { %3440 = vmatpush.msra.mxu2 %v2742_v58  ;;  %3076 = vmatmul.bf16.vlgmr.msrb.gmra.mxu3 %v7725_v12  ;;  %v2674_v58 = vadd.f32 %v6425_v2, %v2660_v23 }
 0x19a   :  { %3688 = vmatpush.msrb.mxu2 %v2520_v28  ;;  %v2839_v61 = vpop.f32.mrf.mxu2  ;;  %v6543_v50 = vpop.f32.mrf.mxu0  ;;  %v2688_v20 = vadd.f32 %v6427_v45, %v2674_v58 }
 0x19b   :  { %v2840_v41 = vadd.f32 %v2839_v61, %v2826_v9  ;;  %v2853_v5 = vpop.f32.mrf.mxu3  ;;  %v6545_v34 = vpop.f32.mrf.mxu1 }
 0x19c   :  { %v2702_v2 = vadd.f32 %v6450_v0, %v2688_v20  ;;  %3130 = vperm.xlu1 %6133, %v3089_v11  }
 0x19d   :  { %v2854_v46 = vadd.f32 %v2853_v5, %v2840_v41 }
 0x19e   :  { %v2716_v48 = vadd.f32 %v6456_v31, %v2702_v2 }
 0x19f   :  { %3487 = vmatpush.msra.mxu3 %v2854_v46 }
 0x1a0   :  { %v2730_v19 = vadd.f32 %v6462_v36, %v2716_v48 }
 0x1a1   :  { %3735 = vmatpush.msrb.mxu3 %v2632_v29  ;;  %v3086_v29 = vld [vmem:[%s7688_s3 + $0x20] sm:$0xff] }
 0x1a2   :  { %v6563_v33 = vpop.f32.mrf.mxu2  ;;  %v2744_v36 = vadd.f32 %v6465_v35, %v2730_v19  ;;  %v3088_v35 = vld [vmem:[%s7688_s3 + $0x30] sm:$0xff]  ;;  %3115 = vperm.xlu2 %6134, %v3086_v29  }
 0x1a3   :  { %v6565_v39 = vpop.f32.mrf.mxu3  ;;  %3125 = vperm.xlu0 %6132, %v3088_v35  }
 0x1a5   :  { %5559 = vmatmul.msk.f32.vlgmr.msra.gmra.mxu0 %vm3300_vm0, %v6503_v8 }
 0x1a6   :  { %5569 = vmatmul.msk.f32.vlgmr.msra.gmra.mxu1 %vm3300_vm0, %v6503_v8 }
 0x1a7   :  { %5579 = vmatmul.msk.f32.vlgmr.msra.gmra.mxu2 %vm3300_vm0, %v6503_v8 }
 0x1a8   :  { %5589 = vmatmul.msk.f32.vlgmr.msra.gmra.mxu3 %vm3300_vm0, %v6503_v8 }
 0x1aa   :  { %3120 = vperm.xlu2 %6134, %v3087_v25  }
 0x1ab   :  { %3140 = vperm.xlu0 %6132, %v3091_v37  }
 0x1ad   :  { %5560 = vmatmul.msk.f32.gmra.mxu0 %vm3300_vm0, %v6517_v59 }
 0x1ae   :  { %5570 = vmatmul.msk.f32.gmra.mxu1 %vm3300_vm0, %v6517_v59 }
 0x1af   :  { %5580 = vmatmul.msk.f32.gmra.mxu2 %vm3300_vm0, %v6517_v59 }
 0x1b0   :  { %5590 = vmatmul.msk.f32.gmra.mxu3 %vm3300_vm0, %v6517_v59 }
 0x1b2   :  { %v2867_v44 = vpop.f32.mrf.mxu0 }
 0x1b3   :  { %v2881_v26 = vpop.f32.mrf.mxu1 }
 0x1b4   :  { %v2882_v40 = vadd.f32 %v2881_v26, %v2867_v44 }
 0x1b5   :  { %5561 = vmatmul.msk.f32.gmra.mxu0 %vm3300_vm0, %v6530_v24 }
 0x1b6   :  { %5571 = vmatmul.msk.f32.gmra.mxu1 %vm3300_vm0, %v6530_v24 }
 0x1b7   :  { %5581 = vmatmul.msk.f32.gmra.mxu2 %vm3300_vm0, %v6530_v24 }
 0x1b8   :  { %5591 = vmatmul.msk.f32.gmra.mxu3 %vm3300_vm0, %v6530_v24 }
 0x1ba   :  { %v2895_v17 = vpop.f32.mrf.mxu2  ;;  %v2869_v22 = vpop.f32.mrf.mxu0 }
 0x1bb   :  { %v2909_v6 = vpop.f32.mrf.mxu3  ;;  %v2883_v63 = vpop.f32.mrf.mxu1  ;;  %v2896_v54 = vadd.f32 %v2895_v17, %v2882_v40 }
 0x1bc   :  { %v2884_v13 = vadd.f32 %v2883_v63, %v2869_v22  ;;  %v3090_v63 = vld [vmem:[%s7688_s3 + $0x40] sm:$0xff] }
 0x1bd   :  { %5562 = vmatmul.msk.f32.gmra.mxu0 %vm3300_vm0, %v6550_v7  ;;  %v2910_v60 = vadd.f32 %v2909_v6, %v2896_v54  ;;  %v2772_v6 = vadd.f32 %v6484_v14, %v6476_v62  ;;  %3135 = vperm.xlu2 %6134, %v3090_v63  }
 0x1be   :  { %5572 = vmatmul.msk.f32.gmra.mxu1 %vm3300_vm0, %v6550_v7 }
 0x1bf   :  { %5582 = vmatmul.msk.f32.gmra.mxu2 %vm3300_vm0, %v6550_v7  ;;  %v2786_v18 = vadd.f32 %v6492_v10, %v2772_v6 }
 0x1c0   :  { %5592 = vmatmul.msk.f32.gmra.mxu3 %vm3300_vm0, %v6550_v7 }
 0x1c1   :  { %v2800_v62 = vadd.f32 %v6494_v57, %v2786_v18 }
 0x1c2   :  { %v2897_v28 = vpop.f32.mrf.mxu2 }
 0x1c3   :  { %v2911_v52 = vpop.f32.mrf.mxu3  ;;  %v2898_v21 = vadd.f32 %v2897_v28, %v2884_v13 }
 0x1c5   :  { %5563 = vmatmul.msk.f32.gmra.mxu0 %vm3300_vm0, %v6570_v53  ;;  %v2912_v0 = vadd.f32 %v2911_v52, %v2898_v21 }
 0x1c6   :  { %5573 = vmatmul.msk.f32.gmra.mxu1 %vm3300_vm0, %v6570_v53 }
 0x1c7   :  { %5583 = vmatmul.msk.f32.gmra.mxu2 %vm3300_vm0, %v6570_v53 }
 0x1c8   :  { %5593 = vmatmul.msk.f32.gmra.mxu3 %vm3300_vm0, %v6570_v53 }
 0x1cd   :  { %5564 = vmatmul.msk.f32.gmra.mxu0 %vm3300_vm0, %v6586_v38 }
 0x1ce   :  { %5574 = vmatmul.msk.f32.gmra.mxu1 %vm3300_vm0, %v6586_v38 }
 0x1cf   :  { %5584 = vmatmul.msk.f32.gmra.mxu2 %vm3300_vm0, %v6586_v38 }
 0x1d0   :  { %5594 = vmatmul.msk.f32.gmra.mxu3 %vm3300_vm0, %v6586_v38 }
 0x1d2   :  { %v2923_v30 = vpop.f32.mrf.mxu0 }
 0x1d3   :  { %v2924_v12 = vadd.f32 %v2923_v30, %v2910_v60  ;;  %v2937_v56 = vpop.f32.mrf.mxu1  ;;  %v2814_v60 = vadd.f32 %v6543_v50, %v2800_v62 }
 0x1d5   :  { %5565 = vmatmul.msk.f32.gmra.mxu0 %vm3300_vm0, %v6605_v15  ;;  %v2938_v45 = vadd.f32 %v2937_v56, %v2924_v12  ;;  %v2828_v13 = vadd.f32 %v6545_v34, %v2814_v60 }
 0x1d6   :  { %5575 = vmatmul.msk.f32.gmra.mxu1 %vm3300_vm0, %v6605_v15 }
 0x1d7   :  { %5585 = vmatmul.msk.f32.gmra.mxu2 %vm3300_vm0, %v6605_v15  ;;  %v2842_v57 = vadd.f32 %v6563_v33, %v2828_v13 }
 0x1d8   :  { %5595 = vmatmul.msk.f32.gmra.mxu3 %vm3300_vm0, %v6605_v15 }
 0x1d9   :  { %v2856_v19 = vadd.f32 %v6565_v39, %v2842_v57 }
 0x1da   :  { %v2951_v42 = vpop.f32.mrf.mxu2  ;;  %v2925_v51 = vpop.f32.mrf.mxu0 }
 0x1db   :  { %v2952_v55 = vadd.f32 %v2951_v42, %v2938_v45  ;;  %v2965_v9 = vpop.f32.mrf.mxu3  ;;  %v2926_v31 = vadd.f32 %v2925_v51, %v2912_v0  ;;  %v2939_v16 = vpop.f32.mrf.mxu1 }
 0x1dd   :  { %5566 = vmatmul.msk.f32.gmra.mxu0 %vm3300_vm0, %v6621_v49  ;;  %v2966_v3 = vadd.f32 %v2965_v9, %v2952_v55  ;;  %v2940_v47 = vadd.f32 %v2939_v16, %v2926_v31  ;;  %v6727_v9 = vld [vmem:[#allocation6] sm:$0x3f] }
 0x1de   :  { %5576 = vmatmul.msk.f32.gmra.mxu1 %vm3300_vm0, %v6621_v49  ;;  %v6740_v16 = vperm.slane %v6727_v9, 2 }
 0x1df   :  { %5586 = vmatmul.msk.f32.gmra.mxu2 %vm3300_vm0, %v6621_v49  ;;  %3534 = vmatpush.msrb.mxu0 %v2966_v3  ;;  %v6734_v3 = vperm.slane %v6727_v9, 0 }
 0x1e0   :  { %5596 = vmatmul.msk.f32.gmra.mxu3 %vm3300_vm0, %v6621_v49 }
 0x1e1   :  { %3782 = vmatpush.msra.mxu0 %v2744_v36  ;;  %v6737_v36 = vperm.slane %v6727_v9, 1 }
 0x1e2   :  { %v2953_v61 = vpop.f32.mrf.mxu2 }
 0x1e3   :  { %v2954_v41 = vadd.f32 %v2953_v61, %v2940_v47  ;;  %v2967_v5 = vpop.f32.mrf.mxu3  ;;  %v6743_v47 = vperm.slane %v6727_v9, 3 }
 0x1e5   :  { %5567 = vmatmul.msk.f32.gmra.mxu0 %vm3300_vm0, %v6636_v43  ;;  %v2968_v46 = vadd.f32 %v2967_v5, %v2954_v41  ;;  %v6747_v41 = vld [vmem:[#allocation7] sm:$0x3f] }
 0x1e6   :  { %5577 = vmatmul.msk.f32.gmra.mxu1 %vm3300_vm0, %v6636_v43  ;;  %v6752_v29 = vperm.slane %v6747_v41, 0  ;;  %v6757_v25 = vperm.slane %v6747_v41, 1 }
 0x1e7   :  { %5587 = vmatmul.msk.f32.gmra.mxu2 %vm3300_vm0, %v6636_v43 }
 0x1e8   :  { %5597 = vmatmul.msk.f32.gmra.mxu3 %vm3300_vm0, %v6636_v43  ;;  %3876 = vmatpush.msra.mxu2 %v2968_v46 }
 0x1ed   :  { %5568 = vmatmul.msk.f32.gmra.mxu0 %vm3300_vm0, %v6652_v4 }
 0x1ee   :  { %5578 = vmatmul.msk.f32.gmra.mxu1 %vm3300_vm0, %v6652_v4 }
 0x1ef   :  { %5588 = vmatmul.msk.f32.gmra.mxu2 %vm3300_vm0, %v6652_v4 }
 0x1f0   :  { %5598 = vmatmul.msk.f32.gmra.mxu3 %vm3300_vm0, %v6652_v4 }
 0x1f2   :  { %v2979_v44 = vpop.f32.mrf.mxu0 }
 0x1f3   :  { %v2993_v26 = vpop.f32.mrf.mxu1 }
 0x1f4   :  { %v2994_v40 = vadd.f32 %v2993_v26, %v2979_v44  ;;  %v6762_v26 = vperm.slane %v6747_v41, 2 }
 0x1f5   :  { %5599 = vmatmul.msk.f32.vlgmr.msrb.gmra.mxu0 %vm3300_vm0, %v6503_v8 }
 0x1f7   :  { %5619 = vmatmul.msk.f32.vlgmr.msrb.gmra.mxu2 %vm3300_vm0, %v6503_v8 }
 0x1f8   :  { %5629 = vmatmul.msk.f32.vlgmr.msrb.gmra.mxu3 %vm3300_vm0, %v6503_v8 }
 0x1fa   :  { %v3007_v1 = vpop.f32.mrf.mxu2  ;;  %v2981_v22 = vpop.f32.mrf.mxu0 }
 0x1fb   :  { %v3021_v17 = vpop.f32.mrf.mxu3  ;;  %v2995_v27 = vpop.f32.mrf.mxu1  ;;  %v3008_v23 = vadd.f32 %v3007_v1, %v2994_v40 }
 0x1fc   :  { %v2996_v54 = vadd.f32 %v2995_v27, %v2981_v22 }
 0x1fd   :  { %5600 = vmatmul.msk.f32.gmra.mxu0 %vm3300_vm0, %v6517_v59  ;;  %v3022_v32 = vadd.f32 %v3021_v17, %v3008_v23  ;;  %v6745_v35 = vpop.permute.xlu0 %3095  ;;  %v6767_v17 = vperm.slane %v6747_v41, 3 }
 0x1fe   :  { %v3156_v46 = vmul.f32 %v6734_v3, %v6745_v35  ;;  %v3157_v11 = vmul.f32 %v6737_v36, %v6745_v35  ;;  %v3158_v44 = vmul.f32 %v6740_v16, %v6745_v35  ;;  %v3159_v1 = vmul.f32 %v6743_v47, %v6745_v35 }
 0x1ff   :  { %5620 = vmatmul.msk.f32.gmra.mxu2 %vm3300_vm0, %v6517_v59 }
 0x200   :  { %5630 = vmatmul.msk.f32.gmra.mxu3 %vm3300_vm0, %v6517_v59  ;;  %v6770_v6 = vadd.f32 %v6752_v29, %v3156_v46  ;;  %v6773_v40 = vadd.f32 %v6757_v25, %v3157_v11  ;;  %v6778_v22 = vadd.f32 %v6762_v26, %v3158_v44  ;;  %v6781_v18 = vadd.f32 %v6767_v17, %v3159_v1 }
 0x202   :  { %v3009_v14 = vpop.f32.mrf.mxu2  ;;  %7733 = vst [vmem:[#allocation16_spill] sm:$0xff] %v6781_v18 }
 0x203   :  { %v3023_v10 = vpop.f32.mrf.mxu3  ;;  %v3010_v20 = vadd.f32 %v3009_v14, %v2996_v54 }
 0x205   :  { %5601 = vmatmul.msk.f32.gmra.mxu0 %vm3300_vm0, %v6530_v24  ;;  %v3024_v50 = vadd.f32 %v3023_v10, %v3010_v20 }
 0x207   :  { %5621 = vmatmul.msk.f32.gmra.mxu2 %vm3300_vm0, %v6530_v24 }
 0x208   :  { %5631 = vmatmul.msk.f32.gmra.mxu3 %vm3300_vm0, %v6530_v24 }
 0x20d   :  { %5602 = vmatmul.msk.f32.gmra.mxu0 %vm3300_vm0, %v6550_v7 }
 0x20f   :  { %5622 = vmatmul.msk.f32.gmra.mxu2 %vm3300_vm0, %v6550_v7 }
 0x210   :  { %5632 = vmatmul.msk.f32.gmra.mxu3 %vm3300_vm0, %v6550_v7 }
 0x212   :  { %v3035_v58 = vpop.f32.mrf.mxu0 }
 0x213   :  { %v3036_v28 = vadd.f32 %v3035_v58, %v3022_v32  ;;  %v3049_v52 = vpop.f32.mrf.mxu1  ;;  %v6796_v32 = vpop.permute.xlu0 %3100 }
 0x214   :  { %v3162_v58 = vmul.f32 %v6734_v3, %v6796_v32  ;;  %v3163_v60 = vmul.f32 %v6737_v36, %v6796_v32 }
 0x215   :  { %5603 = vmatmul.msk.f32.gmra.mxu0 %vm3300_vm0, %v6570_v53  ;;  %v3050_v30 = vadd.f32 %v3049_v52, %v3036_v28  ;;  %v3164_v28 = vmul.f32 %v6740_v16, %v6796_v32  ;;  %v3165_v52 = vmul.f32 %v6743_v47, %v6796_v32 }
 0x216   :  { %v6816_v13 = vadd.f32 %v6752_v29, %v3162_v58 }
 0x217   :  { %5623 = vmatmul.msk.f32.gmra.mxu2 %vm3300_vm0, %v6570_v53  ;;  %v6822_v57 = vadd.f32 %v6762_v26, %v3164_v28 }
 0x218   :  { %5633 = vmatmul.msk.f32.gmra.mxu3 %vm3300_vm0, %v6570_v53 }
 0x21a   :  { %v3063_v2 = vpop.f32.mrf.mxu2  ;;  %v3037_v21 = vpop.f32.mrf.mxu0 }
 0x21b   :  { %v3077_v12 = vpop.f32.mrf.mxu3  ;;  %v3064_v56 = vadd.f32 %v3063_v2, %v3050_v30  ;;  %v3038_v48 = vadd.f32 %v3037_v21, %v3024_v50  ;;  %v3051_v34 = vpop.f32.mrf.mxu1  ;;  %v6819_v30 = vadd.f32 %v6757_v25, %v3163_v60  ;;  %v6825_v2 = vadd.f32 %v6767_v17, %v3165_v52 }
 0x21d   :  { %v3078_v45 = vadd.f32 %v3077_v12, %v3064_v56  ;;  %5604 = vmatmul.msk.f32.gmra.mxu0 %vm3300_vm0, %v6586_v38  ;;  %v3052_v42 = vadd.f32 %v3051_v34, %v3038_v48  ;;  %7734 = vst [vmem:[#allocation12_spill] sm:$0xff] %v6825_v2 }
 0x21f   :  { %3581 = vmatpush.msrb.mxu1 %v3078_v45  ;;  %5624 = vmatmul.msk.f32.gmra.mxu2 %vm3300_vm0, %v6586_v38 }
 0x220   :  { %5609 = vmatmul.msk.f32.vlgmr.msrb.gmra.mxu1 %vm3300_vm0, %v6503_v8  ;;  %5634 = vmatmul.msk.f32.gmra.mxu3 %vm3300_vm0, %v6586_v38 }
 0x221   :  { %3829 = vmatpush.msra.mxu1 %v2856_v19  ;;  %v6842_v19 = vpop.permute.xlu1 %3105 }
 0x222   :  { %v3065_v33 = vpop.f32.mrf.mxu2  ;;  %v3348_v55 = vpop.f32.mrf.mxu0 }
 0x223   :  { %v3066_v0 = vadd.f32 %v3065_v33, %v3052_v42  ;;  %v3079_v39 = vpop.f32.mrf.mxu3  ;;  %v3395_v31 = vpop.f32.mrf.mxu1  ;;  %v3349_v27 = vadd.f32 %v3348_v55, %v6770_v6  ;;  %v3168_v42 = vmul.f32 %v6734_v3, %v6842_v19  ;;  %v3169_v33 = vmul.f32 %v6737_v36, %v6842_v19 }
 0x224   :  { %v3396_v23 = vadd.f32 %v3395_v31, %v6773_v40  ;;  %v3171_v55 = vmul.f32 %v6743_v47, %v6842_v19 }
 0x225   :  { %v3080_v51 = vadd.f32 %v3079_v39, %v3066_v0  ;;  %5605 = vmatmul.msk.f32.gmra.mxu0 %vm3300_vm0, %v6605_v15  ;;  %3613 = vst [vmem:[%s7691_s6] sm:$0xff] %v3349_v27  ;;  %v3170_v0 = vmul.f32 %v6740_v16, %v6842_v19  ;;  %v6865_v31 = vadd.f32 %v6757_v25, %v3169_v33 }
 0x226   :  { %3614 = vst [vmem:[%s7691_s6 + $0x8] sm:$0xff] %v3396_v23 }
 0x227   :  { %3923 = vmatpush.msra.mxu3 %v3080_v51  ;;  %5625 = vmatmul.msk.f32.gmra.mxu2 %vm3300_vm0, %v6605_v15  ;;  %v6862_v51 = vadd.f32 %v6752_v29, %v3168_v42  ;;  %v6934_v42 = vpop.permute.xlu2 %3115 }
 0x228   :  { %5610 = vmatmul.msk.f32.gmra.mxu1 %vm3300_vm0, %v6517_v59  ;;  %5635 = vmatmul.msk.f32.gmra.mxu3 %vm3300_vm0, %v6605_v15  ;;  %v3180_v33 = vmul.f32 %v6734_v3, %v6934_v42 }
 0x229   :  { %v6888_v23 = vpop.permute.xlu1 %3110 }
 0x22a   :  { %v3442_v61 = vpop.f32.mrf.mxu2  ;;  %v3351_v5 = vpop.f32.mrf.mxu0 }
 0x22b   :  { %v3489_v37 = vpop.f32.mrf.mxu3  ;;  %v3443_v63 = vadd.f32 %v3442_v61, %v6778_v22  ;;  %v3398_v14 = vpop.f32.mrf.mxu1  ;;  %v3352_v12 = vadd.f32 %v3351_v5, %v6816_v13  ;;  %v6868_v61 = vadd.f32 %v6762_v26, %v3170_v0  ;;  %v6871_v5 = vadd.f32 %v6767_v17, %v3171_v55 }
 0x22c   :  { %v3490_v62 = vadd.f32 %v3489_v37, %v6781_v18  ;;  %v3399_v50 = vadd.f32 %v3398_v14, %v6819_v30  ;;  %v3175_v14 = vmul.f32 %v6737_v36, %v6888_v23  ;;  %v3181_v0 = vmul.f32 %v6737_v36, %v6934_v42 }
 0x22d   :  { %5606 = vmatmul.msk.f32.gmra.mxu0 %vm3300_vm0, %v6621_v49  ;;  %3615 = vst [vmem:[%s7691_s6 + $0x10] sm:$0xff] %v3443_v63  ;;  %v3182_v55 = vmul.f32 %v6740_v16, %v6934_v42 }
 0x22e   :  { %3616 = vst [vmem:[%s7691_s6 + $0x18] sm:$0xff] %v3490_v62  ;;  %v3174_v62 = vmul.f32 %v6734_v3, %v6888_v23  ;;  %v6911_v28 = vadd.f32 %v6757_v25, %v3175_v14 }
 0x22f   :  { %5626 = vmatmul.msk.f32.gmra.mxu2 %vm3300_vm0, %v6621_v49  ;;  %3619 = vst [vmem:[%s7691_s6 + $0x30] sm:$0xff] %v3352_v12 }
 0x230   :  { %5611 = vmatmul.msk.f32.gmra.mxu1 %vm3300_vm0, %v6530_v24  ;;  %5636 = vmatmul.msk.f32.gmra.mxu3 %vm3300_vm0, %v6621_v49  ;;  %3620 = vst [vmem:[%s7691_s6 + $0x38] sm:$0xff] %v3399_v50  ;;  %v6908_v60 = vadd.f32 %v6752_v29, %v3174_v62 }
 0x231   :  { %7735 = vst [vmem:[#allocation14_spill] sm:$0xff] %v6871_v5 }
 0x232   :  { %v3445_v10 = vpop.f32.mrf.mxu2  ;;  %v3354_v54 = vpop.f32.mrf.mxu0 }
 0x233   :  { %v3492_v20 = vpop.f32.mrf.mxu3  ;;  %v3446_v56 = vadd.f32 %v3445_v10, %v6822_v57  ;;  %v3401_v45 = vpop.f32.mrf.mxu1  ;;  %v3355_v46 = vadd.f32 %v3354_v54, %v6862_v51  ;;  %v3176_v10 = vmul.f32 %v6740_v16, %v6888_v23  ;;  %v3177_v54 = vmul.f32 %v6743_v47, %v6888_v23 }
 0x234   :  { %v3493_v21 = vadd.f32 %v3492_v20, %v6825_v2  ;;  %v3402_v11 = vadd.f32 %v3401_v45, %v6865_v31 }
 0x235   :  { %5607 = vmatmul.msk.f32.gmra.mxu0 %vm3300_vm0, %v6636_v43  ;;  %3621 = vst [vmem:[%s7691_s6 + $0x40] sm:$0xff] %v3446_v56  ;;  %v6914_v52 = vadd.f32 %v6762_v26, %v3176_v10  ;;  %v6917_v20 = vadd.f32 %v6767_v17, %v3177_v54 }
 0x236   :  { %3622 = vst [vmem:[%s7691_s6 + $0x48] sm:$0xff] %v3493_v21 }
 0x237   :  { %5627 = vmatmul.msk.f32.gmra.mxu2 %vm3300_vm0, %v6636_v43  ;;  %3625 = vst [vmem:[%s7691_s6 + $0x60] sm:$0xff] %v3355_v46 }
 0x238   :  { %5612 = vmatmul.msk.f32.gmra.mxu1 %vm3300_vm0, %v6550_v7  ;;  %5637 = vmatmul.msk.f32.gmra.mxu3 %vm3300_vm0, %v6636_v43  ;;  %3626 = vst [vmem:[%s7691_s6 + $0x68] sm:$0xff] %v3402_v11  ;;  %v6954_v11 = vadd.f32 %v6752_v29, %v3180_v33 }
 0x239   :  { %7736 = vst [vmem:[#allocation13_spill] sm:$0xff] %v6917_v20 }
 0x23a   :  { %v3448_v48 = vpop.f32.mrf.mxu2  ;;  %v3357_v34 = vpop.f32.mrf.mxu0 }
 0x23b   :  { %v3495_v39 = vpop.f32.mrf.mxu3  ;;  %v3449_v37 = vadd.f32 %v3448_v48, %v6868_v61  ;;  %v3404_v1 = vpop.f32.mrf.mxu1  ;;  %v3358_v12 = vadd.f32 %v3357_v34, %v6908_v60 }
 0x23c   :  { %v3496_v44 = vadd.f32 %v3495_v39, %v6871_v5  ;;  %v3405_v50 = vadd.f32 %v3404_v1, %v6911_v28  ;;  %v3183_v39 = vmul.f32 %v6743_v47, %v6934_v42 }
 0x23d   :  { %5608 = vmatmul.msk.f32.gmra.mxu0 %vm3300_vm0, %v6652_v4  ;;  %3627 = vst [vmem:[%s7691_s6 + $0x70] sm:$0xff] %v3449_v37  ;;  %v6957_v37 = vadd.f32 %v6757_v25, %v3181_v0 }
 0x23e   :  { %3628 = vst [vmem:[%s7691_s6 + $0x78] sm:$0xff] %v3496_v44  ;;  %v6960_v44 = vadd.f32 %v6762_v26, %v3182_v55  ;;  %v6963_v1 = vadd.f32 %v6767_v17, %v3183_v39 }
 0x23f   :  { %5628 = vmatmul.msk.f32.gmra.mxu2 %vm3300_vm0, %v6652_v4  ;;  %3631 = vst [vmem:[%s7691_s6 + $0x90] sm:$0xff] %v3358_v12  ;;  %v6980_v12 = vpop.permute.xlu2 %3120 }
 0x240   :  { %5613 = vmatmul.msk.f32.gmra.mxu1 %vm3300_vm0, %v6570_v53  ;;  %5638 = vmatmul.msk.f32.gmra.mxu3 %vm3300_vm0, %v6652_v4  ;;  %3632 = vst [vmem:[%s7691_s6 + $0x98] sm:$0xff] %v3405_v50  ;;  %v3186_v50 = vmul.f32 %v6734_v3, %v6980_v12 }
 0x241   :  { %7737 = vst [vmem:[#allocation15_spill] sm:$0xff] %v6960_v44 }
 0x242   :  { %v3451_v27 = vpop.f32.mrf.mxu2  ;;  %v3360_v63 = vpop.f32.mrf.mxu0  ;;  %7738 = vst [vmem:[#allocation17_spill] sm:$0xff] %v6963_v1  ;;  %v7000_v33 = vadd.f32 %v6752_v29, %v3186_v50 }
 0x243   :  { %v3498_v58 = vpop.f32.mrf.mxu3  ;;  %v3452_v56 = vadd.f32 %v3451_v27, %v6914_v52  ;;  %v3407_v45 = vpop.f32.mrf.mxu1  ;;  %v3361_v27 = vadd.f32 %v3360_v63, %v6954_v11 }
 0x244   :  { %v3499_v21 = vadd.f32 %v3498_v58, %v6917_v20  ;;  %v3408_v62 = vadd.f32 %v3407_v45, %v6957_v37  ;;  %v3189_v45 = vmul.f32 %v6743_v47, %v6980_v12  ;;  %v7072_v20 = vpop.permute.xlu1 %3130 }
 0x245   :  { %5639 = vmatmul.msk.f32.vlgmr.msra.gmra.mxu0 %vm3300_vm0, %v6503_v8  ;;  %3633 = vst [vmem:[%s7691_s6 + $0xa0] sm:$0xff] %v3452_v56  ;;  %v3187_v56 = vmul.f32 %v6737_v36, %v6980_v12 }
 0x246   :  { %3634 = vst [vmem:[%s7691_s6 + $0xa8] sm:$0xff] %v3499_v21  ;;  %v3188_v21 = vmul.f32 %v6740_v16, %v6980_v12  ;;  %v7009_v39 = vadd.f32 %v6767_v17, %v3189_v45 }
 0x247   :  { %5659 = vmatmul.msk.f32.vlgmr.msra.gmra.mxu2 %vm3300_vm0, %v6503_v8  ;;  %3637 = vst [vmem:[%s7691_s6 + $0xc0] sm:$0xff] %v3361_v27  ;;  %v7003_v0 = vadd.f32 %v6757_v25, %v3187_v56  ;;  %v7026_v56 = vpop.permute.xlu0 %3125 }
 0x248   :  { %5614 = vmatmul.msk.f32.gmra.mxu1 %vm3300_vm0, %v6586_v38  ;;  %5669 = vmatmul.msk.f32.vlgmr.msra.gmra.mxu3 %vm3300_vm0, %v6503_v8  ;;  %3638 = vst [vmem:[%s7691_s6 + $0xc8] sm:$0xff] %v3408_v62  ;;  %v7006_v55 = vadd.f32 %v6762_v26, %v3188_v21  ;;  %v3194_v21 = vmul.f32 %v6740_v16, %v7026_v56 }
 0x249   :  { %7740 = vst [vmem:[#allocation19_spill] sm:$0xff] %v7009_v39  ;;  %v3195_v45 = vmul.f32 %v6743_v47, %v7026_v56 }
 0x24a   :  { %v3454_v48 = vpop.f32.mrf.mxu2  ;;  %v3363_v34 = vpop.f32.mrf.mxu0  ;;  %7739 = vst [vmem:[#allocation18_spill] sm:$0xff] %v7006_v55 }
 0x24b   :  { %v3501_v46 = vpop.f32.mrf.mxu3  ;;  %v3455_v14 = vadd.f32 %v3454_v48, %v6960_v44  ;;  %v3410_v54 = vpop.f32.mrf.mxu1 }
 0x24c   :  { %v3502_v10 = vadd.f32 %v3501_v46, %v6963_v1  ;;  %v3364_v46 = vadd.f32 %v3363_v34, %v7000_v33  ;;  %v3411_v27 = vadd.f32 %v3410_v54, %v7003_v0  ;;  %v3192_v54 = vmul.f32 %v6734_v3, %v7026_v56 }
 0x24d   :  { %5640 = vmatmul.msk.f32.gmra.mxu0 %vm3300_vm0, %v6517_v59  ;;  %3639 = vst [vmem:[%s7691_s6 + $0xd0] sm:$0xff] %v3455_v14 }
 0x24e   :  { %3640 = vst [vmem:[%s7691_s6 + $0xd8] sm:$0xff] %v3502_v10 }
 0x24f   :  { %5660 = vmatmul.msk.f32.gmra.mxu2 %vm3300_vm0, %v6517_v59  ;;  %3643 = vst [vmem:[%s7691_s6 + $0xf0] sm:$0xff] %v3364_v46  ;;  %v7046_v46 = vadd.f32 %v6752_v29, %v3192_v54 }
 0x250   :  { %5615 = vmatmul.msk.f32.gmra.mxu1 %vm3300_vm0, %v6605_v15  ;;  %5670 = vmatmul.msk.f32.gmra.mxu3 %vm3300_vm0, %v6517_v59  ;;  %3644 = vst [vmem:[%s7691_s6 + $0xf8] sm:$0xff] %v3411_v27 }
 0x252   :  { %v3457_v58 = vpop.f32.mrf.mxu2  ;;  %v3366_v63 = vpop.f32.mrf.mxu0 }
 0x253   :  { %v3504_v48 = vpop.f32.mrf.mxu3  ;;  %v3458_v62 = vadd.f32 %v3457_v58, %v7006_v55  ;;  %v3413_v10 = vpop.f32.mrf.mxu1  ;;  %v3193_v58 = vmul.f32 %v6737_v36, %v7026_v56 }
 0x254   :  { %v3505_v14 = vadd.f32 %v3504_v48, %v7009_v39  ;;  %v7052_v39 = vadd.f32 %v6762_v26, %v3194_v21  ;;  %v7118_v55 = vpop.permute.xlu2 %3135 }
 0x255   :  { %5641 = vmatmul.msk.f32.gmra.mxu0 %vm3300_vm0, %v6530_v24  ;;  %3645 = vst [vmem:[%s7691_s6 + $0x100] sm:$0xff] %v3458_v62  ;;  %v7049_v27 = vadd.f32 %v6757_v25, %v3193_v58  ;;  %v7055_v62 = vadd.f32 %v6767_v17, %v3195_v45 }
 0x256   :  { %3646 = vst [vmem:[%s7691_s6 + $0x108] sm:$0xff] %v3505_v14  ;;  %v3367_v14 = vadd.f32 %v3366_v63, %v7046_v46 }
 0x257   :  { %5661 = vmatmul.msk.f32.gmra.mxu2 %vm3300_vm0, %v6530_v24  ;;  %7741 = vst [vmem:[#allocation20_spill] sm:$0xff] %v7052_v39  ;;  %v3414_v54 = vadd.f32 %v3413_v10, %v7049_v27  ;;  %v3198_v10 = vmul.f32 %v6734_v3, %v7072_v20 }
 0x258   :  { %5616 = vmatmul.msk.f32.gmra.mxu1 %vm3300_vm0, %v6621_v49  ;;  %5671 = vmatmul.msk.f32.gmra.mxu3 %vm3300_vm0, %v6530_v24  ;;  %7742 = vst [vmem:[#allocation21_spill] sm:$0xff] %v7055_v62 }
 0x259   :  { %3649 = vst [vmem:[%s7691_s6 + $0x120] sm:$0xff] %v3367_v14  ;;  %v3201_v14 = vmul.f32 %v6743_v47, %v7072_v20 }
 0x25a   :  { %v3460_v50 = vpop.f32.mrf.mxu2  ;;  %v3369_v34 = vpop.f32.mrf.mxu0  ;;  %3650 = vst [vmem:[%s7691_s6 + $0x128] sm:$0xff] %v3414_v54  ;;  %v7092_v54 = vadd.f32 %v6752_v29, %v3198_v10 }
 0x25b   :  { %v3507_v48 = vpop.f32.mrf.mxu3  ;;  %v3461_v1 = vadd.f32 %v3460_v50, %v7052_v39  ;;  %v3416_v21 = vpop.f32.mrf.mxu1  ;;  %v3199_v50 = vmul.f32 %v6737_v36, %v7072_v20 }
 0x25c   :  { %v3508_v58 = vadd.f32 %v3507_v48, %v7055_v62  ;;  %v3200_v48 = vmul.f32 %v6740_v16, %v7072_v20 }
 0x25d   :  { %5642 = vmatmul.msk.f32.gmra.mxu0 %vm3300_vm0, %v6550_v7  ;;  %3651 = vst [vmem:[%s7691_s6 + $0x130] sm:$0xff] %v3461_v1  ;;  %v7095_v5 = vadd.f32 %v6757_v25, %v3199_v50  ;;  %v7101_v1 = vadd.f32 %v6767_v17, %v3201_v14 }
 0x25e   :  { %3652 = vst [vmem:[%s7691_s6 + $0x138] sm:$0xff] %v3508_v58  ;;  %v7098_v39 = vadd.f32 %v6762_v26, %v3200_v48  ;;  %v3370_v58 = vadd.f32 %v3369_v34, %v7092_v54 }
 0x25f   :  { %5662 = vmatmul.msk.f32.gmra.mxu2 %vm3300_vm0, %v6550_v7  ;;  %7744 = vst [vmem:[#allocation23_spill] sm:$0xff] %v7101_v1  ;;  %v3417_v10 = vadd.f32 %v3416_v21, %v7095_v5  ;;  %v3205_v21 = vmul.f32 %v6737_v36, %v7118_v55 }
 0x260   :  { %5617 = vmatmul.msk.f32.gmra.mxu1 %vm3300_vm0, %v6636_v43  ;;  %5672 = vmatmul.msk.f32.gmra.mxu3 %vm3300_vm0, %v6550_v7  ;;  %7743 = vst [vmem:[#allocation22_spill] sm:$0xff] %v7098_v39 }
 0x261   :  { %3655 = vst [vmem:[%s7691_s6 + $0x150] sm:$0xff] %v3370_v58  ;;  %v3207_v58 = vmul.f32 %v6743_v47, %v7118_v55 }
 0x262   :  { %v3463_v45 = vpop.f32.mrf.mxu2  ;;  %v3372_v63 = vpop.f32.mrf.mxu0  ;;  %3656 = vst [vmem:[%s7691_s6 + $0x158] sm:$0xff] %v3417_v10 }
 0x263   :  { %v3510_v62 = vpop.f32.mrf.mxu3  ;;  %v3464_v2 = vadd.f32 %v3463_v45, %v7098_v39  ;;  %v3419_v48 = vpop.f32.mrf.mxu1  ;;  %v3206_v45 = vmul.f32 %v6740_v16, %v7118_v55  ;;  %v7141_v39 = vadd.f32 %v6757_v25, %v3205_v21 }
 0x264   :  { %v3511_v50 = vadd.f32 %v3510_v62, %v7101_v1  ;;  %v3204_v62 = vmul.f32 %v6734_v3, %v7118_v55 }
 0x265   :  { %5643 = vmatmul.msk.f32.gmra.mxu0 %vm3300_vm0, %v6570_v53  ;;  %3657 = vst [vmem:[%s7691_s6 + $0x160] sm:$0xff] %v3464_v2  ;;  %v7144_v18 = vadd.f32 %v6762_v26, %v3206_v45  ;;  %v7147_v2 = vadd.f32 %v6767_v17, %v3207_v58  ;;  %v7164_v58 = vpop.permute.xlu0 %3140 }
 0x266   :  { %3658 = vst [vmem:[%s7691_s6 + $0x168] sm:$0xff] %v3511_v50  ;;  %v7138_v10 = vadd.f32 %v6752_v29, %v3204_v62  ;;  %v3420_v62 = vadd.f32 %v3419_v48, %v7141_v39  ;;  %v3212_v48 = vmul.f32 %v6740_v16, %v7164_v58 }
 0x267   :  { %5663 = vmatmul.msk.f32.gmra.mxu2 %vm3300_vm0, %v6570_v53  ;;  %7745 = vst [vmem:[#allocation24_spill] sm:$0xff] %v7147_v2 }
 0x268   :  { %5618 = vmatmul.msk.f32.gmra.mxu1 %vm3300_vm0, %v6652_v4  ;;  %5673 = vmatmul.msk.f32.gmra.mxu3 %vm3300_vm0, %v6570_v53  ;;  %v3373_v50 = vadd.f32 %v3372_v63, %v7138_v10  ;;  %3662 = vst [vmem:[%s7691_s6 + $0x188] sm:$0xff] %v3420_v62 }
 0x26a   :  { %v3466_v14 = vpop.f32.mrf.mxu2  ;;  %v3375_v34 = vpop.f32.mrf.mxu0  ;;  %3661 = vst [vmem:[%s7691_s6 + $0x180] sm:$0xff] %v3373_v50 }
 0x26b   :  { %v3513_v1 = vpop.f32.mrf.mxu3  ;;  %v3467_v44 = vadd.f32 %v3466_v14, %v7144_v18  ;;  %v3213_v14 = vmul.f32 %v6743_v47, %v7164_v58  ;;  %v3422_v50 = vpop.f32.mrf.mxu1 }
 0x26c   :  { %v3514_v21 = vadd.f32 %v3513_v1, %v7147_v2  ;;  %v3210_v1 = vmul.f32 %v6734_v3, %v7164_v58 }
 0x26d   :  { %5644 = vmatmul.msk.f32.gmra.mxu0 %vm3300_vm0, %v6586_v38  ;;  %3663 = vst [vmem:[%s7691_s6 + $0x190] sm:$0xff] %v3467_v44  ;;  %v7190_v44 = vadd.f32 %v6762_v26, %v3212_v48  ;;  %v7193_v16 = vadd.f32 %v6767_v17, %v3213_v14  ;;  %v7208_v26 = vperm.slane %v6727_v9, 4  ;;  %v7211_v17 = vperm.slane %v6747_v41, 4 }
 0x26e   :  { %3664 = vst [vmem:[%s7691_s6 + $0x198] sm:$0xff] %v3514_v21  ;;  %v7184_v3 = vadd.f32 %v6752_v29, %v3210_v1 }
 0x26f   :  { %5664 = vmatmul.msk.f32.gmra.mxu2 %vm3300_vm0, %v6586_v38 }
 0x270   :  { %5649 = vmatmul.msk.f32.vlgmr.msra.gmra.mxu1 %vm3300_vm0, %v6503_v8  ;;  %5674 = vmatmul.msk.f32.gmra.mxu3 %vm3300_vm0, %v6586_v38  ;;  %v3211_v8 = vmul.f32 %v6737_v36, %v7164_v58  ;;  %v3376_v47 = vadd.f32 %v3375_v34, %v7184_v3 }
 0x272   :  { %v3469_v45 = vpop.f32.mrf.mxu2  ;;  %v3536_v63 = vpop.f32.mrf.mxu0  ;;  %v7187_v36 = vadd.f32 %v6757_v25, %v3211_v8  ;;  %3667 = vst [vmem:[%s7691_s6 + $0x1b0] sm:$0x1f] %v3376_v47 }
 0x273   :  { %v3516_v2 = vpop.f32.mrf.mxu3  ;;  %v3470_v62 = vadd.f32 %v3469_v45, %v7190_v44 }
 0x274   :  { %v3423_v29 = vadd.f32 %v3422_v50, %v7187_v36  ;;  %v3517_v25 = vadd.f32 %v3516_v2, %v7193_v16 }
 0x275   :  { %5645 = vmatmul.msk.f32.gmra.mxu0 %vm3300_vm0, %v6605_v15  ;;  %3669 = vst [vmem:[%s7691_s6 + $0x1c0] sm:$0x1f] %v3470_v62  ;;  %v3172_v62 = vmul.f32 %v7208_v26, %v6842_v19 }
 0x276   :  { %3668 = vst [vmem:[%s7691_s6 + $0x1b8] sm:$0x1f] %v3423_v29 }
 0x277   :  { %5665 = vmatmul.msk.f32.gmra.mxu2 %vm3300_vm0, %v6605_v15  ;;  %3670 = vst [vmem:[%s7691_s6 + $0x1c8] sm:$0x1f] %v3517_v25 }
 0x278   :  { %5650 = vmatmul.msk.f32.gmra.mxu1 %vm3300_vm0, %v6517_v59  ;;  %5675 = vmatmul.msk.f32.gmra.mxu3 %vm3300_vm0, %v6605_v15  ;;  %v3160_v59 = vmul.f32 %v7208_v26, %v6745_v35 }
 0x27a   :  { %v3690_v34 = vpop.f32.mrf.mxu2  ;;  %v3539_v2 = vpop.f32.mrf.mxu0  ;;  %v7228_v45 = vadd.f32 %v7211_v17, %v3160_v59 }
 0x27b   :  { %v3737_v21 = vpop.f32.mrf.mxu3  ;;  %v3691_v8 = vadd.f32 %v3690_v34, %v6770_v6 }
 0x27c   :  { %v3537_v1 = vadd.f32 %v3536_v63, %v7228_v45  ;;  %v3738_v48 = vadd.f32 %v3737_v21, %v6773_v40  ;;  %v3166_v63 = vmul.f32 %v7208_v26, %v6796_v32  ;;  %v3178_v21 = vmul.f32 %v7208_v26, %v6888_v23 }
 0x27d   :  { %5646 = vmatmul.msk.f32.gmra.mxu0 %vm3300_vm0, %v6621_v49  ;;  %5679 = vst [vmem:[%s7691_s6 + $0x1e0] sm:$0xff] %v3691_v8 }
 0x27e   :  { %3617 = vst [vmem:[%s7691_s6 + $0x20] sm:$0xff] %v3537_v1 }
 0x27f   :  { %5666 = vmatmul.msk.f32.gmra.mxu2 %vm3300_vm0, %v6621_v49  ;;  %5680 = vst [vmem:[%s7691_s6 + $0x1e8] sm:$0xff] %v3738_v48 }
 0x280   :  { %5651 = vmatmul.msk.f32.gmra.mxu1 %vm3300_vm0, %v6530_v24  ;;  %5676 = vmatmul.msk.f32.gmra.mxu3 %vm3300_vm0, %v6621_v49  ;;  %v7253_v24 = vadd.f32 %v7211_v17, %v3166_v63 }
 0x282   :  { %v3693_v6 = vpop.f32.mrf.mxu2  ;;  %v3542_v40 = vpop.f32.mrf.mxu0  ;;  %v3540_v50 = vadd.f32 %v3539_v2, %v7253_v24 }
 0x283   :  { %v3740_v14 = vpop.f32.mrf.mxu3  ;;  %v3694_v47 = vadd.f32 %v3693_v6, %v6816_v13  ;;  %v7312_v6 = vperm.slane %v6747_v41, 5 }
 0x284   :  { %3623 = vst [vmem:[%s7691_s6 + $0x50] sm:$0xff] %v3540_v50  ;;  %v3741_v29 = vadd.f32 %v3740_v14, %v6819_v30  ;;  %v7278_v30 = vadd.f32 %v7211_v17, %v3172_v62 }
 0x285   :  { %5647 = vmatmul.msk.f32.gmra.mxu0 %vm3300_vm0, %v6636_v43  ;;  %5685 = vst [vmem:[%s7691_s6 + $0x210] sm:$0xff] %v3694_v47 }
 0x286   :  { %5686 = vst [vmem:[%s7691_s6 + $0x218] sm:$0xff] %v3741_v29  ;;  %v3543_v34 = vadd.f32 %v3542_v40, %v7278_v30 }
 0x287   :  { %5667 = vmatmul.msk.f32.gmra.mxu2 %vm3300_vm0, %v6636_v43 }
 0x288   :  { %5652 = vmatmul.msk.f32.gmra.mxu1 %vm3300_vm0, %v6550_v7  ;;  %5677 = vmatmul.msk.f32.gmra.mxu3 %vm3300_vm0, %v6636_v43  ;;  %3629 = vst [vmem:[%s7691_s6 + $0x80] sm:$0xff] %v3543_v34 }
 0x28a   :  { %v3696_v13 = vpop.f32.mrf.mxu2  ;;  %v3545_v25 = vpop.f32.mrf.mxu0 }
 0x28b   :  { %v3743_v7 = vpop.f32.mrf.mxu3  ;;  %v3697_v59 = vadd.f32 %v3696_v13, %v6862_v51 }
 0x28c   :  { %v3744_v2 = vadd.f32 %v3743_v7, %v6865_v31  ;;  %v7303_v31 = vperm.slane %v6727_v9, 5  ;;  %v3190_v7 = vmul.f32 %v7208_v26, %v6980_v12 }
 0x28d   :  { %5648 = vmatmul.msk.f32.gmra.mxu0 %vm3300_vm0, %v6652_v4  ;;  %5691 = vst [vmem:[%s7691_s6 + $0x240] sm:$0xff] %v3697_v59 }
 0x28e   :  { %5692 = vst [vmem:[%s7691_s6 + $0x248] sm:$0xff] %v3744_v2  ;;  %v3161_v63 = vmul.f32 %v7303_v31, %v6745_v35  ;;  %v3184_v35 = vmul.f32 %v7208_v26, %v6934_v42  ;;  %v3167_v62 = vmul.f32 %v7303_v31, %v6796_v32 }
 0x28f   :  { %5668 = vmatmul.msk.f32.gmra.mxu2 %vm3300_vm0, %v6652_v4 }
 0x290   :  { %5653 = vmatmul.msk.f32.gmra.mxu1 %vm3300_vm0, %v6570_v53  ;;  %5678 = vmatmul.msk.f32.gmra.mxu3 %vm3300_vm0, %v6652_v4  ;;  %v7306_v53 = vadd.f32 %v7211_v17, %v3178_v21  ;;  %v7330_v14 = vadd.f32 %v7312_v6, %v3161_v63  ;;  %v7355_v34 = vadd.f32 %v7312_v6, %v3167_v62 }
 0x292   :  { %v3699_v51 = vpop.f32.mrf.mxu2  ;;  %v3548_v1 = vpop.f32.mrf.mxu0  ;;  %v3546_v48 = vadd.f32 %v3545_v25, %v7306_v53 }
 0x293   :  { %v3746_v8 = vpop.f32.mrf.mxu3  ;;  %v3700_v9 = vadd.f32 %v3699_v51, %v6908_v60  ;;  %v7333_v60 = vadd.f32 %v7211_v17, %v3184_v35  ;;  %v3173_v51 = vmul.f32 %v7303_v31, %v6842_v19 }
 0x294   :  { %3635 = vst [vmem:[%s7691_s6 + $0xb0] sm:$0xff] %v3546_v48  ;;  %v3747_v40 = vadd.f32 %v3746_v8, %v6911_v28  ;;  %v3196_v48 = vmul.f32 %v7208_v26, %v7026_v56 }
 0x295   :  { %5697 = vst [vmem:[%s7691_s6 + $0x270] sm:$0xff] %v3700_v9  ;;  %v3549_v50 = vadd.f32 %v3548_v1, %v7333_v60  ;;  %v7383_v63 = vadd.f32 %v7312_v6, %v3173_v51  ;;  %v3191_v51 = vmul.f32 %v7303_v31, %v6980_v12 }
 0x296   :  { %5698 = vst [vmem:[%s7691_s6 + $0x278] sm:$0xff] %v3747_v40 }
 0x297   :  { %3641 = vst [vmem:[%s7691_s6 + $0xe0] sm:$0xff] %v3549_v50  ;;  %v3202_v50 = vmul.f32 %v7208_v26, %v7072_v20 }
 0x298   :  { %5654 = vmatmul.msk.f32.gmra.mxu1 %vm3300_vm0, %v6586_v38 }
 0x29a   :  { %v3702_v41 = vpop.f32.mrf.mxu2  ;;  %v3551_v28 = vpop.f32.mrf.mxu0 }
 0x29b   :  { %v3749_v38 = vpop.f32.mrf.mxu3  ;;  %v3703_v13 = vadd.f32 %v3702_v41, %v6954_v11  ;;  %v7361_v11 = vadd.f32 %v7211_v17, %v3190_v7  ;;  %v3179_v41 = vmul.f32 %v7303_v31, %v6888_v23 }
 0x29c   :  { %v3750_v25 = vadd.f32 %v3749_v38, %v6957_v37 }
 0x29d   :  { %v3583_v47 = vpop.f32.mrf.mxu1  ;;  %5703 = vst [vmem:[%s7691_s6 + $0x2a0] sm:$0xff] %v3703_v13  ;;  %v3552_v59 = vadd.f32 %v3551_v28, %v7361_v11 }
 0x29e   :  { %v3584_v29 = vadd.f32 %v3583_v47, %v7330_v14  ;;  %5704 = vst [vmem:[%s7691_s6 + $0x2a8] sm:$0xff] %v3750_v25  ;;  %v7411_v47 = vadd.f32 %v7312_v6, %v3179_v41  ;;  %v3185_v25 = vmul.f32 %v7303_v31, %v6934_v42 }
 0x29f   :  { %3647 = vst [vmem:[%s7691_s6 + $0x110] sm:$0xff] %v3552_v59 }
 0x2a0   :  { %3618 = vst [vmem:[%s7691_s6 + $0x28] sm:$0xff] %v3584_v29  ;;  %5655 = vmatmul.msk.f32.gmra.mxu1 %vm3300_vm0, %v6605_v15 }
 0x2a2   :  { %v3705_v32 = vpop.f32.mrf.mxu2  ;;  %v3554_v37 = vpop.f32.mrf.mxu0 }
 0x2a3   :  { %v3752_v15 = vpop.f32.mrf.mxu3  ;;  %v3706_v1 = vadd.f32 %v3705_v32, %v7000_v33  ;;  %v7389_v33 = vadd.f32 %v7211_v17, %v3196_v48  ;;  %v3214_v48 = vmul.f32 %v7208_v26, %v7164_v58 }
 0x2a4   :  { %v3753_v8 = vadd.f32 %v3752_v15, %v7003_v0  ;;  %v7439_v15 = vadd.f32 %v7312_v6, %v3185_v25 }
 0x2a5   :  { %v3586_v2 = vpop.f32.mrf.mxu1  ;;  %5709 = vst [vmem:[%s7691_s6 + $0x2d0] sm:$0xff] %v3706_v1  ;;  %v3555_v9 = vadd.f32 %v3554_v37, %v7389_v33  ;;  %v3208_v37 = vmul.f32 %v7208_v26, %v7118_v55 }
 0x2a6   :  { %v3587_v21 = vadd.f32 %v3586_v2, %v7355_v34  ;;  %5710 = vst [vmem:[%s7691_s6 + $0x2d8] sm:$0xff] %v3753_v8 }
 0x2a7   :  { %3653 = vst [vmem:[%s7691_s6 + $0x140] sm:$0xff] %v3555_v9 }
 0x2a8   :  { %3624 = vst [vmem:[%s7691_s6 + $0x58] sm:$0xff] %v3587_v21  ;;  %5656 = vmatmul.msk.f32.gmra.mxu1 %vm3300_vm0, %v6621_v49 }
 0x2aa   :  { %v3708_v19 = vpop.f32.mrf.mxu2  ;;  %v3557_v0 = vpop.f32.mrf.mxu0 }
 0x2ab   :  { %v3755_v49 = vpop.f32.mrf.mxu3  ;;  %v3709_v28 = vadd.f32 %v3708_v19, %v7046_v46  ;;  %v7417_v46 = vadd.f32 %v7211_v17, %v3202_v50  ;;  %v7465_v19 = vadd.f32 %v7312_v6, %v3191_v51  ;;  %v3203_v50 = vmul.f32 %v7303_v31, %v7072_v20 }
 0x2ac   :  { %v3756_v38 = vadd.f32 %v3755_v49, %v7049_v27 }
 0x2ad   :  { %v3589_v40 = vpop.f32.mrf.mxu1  ;;  %5715 = vst [vmem:[%s7691_s6 + $0x300] sm:$0xff] %v3709_v28  ;;  %v3558_v29 = vadd.f32 %v3557_v0, %v7417_v46 }
 0x2ae   :  { %v3590_v35 = vadd.f32 %v3589_v40, %v7383_v63  ;;  %5716 = vst [vmem:[%s7691_s6 + $0x308] sm:$0xff] %v3756_v38  ;;  %v3197_v40 = vmul.f32 %v7303_v31, %v7026_v56 }
 0x2af   :  { %3659 = vst [vmem:[%s7691_s6 + $0x170] sm:$0xff] %v3558_v29 }
 0x2b0   :  { %3630 = vst [vmem:[%s7691_s6 + $0x88] sm:$0xff] %v3590_v35  ;;  %5657 = vmatmul.msk.f32.gmra.mxu1 %vm3300_vm0, %v6636_v43  ;;  %v7490_v56 = vadd.f32 %v7312_v6, %v3197_v40 }
 0x2b2   :  { %v3711_v23 = vpop.f32.mrf.mxu2  ;;  %v3560_v27 = vpop.f32.mrf.mxu0 }
 0x2b3   :  { %v3758_v43 = vpop.f32.mrf.mxu3  ;;  %v3712_v7 = vadd.f32 %v3711_v23, %v7092_v54 }
 0x2b4   :  { %v3759_v32 = vadd.f32 %v3758_v43, %v7095_v5  ;;  %v7445_v5 = vadd.f32 %v7211_v17, %v3208_v37 }
 0x2b5   :  { %v3592_v62 = vpop.f32.mrf.mxu1  ;;  %5721 = vst [vmem:[%s7691_s6 + $0x330] sm:$0xff] %v3712_v7 }
 0x2b6   :  { %v3593_v13 = vadd.f32 %v3592_v62, %v7411_v47  ;;  %5722 = vst [vmem:[%s7691_s6 + $0x338] sm:$0xff] %v3759_v32  ;;  %v3561_v59 = vadd.f32 %v3560_v27, %v7445_v5  ;;  %v7511_v62 = vadd.f32 %v7312_v6, %v3203_v50 }
 0x2b8   :  { %3636 = vst [vmem:[%s7691_s6 + $0xb8] sm:$0xff] %v3593_v13  ;;  %5658 = vmatmul.msk.f32.gmra.mxu1 %vm3300_vm0, %v6652_v4  ;;  %v3209_v13 = vmul.f32 %v7303_v31, %v7118_v55 }
 0x2b9   :  { %3665 = vst [vmem:[%s7691_s6 + $0x1a0] sm:$0xff] %v3561_v59 }
 0x2ba   :  { %v3714_v42 = vpop.f32.mrf.mxu2  ;;  %v3563_v54 = vpop.f32.mrf.mxu0 }
 0x2bb   :  { %v3761_v4 = vpop.f32.mrf.mxu3  ;;  %v3715_v1 = vadd.f32 %v3714_v42, %v7138_v10  ;;  %v7532_v42 = vadd.f32 %v7312_v6, %v3209_v13 }
 0x2bc   :  { %v3762_v8 = vadd.f32 %v3761_v4, %v7141_v39  ;;  %v7471_v39 = vadd.f32 %v7211_v17, %v3214_v48 }
 0x2bd   :  { %v3595_v2 = vpop.f32.mrf.mxu1  ;;  %5727 = vst [vmem:[%s7691_s6 + $0x360] sm:$0xff] %v3715_v1 }
 0x2be   :  { %v3596_v21 = vadd.f32 %v3595_v2, %v7439_v15  ;;  %5728 = vst [vmem:[%s7691_s6 + $0x368] sm:$0xff] %v3762_v8  ;;  %v3564_v49 = vadd.f32 %v3563_v54, %v7471_v39  ;;  %v3215_v54 = vmul.f32 %v7303_v31, %v7164_v58 }
 0x2c0   :  { %3642 = vst [vmem:[%s7691_s6 + $0xe8] sm:$0xff] %v3596_v21  ;;  %v7553_v51 = vadd.f32 %v7312_v6, %v3215_v54  ;;  %v7746_v6 = vld [vmem:[#allocation15_spill] sm:$0xff] }
 0x2c1   :  { %3671 = vst [vmem:[%s7691_s6 + $0x1d0] sm:$0x1f] %v3564_v49 }
 0x2c2   :  { %v3717_v12 = vpop.f32.mrf.mxu2  ;;  %v3784_v10 = vpop.f32.mrf.mxu0 }
 0x2c3   :  { %v3764_v0 = vpop.f32.mrf.mxu3  ;;  %v3718_v35 = vadd.f32 %v3717_v12, %v7184_v3  ;;  %v3785_v17 = vadd.f32 %v3784_v10, %v6778_v22  ;;  %v7747_v10 = vld [vmem:[#allocation16_spill] sm:$0xff] }
 0x2c4   :  { %v3765_v41 = vadd.f32 %v3764_v0, %v7187_v36 }
 0x2c5   :  { %v3598_v26 = vpop.f32.mrf.mxu1  ;;  %5733 = vst [vmem:[%s7691_s6 + $0x390] sm:$0x1f] %v3718_v35 }
 0x2c6   :  { %v3599_v9 = vadd.f32 %v3598_v26, %v7465_v19  ;;  %5734 = vst [vmem:[%s7691_s6 + $0x398] sm:$0x1f] %v3765_v41 }
 0x2c7   :  { %5681 = vst [vmem:[%s7691_s6 + $0x1f0] sm:$0xff] %v3785_v17  ;;  %v7749_v17 = vld [vmem:[#allocation12_spill] sm:$0xff] }
 0x2c8   :  { %3648 = vst [vmem:[%s7691_s6 + $0x118] sm:$0xff] %v3599_v9  ;;  %v7748_v9 = vld [vmem:[#allocation18_spill] sm:$0xff] }
 0x2ca   :  { %v3878_v28 = vpop.f32.mrf.mxu2  ;;  %v3787_v3 = vpop.f32.mrf.mxu0 }
 0x2cb   :  { %v3925_v36 = vpop.f32.mrf.mxu3  ;;  %v3879_v23 = vadd.f32 %v3878_v28, %v7228_v45  ;;  %v3788_v43 = vadd.f32 %v3787_v3, %v6822_v57 }
 0x2cc   :  { %v3926_v27 = vadd.f32 %v3925_v36, %v7330_v14 }
 0x2cd   :  { %v3601_v38 = vpop.f32.mrf.mxu1  ;;  %5683 = vst [vmem:[%s7691_s6 + $0x200] sm:$0xff] %v3879_v23 }
 0x2ce   :  { %v3602_v22 = vadd.f32 %v3601_v38, %v7490_v56  ;;  %5684 = vst [vmem:[%s7691_s6 + $0x208] sm:$0xff] %v3926_v27  ;;  %v7750_v38 = vld [vmem:[#allocation20_spill] sm:$0xff]  ;;  %v7751_v27 = vld [vmem:[#allocation14_spill] sm:$0xff] }
 0x2cf   :  { %5687 = vst [vmem:[%s7691_s6 + $0x220] sm:$0xff] %v3788_v43 }
 0x2d0   :  { %3654 = vst [vmem:[%s7691_s6 + $0x148] sm:$0xff] %v3602_v22 }
 0x2d2   :  { %v3881_v29 = vpop.f32.mrf.mxu2  ;;  %v3790_v20 = vpop.f32.mrf.mxu0 }
 0x2d3   :  { %v3928_v45 = vpop.f32.mrf.mxu3  ;;  %v3882_v25 = vadd.f32 %v3881_v29, %v7253_v24  ;;  %v3791_v32 = vadd.f32 %v3790_v20, %v6868_v61 }
 0x2d4   :  { %v3929_v7 = vadd.f32 %v3928_v45, %v7355_v34  ;;  %v7752_v45 = vld [vmem:[#allocation22_spill] sm:$0xff] }
 0x2d5   :  { %v3604_v14 = vpop.f32.mrf.mxu1  ;;  %5689 = vst [vmem:[%s7691_s6 + $0x230] sm:$0xff] %v3882_v25  ;;  %v7753_v25 = vld [vmem:[#allocation13_spill] sm:$0xff] }
 0x2d6   :  { %v3605_v57 = vadd.f32 %v3604_v14, %v7511_v62  ;;  %5690 = vst [vmem:[%s7691_s6 + $0x238] sm:$0xff] %v3929_v7 }
 0x2d7   :  { %5693 = vst [vmem:[%s7691_s6 + $0x250] sm:$0xff] %v3791_v32 }
 0x2d8   :  { %3660 = vst [vmem:[%s7691_s6 + $0x178] sm:$0xff] %v3605_v57 }
 0x2da   :  { %v3884_v37 = vpop.f32.mrf.mxu2  ;;  %v3793_v55 = vpop.f32.mrf.mxu0 }
 0x2db   :  { %v3931_v24 = vpop.f32.mrf.mxu3  ;;  %v3885_v4 = vadd.f32 %v3884_v37, %v7278_v30  ;;  %v3794_v2 = vadd.f32 %v3793_v55, %v6914_v52 }
 0x2dc   :  { %v3932_v59 = vadd.f32 %v3931_v24, %v7383_v63 }
 0x2dd   :  { %v3607_v34 = vpop.f32.mrf.mxu1  ;;  %5695 = vst [vmem:[%s7691_s6 + $0x260] sm:$0xff] %v3885_v4 }
 0x2de   :  { %v3608_v61 = vadd.f32 %v3607_v34, %v7532_v42  ;;  %5696 = vst [vmem:[%s7691_s6 + $0x268] sm:$0xff] %v3932_v59 }
 0x2df   :  { %5699 = vst [vmem:[%s7691_s6 + $0x280] sm:$0xff] %v3794_v2 }
 0x2e0   :  { %3666 = vst [vmem:[%s7691_s6 + $0x1a8] sm:$0xff] %v3608_v61 }
 0x2e2   :  { %v3887_v21 = vpop.f32.mrf.mxu2  ;;  %v3796_v58 = vpop.f32.mrf.mxu0 }
 0x2e3   :  { %v3934_v30 = vpop.f32.mrf.mxu3  ;;  %v3888_v63 = vadd.f32 %v3887_v21, %v7306_v53  ;;  %v3797_v8 = vadd.f32 %v3796_v58, %v7746_v6  ;;  %v7755_v58 = vld [vmem:[#allocation19_spill] sm:$0xff] }
 0x2e4   :  { %v3935_v1 = vadd.f32 %v3934_v30, %v7411_v47 }
 0x2e5   :  { %v3610_v31 = vpop.f32.mrf.mxu1  ;;  %5701 = vst [vmem:[%s7691_s6 + $0x290] sm:$0xff] %v3888_v63 }
 0x2e6   :  { %v3611_v52 = vadd.f32 %v3610_v31, %v7553_v51  ;;  %5702 = vst [vmem:[%s7691_s6 + $0x298] sm:$0xff] %v3935_v1 }
 0x2e7   :  { %5705 = vst [vmem:[%s7691_s6 + $0x2b0] sm:$0xff] %v3797_v8  ;;  %v7758_v8 = vld [vmem:[#allocation24_spill] sm:$0xff] }
 0x2e8   :  { %3672 = vst [vmem:[%s7691_s6 + $0x1d8] sm:$0x1f] %v3611_v52 }
 0x2ea   :  { %v3890_v48 = vpop.f32.mrf.mxu2  ;;  %v3799_v12 = vpop.f32.mrf.mxu0 }
 0x2eb   :  { %v3937_v53 = vpop.f32.mrf.mxu3  ;;  %v3891_v49 = vadd.f32 %v3890_v48, %v7333_v60  ;;  %v3800_v40 = vadd.f32 %v3799_v12, %v7748_v9 }
 0x2ec   :  { %v3938_v26 = vadd.f32 %v3937_v53, %v7439_v15 }
 0x2ed   :  { %v3831_v47 = vpop.f32.mrf.mxu1  ;;  %5707 = vst [vmem:[%s7691_s6 + $0x2c0] sm:$0xff] %v3891_v49 }
 0x2ee   :  { %v3832_v0 = vadd.f32 %v3831_v47, %v7747_v10  ;;  %5708 = vst [vmem:[%s7691_s6 + $0x2c8] sm:$0xff] %v3938_v26 }
 0x2ef   :  { %5711 = vst [vmem:[%s7691_s6 + $0x2e0] sm:$0xff] %v3800_v40 }
 0x2f0   :  { %5682 = vst [vmem:[%s7691_s6 + $0x1f8] sm:$0xff] %v3832_v0 }
 0x2f2   :  { %v3893_v35 = vpop.f32.mrf.mxu2  ;;  %v3802_v41 = vpop.f32.mrf.mxu0 }
 0x2f3   :  { %v3940_v60 = vpop.f32.mrf.mxu3  ;;  %v3894_v3 = vadd.f32 %v3893_v35, %v7361_v11  ;;  %v3803_v22 = vadd.f32 %v3802_v41, %v7750_v38 }
 0x2f4   :  { %v3941_v36 = vadd.f32 %v3940_v60, %v7465_v19 }
 0x2f5   :  { %v3834_v15 = vpop.f32.mrf.mxu1  ;;  %5713 = vst [vmem:[%s7691_s6 + $0x2f0] sm:$0xff] %v3894_v3 }
 0x2f6   :  { %v3835_v28 = vadd.f32 %v3834_v15, %v7749_v17  ;;  %5714 = vst [vmem:[%s7691_s6 + $0x2f8] sm:$0xff] %v3941_v36 }
 0x2f7   :  { %5717 = vst [vmem:[%s7691_s6 + $0x310] sm:$0xff] %v3803_v22 }
 0x2f8   :  { %5688 = vst [vmem:[%s7691_s6 + $0x228] sm:$0xff] %v3835_v28 }
 0x2fa   :  { %v3896_v50 = vpop.f32.mrf.mxu2  ;;  %v3805_v23 = vpop.f32.mrf.mxu0 }
 0x2fb   :  { %v3943_v11 = vpop.f32.mrf.mxu3  ;;  %v3897_v29 = vadd.f32 %v3896_v50, %v7389_v33  ;;  %v3806_v14 = vadd.f32 %v3805_v23, %v7752_v45 }
 0x2fc   :  { %v3944_v20 = vadd.f32 %v3943_v11, %v7490_v56 }
 0x2fd   :  { %v3837_v19 = vpop.f32.mrf.mxu1  ;;  %5719 = vst [vmem:[%s7691_s6 + $0x320] sm:$0xff] %v3897_v29 }
 0x2fe   :  { %v3838_v43 = vadd.f32 %v3837_v19, %v7751_v27  ;;  %5720 = vst [vmem:[%s7691_s6 + $0x328] sm:$0xff] %v3944_v20 }
 0x2ff   :  { %5723 = vst [vmem:[%s7691_s6 + $0x340] sm:$0xff] %v3806_v14 }
 0x300   :  { %5694 = vst [vmem:[%s7691_s6 + $0x258] sm:$0xff] %v3838_v43 }
 0x302   :  { %v3899_v57 = vpop.f32.mrf.mxu2  ;;  %v3808_v13 = vpop.f32.mrf.mxu0 }
 0x303   :  { %v3946_v33 = vpop.f32.mrf.mxu3  ;;  %v3900_v32 = vadd.f32 %v3899_v57, %v7417_v46  ;;  %v3809_v55 = vadd.f32 %v3808_v13, %v7144_v18 }
 0x304   :  { %v3947_v37 = vadd.f32 %v3946_v33, %v7511_v62 }
 0x305   :  { %v3840_v56 = vpop.f32.mrf.mxu1  ;;  %5725 = vst [vmem:[%s7691_s6 + $0x350] sm:$0xff] %v3900_v32 }
 0x306   :  { %v3841_v7 = vadd.f32 %v3840_v56, %v7753_v25  ;;  %5726 = vst [vmem:[%s7691_s6 + $0x358] sm:$0xff] %v3947_v37 }
 0x307   :  { %5729 = vst [vmem:[%s7691_s6 + $0x370] sm:$0xff] %v3809_v55 }
 0x308   :  { %5700 = vst [vmem:[%s7691_s6 + $0x288] sm:$0xff] %v3841_v7 }
 0x30a   :  { %v3902_v24 = vpop.f32.mrf.mxu2  ;;  %v3811_v46 = vpop.f32.mrf.mxu0 }
 0x30b   :  { %v3903_v34 = vadd.f32 %v3902_v24, %v7445_v5  ;;  %v3949_v18 = vpop.f32.mrf.mxu3  ;;  %v3812_v62 = vadd.f32 %v3811_v46, %v7190_v44  ;;  %v7754_v5 = vld [vmem:[#allocation17_spill] sm:$0xff] }
 0x30c   :  { %v3950_v61 = vadd.f32 %v3949_v18, %v7532_v42 }
 0x30d   :  { %5731 = vst [vmem:[%s7691_s6 + $0x380] sm:$0xff] %v3903_v34  ;;  %v3843_v54 = vpop.f32.mrf.mxu1 }
 0x30e   :  { %5735 = vst [vmem:[%s7691_s6 + $0x3a0] sm:$0x1f] %v3812_v62  ;;  %v3844_v4 = vadd.f32 %v3843_v54, %v7754_v5 }
 0x30f   :  { %5732 = vst [vmem:[%s7691_s6 + $0x388] sm:$0xff] %v3950_v61 }
 0x310   :  { %5706 = vst [vmem:[%s7691_s6 + $0x2b8] sm:$0xff] %v3844_v4 }
 0x312   :  { %v3905_v44 = vpop.f32.mrf.mxu2 }
 0x313   :  { %v3906_v59 = vadd.f32 %v3905_v44, %v7471_v39  ;;  %v3952_v2 = vpop.f32.mrf.mxu3  ;;  %v7756_v39 = vld [vmem:[#allocation21_spill] sm:$0xff] }
 0x314   :  { %v3953_v42 = vadd.f32 %v3952_v2, %v7553_v51  ;;  %v7757_v51 = vld [vmem:[#allocation23_spill] sm:$0xff] }
 0x315   :  { %5737 = vst [vmem:[%s7691_s6 + $0x3b0] sm:$0x1f] %v3906_v59  ;;  %v3846_v21 = vpop.f32.mrf.mxu1 }
 0x316   :  { %v3847_v30 = vadd.f32 %v3846_v21, %v7755_v58  ;;  %5738 = vst [vmem:[%s7691_s6 + $0x3b8] sm:$0x1f] %v3953_v42 }
 0x318   :  { %5712 = vst [vmem:[%s7691_s6 + $0x2e8] sm:$0xff] %v3847_v30 }
 0x31d   :  { %v3849_v31 = vpop.f32.mrf.mxu1 }
 0x31e   :  { %v3850_v52 = vadd.f32 %v3849_v31, %v7756_v39 }
 0x320   :  { %5718 = vst [vmem:[%s7691_s6 + $0x318] sm:$0xff] %v3850_v52 }
 0x325   :  { %v3852_v63 = vpop.f32.mrf.mxu1 }
 0x326   :  { %v3853_v1 = vadd.f32 %v3852_v63, %v7757_v51 }
 0x328   :  { %5724 = vst [vmem:[%s7691_s6 + $0x348] sm:$0xff] %v3853_v1 }
 0x32d   :  { %v3855_v6 = vpop.f32.mrf.mxu1 }
 0x32e   :  { %v3856_v48 = vadd.f32 %v3855_v6, %v7758_v8 }
 0x330   :  { %5730 = vst [vmem:[%s7691_s6 + $0x378] sm:$0xff] %v3856_v48 }
 0x335   :  { %v3858_v12 = vpop.f32.mrf.mxu1 }
 0x336   :  { %v3859_v53 = vadd.f32 %v3858_v12, %v7193_v16 }
 0x338   :  { %5736 = vst [vmem:[%s7691_s6 + $0x3a8] sm:$0x1f] %v3859_v53 }
 0x339   :  { %4020 = vsyncpa [#allocation3], 1 }
 0x33a   :  { %4021 = vsyncpa [#allocation5], 1 }
 0x33b   :  { %4022 = vsyncpa [#allocation8], 1 }

</bundles_post_ra>
